<compile_context>
chip_gen: v6e
topology: v6e:2x2x1
jax: 0.10.0
libtpu: 0.0.40
codegen_flags: <defaults>
</compile_context>

<pallas_src>
import functools

import jax
import jax.numpy as jnp
from jax.experimental import pallas as pl
from jax.experimental.pallas import tpu as pltpu


def _layer_norm(x, g, b, eps):
    mu = jnp.mean(x, axis=-1, keepdims=True)
    var = jnp.mean(jnp.square(x - mu), axis=-1, keepdims=True)
    return (x - mu) * jax.lax.rsqrt(var + eps) * g + b


def _decoder_kernel(H, NLAYER, NLOCI,
                    x_ref, cov_ref, z_ref,
                    in_g_ref, in_b_ref,
                    cov_w_ref, cov_b_ref, lat_w_ref, lat_b_ref,
                    ln1_g_ref, ln1_b_ref, ln2_g_ref, ln2_b_ref,
                    qkv_w_ref, qkv_b_ref, ow_ref, ob_ref,
                    f1w_ref, f1b_ref, f2w_ref, f2b_ref,
                    fin_g_ref, fin_b_ref,
                    hw_ref, hb_ref,
                    logits_ref):
    f32 = jnp.float32
    BB, S, D = x_ref.shape
    HD = D // H
    scale = 1.0 / float(HD) ** 0.5

    # input LayerNorm (eps=1e-3); dropout layers are identity in eval mode
    x = _layer_norm(x_ref[...], in_g_ref[...], in_b_ref[...], 1e-3)

    # covariate / latent projections (clamped to [-10, 10]); single broadcast
    # over the sequence dim instead of a per-sample Python loop.
    cov_w = jnp.broadcast_to(cov_w_ref[...][None], (BB,) + cov_w_ref.shape)
    lat_w = jnp.broadcast_to(lat_w_ref[...][None], (BB,) + lat_w_ref.shape)
    cov_e = jnp.clip(
        jnp.einsum('bic,bcd->bid', cov_ref[...], cov_w,
                   preferred_element_type=f32) + cov_b_ref[...], -10.0, 10.0)
    z_e = jnp.clip(
        jnp.einsum('bic,bcd->bid', z_ref[...], lat_w,
                   preferred_element_type=f32) + lat_b_ref[...], -10.0, 10.0)
    x = x + cov_e + z_e                                   # (BB,1,D) over seq

    # causal mask generated in-kernel (no HBM mask input). Reference masks
    # j <= i; -1e9 instead of -inf (see module docstring).
    row = jax.lax.broadcasted_iota(jnp.int32, (S, S), 0)
    col = jax.lax.broadcasted_iota(jnp.int32, (S, S), 1)
    mask = jnp.where(col <= row, f32(-1e9), f32(0.0))     # (S, S)

    def rep_heads(w):
        # (H, A, C) -> (H*BB, A, C), group index g = h*BB + b.  BB is capped
        # in the wrapper so these replications are small (few hundred KiB).
        return jnp.concatenate(
            [jnp.broadcast_to(w[h][None], (BB,) + w.shape[1:]) for h in range(H)],
            axis=0)

    # TODO(synk): if num_layers grows, switch this trace-unrolled loop to
    # lax.fori_loop over the stacked (L, ...) weight refs to bound live ranges.
    for l in range(NLAYER):
        # ---- pre-norm multi-head self-attention (eps=1e-5) ----
        xn = _layer_norm(x, ln1_g_ref[l], ln1_b_ref[l], 1e-5)
        xh = jnp.concatenate([xn] * H, axis=0)            # (H*BB, S, D)
        # fused QKV projection: one matmul per layer, split with lane slices
        qkv = jnp.einsum('gsd,gde->gse', xh, rep_heads(qkv_w_ref[l]),
                         preferred_element_type=f32) + rep_heads(qkv_b_ref[l])
        q = qkv[..., :HD]
        k = qkv[..., HD:2 * HD]
        v = qkv[..., 2 * HD:]
        # per-sample, per-head scores: (H*BB, S, S)
        s = jnp.einsum('gqe,gke->gqk', q, k,
                       preferred_element_type=f32) * scale + mask
        s = s - jnp.max(s, axis=-1, keepdims=True)
        p = jnp.exp(s)
        p = p / jnp.sum(p, axis=-1, keepdims=True)        # exact divide
        o = jnp.einsum('gqk,gke->gqe', p, v,
                       preferred_element_type=f32)        # (H*BB, S, HD)
        proj = jnp.einsum('gse,ged->gsd', o, rep_heads(ow_ref[l]),
                          preferred_element_type=f32)     # (H*BB, S, D)
        # head reduction: H-1 adds of (BB,S,D) (static leading-dim slices)
        attn = proj[0:BB]
        for h in range(1, H):
            attn = attn + proj[h * BB:(h + 1) * BB]
        x = x + attn + ob_ref[l]
        # ---- pre-norm feed-forward (ReLU) ----
        xn2 = _layer_norm(x, ln2_g_ref[l], ln2_b_ref[l], 1e-5)
        f1w = jnp.broadcast_to(f1w_ref[l][None], (BB,) + f1w_ref.shape[1:])
        h1 = jnp.maximum(
            jnp.einsum('bsd,bdf->bsf', xn2, f1w,
                       preferred_element_type=f32) + f1b_ref[l], 0.0)
        f2w = jnp.broadcast_to(f2w_ref[l][None], (BB,) + f2w_ref.shape[1:])
        x = x + jnp.einsum('bsf,bfd->bsd', h1, f2w,
                           preferred_element_type=f32) + f2b_ref[l]

    # final decoder LayerNorm (eps=1e-3) + clamp
    x = _layer_norm(x, fin_g_ref[...], fin_b_ref[...], 1e-3)
    xc = jnp.clip(x, -10.0, 10.0)

    # per-locus heads: rows 0..NLOCI-1 against the column-packed head weights
    # (WPAD is a multiple of 128), one matmul + one unmasked lane-dense store.
    hid = xc[:, :NLOCI, :]                                # (BB, NLOCI, D)
    hw = jnp.broadcast_to(hw_ref[...][None], (BB,) + hw_ref.shape)
    logits_ref[...] = jnp.einsum('bld,bdw->blw', hid, hw,
                                 preferred_element_type=f32) + hb_ref[...]


def _batch_block_size(B):
    """Samples per grid step.  v7x (2 TensorCores): split batch over >= 2
    'parallel' steps; otherwise one step for the whole batch.  Capped at 64 so
    per-step in-kernel weight replication / VMEM stays small."""
    cap = 64
    try:
        kind = jax.devices()[0].device_kind.lower().replace(" ", "")
    except Exception:
        kind = ""
    if "v7" in kind or "tpu7" in kind:
        return max(1, min(cap, -(-B // 2)))
    return max(1, min(cap, B))


def init_params(key, cfg):
    D = cfg['embedding_dim']; L = cfg['num_layers']; F = cfg['ff_dim']
    H = cfg['num_heads']; HD = D // H
    NLOCI = cfg['num_loci']; Cd = cfg['covariate_dim']; Zd = cfg['latent_dim']
    loci = cfg['loci_order']; vocab = cfg['vocab_sizes']
    keys = iter(jax.random.split(key, 64))
    n = lambda shape, s=0.1: s * jax.random.normal(next(keys), shape, dtype=jnp.float32)
    p = {}
    p['emb'] = {loc: n((vocab[loc], D), 0.2) for loc in loci}
    p['pos'] = n((NLOCI, D), 0.2)
    p['in_g'] = jnp.ones((1, D), jnp.float32) + n((1, D), 0.01)
    p['in_b'] = n((1, D), 0.01)
    # all Linear weights stored pre-transposed: (in_features, out_features)
    p['cov_w'] = n((Cd, D)); p['cov_b'] = n((1, D), 0.01)
    p['lat_w'] = n((Zd, D)); p['lat_b'] = n((1, D), 0.01)
    p['ln1_g'] = jnp.ones((L, 1, D), jnp.float32) + n((L, 1, D), 0.01)
    p['ln1_b'] = n((L, 1, D), 0.01)
    p['ln2_g'] = jnp.ones((L, 1, D), jnp.float32) + n((L, 1, D), 0.01)
    p['ln2_b'] = n((L, 1, D), 0.01)
    # fused per-head QKV (L, H, D, 3*HD); per-head out projection (L, H, HD, D)
    p['qkv_w'] = n((L, H, D, 3 * HD)); p['qkv_b'] = n((L, H, 1, 3 * HD), 0.01)
    p['ow'] = n((L, H, HD, D));        p['ob'] = n((L, 1, D), 0.01)
    p['f1w'] = n((L, D, F));           p['f1b'] = n((L, 1, F), 0.01)
    p['f2w'] = n((L, F, D));           p['f2b'] = n((L, 1, D), 0.01)
    p['fin_g'] = jnp.ones((1, D), jnp.float32) + n((1, D), 0.01)
    p['fin_b'] = n((1, D), 0.01)
    # per-locus heads packed column-wise, padded to a multiple of 128 lanes so
    # the kernel's final store is unmasked / lane-dense.
    offs = {}
    pieces_w, pieces_b, off = [], [], 0
    for loc in loci:
        offs[loc] = off
        pieces_w.append(n((D, vocab[loc])))
        pieces_b.append(n((1, vocab[loc]), 0.01))
        off += vocab[loc]
    wpad = ((off + 127) // 128) * 128
    p['head_w'] = jnp.pad(jnp.concatenate(pieces_w, axis=1),
                          ((0, 0), (0, wpad - off)))           # (D, WPAD)
    p['head_b'] = jnp.pad(jnp.concatenate(pieces_b, axis=1),
                          ((0, 0), (0, wpad - off)))           # (1, WPAD)
    p['head_offs'] = offs
    return p


def forward(params, input_tokens, covariates, latent_variable, cfg):
    vocab = cfg['vocab_sizes']; loci = cfg['loci_order']
    B, S = input_tokens.shape
    D = cfg['embedding_dim']; H = cfg['num_heads']; L = cfg['num_layers']
    NLOCI = cfg['num_loci']
    WPAD = params['head_w'].shape[-1]

    # --- glue: per-locus embedding lookups + positional embedding (gathers) ---
    # TODO(synk): table gathers stay in plain JAX outside the kernel.
    bos_id = cfg['bos_token_id']
    rows = [jnp.broadcast_to(params['emb'][loci[0]][bos_id][None, None, :], (B, 1, D))]
    for i in range(S - 1):
        loc = loci[i % NLOCI]
        rows.append(jnp.take(params['emb'][loc], input_tokens[:, i + 1], axis=0)[:, None, :])
    allele = jnp.concatenate(rows, axis=1)                     # (B, S, D)
    n_apply = min(S - 1, NLOCI)
    pos = jnp.zeros((S, D), jnp.float32).at[1:1 + n_apply].set(params['pos'][:n_apply])
    x = (allele + pos[None]).astype(jnp.float32)               # (B, S, D)

    cov = covariates.astype(jnp.float32)[:, None, :]           # (B, 1, Cd)
    z = latent_variable.astype(jnp.float32)[:, None, :]        # (B, 1, Zd)

    BB = _batch_block_size(B)
    nblk = -(-B // BB)
    B_pad = nblk * BB
    if B_pad != B:                                             # pad; no dropped samples
        padn = B_pad - B
        x = jnp.pad(x, ((0, padn), (0, 0), (0, 0)))
        cov = jnp.pad(cov, ((0, padn), (0, 0), (0, 0)))
        z = jnp.pad(z, ((0, padn), (0, 0), (0, 0)))
    Cd = cov.shape[-1]; Zd = z.shape[-1]

    kernel = functools.partial(_decoder_kernel, H, L, NLOCI)

    def _full(a):
        zidx = (0,) * a.ndim
        return pl.BlockSpec(a.shape, lambda b, _z=zidx: _z)

    weight_args = (
        params['in_g'], params['in_b'],
        params['cov_w'], params['cov_b'], params['lat_w'], params['lat_b'],
        params['ln1_g'], params['ln1_b'], params['ln2_g'], params['ln2_b'],
        params['qkv_w'], params['qkv_b'], params['ow'], params['ob'],
        params['f1w'], params['f1b'], params['f2w'], params['f2b'],
        params['fin_g'], params['fin_b'],
        params['head_w'], params['head_b'],
    )
    in_specs = [
        pl.BlockSpec((BB, S, D), lambda b: (b, 0, 0)),         # per-step batch block
        pl.BlockSpec((BB, 1, Cd), lambda b: (b, 0, 0)),
        pl.BlockSpec((BB, 1, Zd), lambda b: (b, 0, 0)),
    ] + [_full(a) for a in weight_args]
    out_specs = pl.BlockSpec((BB, NLOCI, WPAD), lambda b: (b, 0, 0))

    logits = pl.pallas_call(
        kernel,
        out_shape=jax.ShapeDtypeStruct((B_pad, NLOCI, WPAD), jnp.float32),
        grid=(nblk,),
        in_specs=in_specs,
        out_specs=out_specs,
        compiler_params=pltpu.CompilerParams(
            dimension_semantics=("parallel",),
            vmem_limit_bytes=32 * 1024 * 1024),
    )(x, cov, z, *weight_args)

    offs = params['head_offs']
    return {loc: logits[:B, i, offs[loc]:offs[loc] + vocab[loc]]
            for i, loc in enumerate(loci)}


if __name__ == "__main__":
    cfg = dict(
        vocab_sizes={'HLA_A': 8, 'HLA_B': 10, 'HLA_C': 12},
        num_loci=3,
        embedding_dim=32,
        num_heads=4,
        num_layers=2,
        ff_dim=64,
        dropout=0.1,          # identity in eval
        covariate_dim=5,
        latent_dim=6,
        loci_order=['HLA_A', 'HLA_B', 'HLA_C'],
        bos_token_id=2,       # tokenizer.special_tokens['BOS']
    )
    key = jax.random.PRNGKey(0)
    kp, kt, kc, kz = jax.random.split(key, 4)
    params = init_params(kp, cfg)

    B = 2
    S = cfg['num_loci'] + 1
    tok_keys = jax.random.split(kt, cfg['num_loci'])
    cols = [jnp.full((B, 1), cfg['bos_token_id'], dtype=jnp.int32)]
    for i, loc in enumerate(cfg['loci_order']):
        cols.append(jax.random.randint(tok_keys[i], (B, 1), 0,
                                       cfg['vocab_sizes'][loc], dtype=jnp.int32))
    input_tokens = jnp.concatenate(cols, axis=1)               # (B, S), BOS at col 0
    covariates = jax.random.normal(kc, (B, cfg['covariate_dim']), dtype=jnp.float32)
    latent = jax.random.normal(kz, (B, cfg['latent_dim']), dtype=jnp.float32)

    out = forward(params, input_tokens, covariates, latent, cfg)
    out = jax.block_until_ready(out)
    for loc in cfg['loci_order']:
        assert out[loc].shape == (B, cfg['vocab_sizes'][loc])
        assert bool(jnp.all(jnp.isfinite(out[loc])))
    print("KERNEL_OK")
</pallas_src>

<mosaic_0001>
module attributes {stable_mosaic.version = 11 : i64} {
  func.func @_decoder_kernel(%arg0: i32, %arg1: memref<2x4x32xf32, #tpu.memory_space<vmem>>, %arg2: memref<2x1x5xf32, #tpu.memory_space<vmem>>, %arg3: memref<2x1x6xf32, #tpu.memory_space<vmem>>, %arg4: memref<1x32xf32, #tpu.memory_space<vmem>>, %arg5: memref<1x32xf32, #tpu.memory_space<vmem>>, %arg6: memref<5x32xf32, #tpu.memory_space<vmem>>, %arg7: memref<1x32xf32, #tpu.memory_space<vmem>>, %arg8: memref<6x32xf32, #tpu.memory_space<vmem>>, %arg9: memref<1x32xf32, #tpu.memory_space<vmem>>, %arg10: memref<2x1x32xf32, #tpu.memory_space<vmem>>, %arg11: memref<2x1x32xf32, #tpu.memory_space<vmem>>, %arg12: memref<2x1x32xf32, #tpu.memory_space<vmem>>, %arg13: memref<2x1x32xf32, #tpu.memory_space<vmem>>, %arg14: memref<2x4x32x24xf32, #tpu.memory_space<vmem>>, %arg15: memref<2x4x1x24xf32, #tpu.memory_space<vmem>>, %arg16: memref<2x4x8x32xf32, #tpu.memory_space<vmem>>, %arg17: memref<2x1x32xf32, #tpu.memory_space<vmem>>, %arg18: memref<2x32x64xf32, #tpu.memory_space<vmem>>, %arg19: memref<2x1x64xf32, #tpu.memory_space<vmem>>, %arg20: memref<2x64x32xf32, #tpu.memory_space<vmem>>, %arg21: memref<2x1x32xf32, #tpu.memory_space<vmem>>, %arg22: memref<1x32xf32, #tpu.memory_space<vmem>>, %arg23: memref<1x32xf32, #tpu.memory_space<vmem>>, %arg24: memref<32x128xf32, #tpu.memory_space<vmem>>, %arg25: memref<1x128xf32, #tpu.memory_space<vmem>>, %arg26: memref<2x3x128xf32, #tpu.memory_space<vmem>>) attributes {dimension_semantics = [#tpu.dimension_semantics<parallel>], iteration_bounds = array<i64: 1>, scalar_prefetch = 0 : i64, scratch_operands = 0 : i64, tpu.core_type = #tpu.core_type<tc>, window_params = [{transform_indices = @transform_0, window_bounds = array<i64: 2, 4, 32>}, {transform_indices = @transform_1, window_bounds = array<i64: 2, 1, 5>}, {transform_indices = @transform_2, window_bounds = array<i64: 2, 1, 6>}, {pipeline_mode = #tpu.pipeline_mode<synchronous>, transform_indices = @transform_3, window_bounds = array<i64: 1, 32>}, {pipeline_mode = #tpu.pipeline_mode<synchronous>, transform_indices = @transform_4, window_bounds = array<i64: 1, 32>}, {pipeline_mode = #tpu.pipeline_mode<synchronous>, transform_indices = @transform_5, window_bounds = array<i64: 5, 32>}, {pipeline_mode = #tpu.pipeline_mode<synchronous>, transform_indices = @transform_6, window_bounds = array<i64: 1, 32>}, {pipeline_mode = #tpu.pipeline_mode<synchronous>, transform_indices = @transform_7, window_bounds = array<i64: 6, 32>}, {pipeline_mode = #tpu.pipeline_mode<synchronous>, transform_indices = @transform_8, window_bounds = array<i64: 1, 32>}, {pipeline_mode = #tpu.pipeline_mode<synchronous>, transform_indices = @transform_9, window_bounds = array<i64: 2, 1, 32>}, {pipeline_mode = #tpu.pipeline_mode<synchronous>, transform_indices = @transform_10, window_bounds = array<i64: 2, 1, 32>}, {pipeline_mode = #tpu.pipeline_mode<synchronous>, transform_indices = @transform_11, window_bounds = array<i64: 2, 1, 32>}, {pipeline_mode = #tpu.pipeline_mode<synchronous>, transform_indices = @transform_12, window_bounds = array<i64: 2, 1, 32>}, {pipeline_mode = #tpu.pipeline_mode<synchronous>, transform_indices = @transform_13, window_bounds = array<i64: 2, 4, 32, 24>}, {pipeline_mode = #tpu.pipeline_mode<synchronous>, transform_indices = @transform_14, window_bounds = array<i64: 2, 4, 1, 24>}, {pipeline_mode = #tpu.pipeline_mode<synchronous>, transform_indices = @transform_15, window_bounds = array<i64: 2, 4, 8, 32>}, {pipeline_mode = #tpu.pipeline_mode<synchronous>, transform_indices = @transform_16, window_bounds = array<i64: 2, 1, 32>}, {pipeline_mode = #tpu.pipeline_mode<synchronous>, transform_indices = @transform_17, window_bounds = array<i64: 2, 32, 64>}, {pipeline_mode = #tpu.pipeline_mode<synchronous>, transform_indices = @transform_18, window_bounds = array<i64: 2, 1, 64>}, {pipeline_mode = #tpu.pipeline_mode<synchronous>, transform_indices = @transform_19, window_bounds = array<i64: 2, 64, 32>}, {pipeline_mode = #tpu.pipeline_mode<synchronous>, transform_indices = @transform_20, window_bounds = array<i64: 2, 1, 32>}, {pipeline_mode = #tpu.pipeline_mode<synchronous>, transform_indices = @transform_21, window_bounds = array<i64: 1, 32>}, {pipeline_mode = #tpu.pipeline_mode<synchronous>, transform_indices = @transform_22, window_bounds = array<i64: 1, 32>}, {pipeline_mode = #tpu.pipeline_mode<synchronous>, transform_indices = @transform_23, window_bounds = array<i64: 32, 128>}, {pipeline_mode = #tpu.pipeline_mode<synchronous>, transform_indices = @transform_24, window_bounds = array<i64: 1, 128>}, {transform_indices = @transform_25, window_bounds = array<i64: 2, 3, 128>}]} {
    %c0 = arith.constant 0 : index
    %c0_0 = arith.constant 0 : index
    %c0_1 = arith.constant 0 : index
    %0 = vector.load %arg1[%c0, %c0_0, %c0_1] : memref<2x4x32xf32, #tpu.memory_space<vmem>>, vector<2x4x32xf32>
    %c0_2 = arith.constant 0 : index
    %c0_3 = arith.constant 0 : index
    %1 = vector.load %arg4[%c0_2, %c0_3] : memref<1x32xf32, #tpu.memory_space<vmem>>, vector<1x32xf32>
    %c0_4 = arith.constant 0 : index
    %c0_5 = arith.constant 0 : index
    %2 = vector.load %arg5[%c0_4, %c0_5] : memref<1x32xf32, #tpu.memory_space<vmem>>, vector<1x32xf32>
    %cst = arith.constant dense<0.000000e+00> : vector<2x4xf32>
    %3 = vector.multi_reduction <add>, %0, %cst [2] : vector<2x4x32xf32> to vector<2x4xf32>
    %4 = vector.shape_cast %3 : vector<2x4xf32> to vector<2x4x1xf32>
    %cst_6 = arith.constant 3.200000e+01 : f32
    %5 = vector.broadcast %cst_6 : f32 to vector<2x4x1xf32>
    %6 = arith.divf %4, %5 : vector<2x4x1xf32>
    %7 = vector.broadcast %6 : vector<2x4x1xf32> to vector<2x4x32xf32>
    %8 = arith.subf %0, %7 : vector<2x4x32xf32>
    %9 = arith.mulf %8, %8 : vector<2x4x32xf32>
    %cst_7 = arith.constant dense<0.000000e+00> : vector<2x4xf32>
    %10 = vector.multi_reduction <add>, %9, %cst_7 [2] : vector<2x4x32xf32> to vector<2x4xf32>
    %11 = vector.shape_cast %10 : vector<2x4xf32> to vector<2x4x1xf32>
    %cst_8 = arith.constant 3.200000e+01 : f32
    %12 = vector.broadcast %cst_8 : f32 to vector<2x4x1xf32>
    %13 = arith.divf %11, %12 : vector<2x4x1xf32>
    %14 = vector.broadcast %6 : vector<2x4x1xf32> to vector<2x4x32xf32>
    %15 = arith.subf %0, %14 : vector<2x4x32xf32>
    %cst_9 = arith.constant 1.000000e-03 : f32
    %16 = vector.broadcast %cst_9 : f32 to vector<2x4x1xf32>
    %17 = arith.addf %13, %16 : vector<2x4x1xf32>
    %18 = math.rsqrt %17 : vector<2x4x1xf32>
    %19 = vector.broadcast %18 : vector<2x4x1xf32> to vector<2x4x32xf32>
    %20 = arith.mulf %15, %19 : vector<2x4x32xf32>
    %21 = vector.shape_cast %1 : vector<1x32xf32> to vector<1x1x32xf32>
    %22 = vector.broadcast %21 : vector<1x1x32xf32> to vector<2x4x32xf32>
    %23 = arith.mulf %20, %22 : vector<2x4x32xf32>
    %24 = vector.shape_cast %2 : vector<1x32xf32> to vector<1x1x32xf32>
    %25 = vector.broadcast %24 : vector<1x1x32xf32> to vector<2x4x32xf32>
    %26 = arith.addf %23, %25 : vector<2x4x32xf32>
    %c0_10 = arith.constant 0 : index
    %c0_11 = arith.constant 0 : index
    %27 = vector.load %arg6[%c0_10, %c0_11] : memref<5x32xf32, #tpu.memory_space<vmem>>, vector<5x32xf32>
    %28 = vector.shape_cast %27 : vector<5x32xf32> to vector<1x5x32xf32>
    %29 = vector.shape_cast %28 : vector<1x5x32xf32> to vector<1x5x32xf32>
    %30 = vector.broadcast %29 : vector<1x5x32xf32> to vector<2x5x32xf32>
    %c0_12 = arith.constant 0 : index
    %c0_13 = arith.constant 0 : index
    %31 = vector.load %arg8[%c0_12, %c0_13] : memref<6x32xf32, #tpu.memory_space<vmem>>, vector<6x32xf32>
    %32 = vector.shape_cast %31 : vector<6x32xf32> to vector<1x6x32xf32>
    %33 = vector.shape_cast %32 : vector<1x6x32xf32> to vector<1x6x32xf32>
    %34 = vector.broadcast %33 : vector<1x6x32xf32> to vector<2x6x32xf32>
    %c0_14 = arith.constant 0 : index
    %c0_15 = arith.constant 0 : index
    %c0_16 = arith.constant 0 : index
    %35 = vector.load %arg2[%c0_14, %c0_15, %c0_16] : memref<2x1x5xf32, #tpu.memory_space<vmem>>, vector<2x1x5xf32>
    "tpu.trace_start"() <{level = 10 : i32, message = "bic,bcd->bid"}> : () -> ()
    %cst_17 = arith.constant dense<0.000000e+00> : vector<2x1x32xf32>
    %36 = tpu.matmul %35, %30, %cst_17 {dimension_numbers = #tpu.dot_dimension_numbers<[2], [1], [1], [2], [0, 0, 0, 1, 1, 2], [0], [0]>} : vector<2x1x5xf32>, vector<2x5x32xf32>, vector<2x1x32xf32> -> vector<2x1x32xf32>
    "tpu.trace_stop"() : () -> ()
    %c0_18 = arith.constant 0 : index
    %c0_19 = arith.constant 0 : index
    %37 = vector.load %arg7[%c0_18, %c0_19] : memref<1x32xf32, #tpu.memory_space<vmem>>, vector<1x32xf32>
    %38 = vector.shape_cast %37 : vector<1x32xf32> to vector<1x1x32xf32>
    %39 = vector.broadcast %38 : vector<1x1x32xf32> to vector<2x1x32xf32>
    %40 = arith.addf %36, %39 : vector<2x1x32xf32>
    %cst_20 = arith.constant -1.000000e+01 : f32
    %cst_21 = arith.constant 1.000000e+01 : f32
    %41 = vector.broadcast %cst_20 : f32 to vector<2x1x32xf32>
    %42 = arith.maximumf %41, %40 : vector<2x1x32xf32>
    %43 = vector.broadcast %cst_21 : f32 to vector<2x1x32xf32>
    %44 = arith.minimumf %43, %42 : vector<2x1x32xf32>
    %c0_22 = arith.constant 0 : index
    %c0_23 = arith.constant 0 : index
    %c0_24 = arith.constant 0 : index
    %45 = vector.load %arg3[%c0_22, %c0_23, %c0_24] : memref<2x1x6xf32, #tpu.memory_space<vmem>>, vector<2x1x6xf32>
    "tpu.trace_start"() <{level = 10 : i32, message = "bic,bcd->bid"}> : () -> ()
    %cst_25 = arith.constant dense<0.000000e+00> : vector<2x1x32xf32>
    %46 = tpu.matmul %45, %34, %cst_25 {dimension_numbers = #tpu.dot_dimension_numbers<[2], [1], [1], [2], [0, 0, 0, 1, 1, 2], [0], [0]>} : vector<2x1x6xf32>, vector<2x6x32xf32>, vector<2x1x32xf32> -> vector<2x1x32xf32>
    "tpu.trace_stop"() : () -> ()
    %c0_26 = arith.constant 0 : index
    %c0_27 = arith.constant 0 : index
    %47 = vector.load %arg9[%c0_26, %c0_27] : memref<1x32xf32, #tpu.memory_space<vmem>>, vector<1x32xf32>
    %48 = vector.shape_cast %47 : vector<1x32xf32> to vector<1x1x32xf32>
    %49 = vector.broadcast %48 : vector<1x1x32xf32> to vector<2x1x32xf32>
    %50 = arith.addf %46, %49 : vector<2x1x32xf32>
    %cst_28 = arith.constant -1.000000e+01 : f32
    %cst_29 = arith.constant 1.000000e+01 : f32
    %51 = vector.broadcast %cst_28 : f32 to vector<2x1x32xf32>
    %52 = arith.maximumf %51, %50 : vector<2x1x32xf32>
    %53 = vector.broadcast %cst_29 : f32 to vector<2x1x32xf32>
    %54 = arith.minimumf %53, %52 : vector<2x1x32xf32>
    %55 = vector.broadcast %44 : vector<2x1x32xf32> to vector<2x4x32xf32>
    %56 = arith.addf %26, %55 : vector<2x4x32xf32>
    %57 = vector.broadcast %54 : vector<2x1x32xf32> to vector<2x4x32xf32>
    %58 = arith.addf %56, %57 : vector<2x4x32xf32>
    %59 = tpu.iota {dimensions = array<i32: 0>} : vector<4x4xi32>
    %60 = tpu.iota {dimensions = array<i32: 1>} : vector<4x4xi32>
    %61 = arith.cmpi sle, %60, %59 : vector<4x4xi32>
    %cst_30 = arith.constant -1.000000e+09 : f32
    %cst_31 = arith.constant 0.000000e+00 : f32
    %62 = vector.broadcast %cst_30 : f32 to vector<4x4xf32>
    %63 = vector.broadcast %cst_31 : f32 to vector<4x4xf32>
    %64 = arith.select %61, %62, %63 : vector<4x4xi1>, vector<4x4xf32>
    %c0_32 = arith.constant 0 : index
    %c0_33 = arith.constant 0 : index
    %c0_34 = arith.constant 0 : index
    %65 = vector.load %arg10[%c0_32, %c0_33, %c0_34] : memref<2x1x32xf32, #tpu.memory_space<vmem>>, vector<1x1x32xf32>
    %66 = vector.shape_cast %65 : vector<1x1x32xf32> to vector<1x32xf32>
    %c0_35 = arith.constant 0 : index
    %c0_36 = arith.constant 0 : index
    %c0_37 = arith.constant 0 : index
    %67 = vector.load %arg11[%c0_35, %c0_36, %c0_37] : memref<2x1x32xf32, #tpu.memory_space<vmem>>, vector<1x1x32xf32>
    %68 = vector.shape_cast %67 : vector<1x1x32xf32> to vector<1x32xf32>
    %cst_38 = arith.constant dense<0.000000e+00> : vector<2x4xf32>
    %69 = vector.multi_reduction <add>, %58, %cst_38 [2] : vector<2x4x32xf32> to vector<2x4xf32>
    %70 = vector.shape_cast %69 : vector<2x4xf32> to vector<2x4x1xf32>
    %cst_39 = arith.constant 3.200000e+01 : f32
    %71 = vector.broadcast %cst_39 : f32 to vector<2x4x1xf32>
    %72 = arith.divf %70, %71 : vector<2x4x1xf32>
    %73 = vector.broadcast %72 : vector<2x4x1xf32> to vector<2x4x32xf32>
    %74 = arith.subf %58, %73 : vector<2x4x32xf32>
    %75 = arith.mulf %74, %74 : vector<2x4x32xf32>
    %cst_40 = arith.constant dense<0.000000e+00> : vector<2x4xf32>
    %76 = vector.multi_reduction <add>, %75, %cst_40 [2] : vector<2x4x32xf32> to vector<2x4xf32>
    %77 = vector.shape_cast %76 : vector<2x4xf32> to vector<2x4x1xf32>
    %cst_41 = arith.constant 3.200000e+01 : f32
    %78 = vector.broadcast %cst_41 : f32 to vector<2x4x1xf32>
    %79 = arith.divf %77, %78 : vector<2x4x1xf32>
    %80 = vector.broadcast %72 : vector<2x4x1xf32> to vector<2x4x32xf32>
    %81 = arith.subf %58, %80 : vector<2x4x32xf32>
    %cst_42 = arith.constant 9.99999974E-6 : f32
    %82 = vector.broadcast %cst_42 : f32 to vector<2x4x1xf32>
    %83 = arith.addf %79, %82 : vector<2x4x1xf32>
    %84 = math.rsqrt %83 : vector<2x4x1xf32>
    %85 = vector.broadcast %84 : vector<2x4x1xf32> to vector<2x4x32xf32>
    %86 = arith.mulf %81, %85 : vector<2x4x32xf32>
    %87 = vector.shape_cast %66 : vector<1x32xf32> to vector<1x1x32xf32>
    %88 = vector.broadcast %87 : vector<1x1x32xf32> to vector<2x4x32xf32>
    %89 = arith.mulf %86, %88 : vector<2x4x32xf32>
    %90 = vector.shape_cast %68 : vector<1x32xf32> to vector<1x1x32xf32>
    %91 = vector.broadcast %90 : vector<1x1x32xf32> to vector<2x4x32xf32>
    %92 = arith.addf %89, %91 : vector<2x4x32xf32>
    %93 = tpu.concatenate %92, %92, %92, %92 in 0 : vector<2x4x32xf32>, vector<2x4x32xf32>, vector<2x4x32xf32>, vector<2x4x32xf32> -> vector<8x4x32xf32>
    %c0_43 = arith.constant 0 : index
    %c0_44 = arith.constant 0 : index
    %c0_45 = arith.constant 0 : index
    %c0_46 = arith.constant 0 : index
    %94 = vector.load %arg14[%c0_43, %c0_44, %c0_45, %c0_46] : memref<2x4x32x24xf32, #tpu.memory_space<vmem>>, vector<1x4x32x24xf32>
    %95 = vector.shape_cast %94 : vector<1x4x32x24xf32> to vector<4x32x24xf32>
    %96 = vector.extract_strided_slice %95 {offsets = [0, 0, 0], sizes = [1, 32, 24], strides = [1, 1, 1]} : vector<4x32x24xf32> to vector<1x32x24xf32>
    %97 = vector.shape_cast %96 : vector<1x32x24xf32> to vector<32x24xf32>
    %98 = vector.shape_cast %97 : vector<32x24xf32> to vector<1x32x24xf32>
    %99 = vector.shape_cast %98 : vector<1x32x24xf32> to vector<1x32x24xf32>
    %100 = vector.broadcast %99 : vector<1x32x24xf32> to vector<2x32x24xf32>
    %101 = vector.extract_strided_slice %95 {offsets = [1, 0, 0], sizes = [1, 32, 24], strides = [1, 1, 1]} : vector<4x32x24xf32> to vector<1x32x24xf32>
    %102 = vector.shape_cast %101 : vector<1x32x24xf32> to vector<32x24xf32>
    %103 = vector.shape_cast %102 : vector<32x24xf32> to vector<1x32x24xf32>
    %104 = vector.shape_cast %103 : vector<1x32x24xf32> to vector<1x32x24xf32>
    %105 = vector.broadcast %104 : vector<1x32x24xf32> to vector<2x32x24xf32>
    %106 = vector.extract_strided_slice %95 {offsets = [2, 0, 0], sizes = [1, 32, 24], strides = [1, 1, 1]} : vector<4x32x24xf32> to vector<1x32x24xf32>
    %107 = vector.shape_cast %106 : vector<1x32x24xf32> to vector<32x24xf32>
    %108 = vector.shape_cast %107 : vector<32x24xf32> to vector<1x32x24xf32>
    %109 = vector.shape_cast %108 : vector<1x32x24xf32> to vector<1x32x24xf32>
    %110 = vector.broadcast %109 : vector<1x32x24xf32> to vector<2x32x24xf32>
    %111 = vector.extract_strided_slice %95 {offsets = [3, 0, 0], sizes = [1, 32, 24], strides = [1, 1, 1]} : vector<4x32x24xf32> to vector<1x32x24xf32>
    %112 = vector.shape_cast %111 : vector<1x32x24xf32> to vector<32x24xf32>
    %113 = vector.shape_cast %112 : vector<32x24xf32> to vector<1x32x24xf32>
    %114 = vector.shape_cast %113 : vector<1x32x24xf32> to vector<1x32x24xf32>
    %115 = vector.broadcast %114 : vector<1x32x24xf32> to vector<2x32x24xf32>
    %116 = tpu.concatenate %100, %105, %110, %115 in 0 : vector<2x32x24xf32>, vector<2x32x24xf32>, vector<2x32x24xf32>, vector<2x32x24xf32> -> vector<8x32x24xf32>
    "tpu.trace_start"() <{level = 10 : i32, message = "gsd,gde->gse"}> : () -> ()
    %cst_47 = arith.constant dense<0.000000e+00> : vector<8x4x24xf32>
    %117 = tpu.matmul %93, %116, %cst_47 {dimension_numbers = #tpu.dot_dimension_numbers<[2], [1], [1], [2], [0, 0, 0, 1, 1, 2], [0], [0]>} : vector<8x4x32xf32>, vector<8x32x24xf32>, vector<8x4x24xf32> -> vector<8x4x24xf32>
    "tpu.trace_stop"() : () -> ()
    %c0_48 = arith.constant 0 : index
    %c0_49 = arith.constant 0 : index
    %c0_50 = arith.constant 0 : index
    %c0_51 = arith.constant 0 : index
    %118 = vector.load %arg15[%c0_48, %c0_49, %c0_50, %c0_51] : memref<2x4x1x24xf32, #tpu.memory_space<vmem>>, vector<1x4x1x24xf32>
    %119 = vector.shape_cast %118 : vector<1x4x1x24xf32> to vector<4x1x24xf32>
    %120 = vector.extract_strided_slice %119 {offsets = [0, 0, 0], sizes = [1, 1, 24], strides = [1, 1, 1]} : vector<4x1x24xf32> to vector<1x1x24xf32>
    %121 = vector.shape_cast %120 : vector<1x1x24xf32> to vector<1x24xf32>
    %122 = vector.shape_cast %121 : vector<1x24xf32> to vector<1x1x24xf32>
    %123 = vector.shape_cast %122 : vector<1x1x24xf32> to vector<1x1x24xf32>
    %124 = vector.broadcast %123 : vector<1x1x24xf32> to vector<2x1x24xf32>
    %125 = vector.extract_strided_slice %119 {offsets = [1, 0, 0], sizes = [1, 1, 24], strides = [1, 1, 1]} : vector<4x1x24xf32> to vector<1x1x24xf32>
    %126 = vector.shape_cast %125 : vector<1x1x24xf32> to vector<1x24xf32>
    %127 = vector.shape_cast %126 : vector<1x24xf32> to vector<1x1x24xf32>
    %128 = vector.shape_cast %127 : vector<1x1x24xf32> to vector<1x1x24xf32>
    %129 = vector.broadcast %128 : vector<1x1x24xf32> to vector<2x1x24xf32>
    %130 = vector.extract_strided_slice %119 {offsets = [2, 0, 0], sizes = [1, 1, 24], strides = [1, 1, 1]} : vector<4x1x24xf32> to vector<1x1x24xf32>
    %131 = vector.shape_cast %130 : vector<1x1x24xf32> to vector<1x24xf32>
    %132 = vector.shape_cast %131 : vector<1x24xf32> to vector<1x1x24xf32>
    %133 = vector.shape_cast %132 : vector<1x1x24xf32> to vector<1x1x24xf32>
    %134 = vector.broadcast %133 : vector<1x1x24xf32> to vector<2x1x24xf32>
    %135 = vector.extract_strided_slice %119 {offsets = [3, 0, 0], sizes = [1, 1, 24], strides = [1, 1, 1]} : vector<4x1x24xf32> to vector<1x1x24xf32>
    %136 = vector.shape_cast %135 : vector<1x1x24xf32> to vector<1x24xf32>
    %137 = vector.shape_cast %136 : vector<1x24xf32> to vector<1x1x24xf32>
    %138 = vector.shape_cast %137 : vector<1x1x24xf32> to vector<1x1x24xf32>
    %139 = vector.broadcast %138 : vector<1x1x24xf32> to vector<2x1x24xf32>
    %140 = tpu.concatenate %124, %129, %134, %139 in 0 : vector<2x1x24xf32>, vector<2x1x24xf32>, vector<2x1x24xf32>, vector<2x1x24xf32> -> vector<8x1x24xf32>
    %141 = vector.broadcast %140 : vector<8x1x24xf32> to vector<8x4x24xf32>
    %142 = arith.addf %117, %141 : vector<8x4x24xf32>
    %143 = vector.extract_strided_slice %142 {offsets = [0, 0, 0], sizes = [8, 4, 8], strides = [1, 1, 1]} : vector<8x4x24xf32> to vector<8x4x8xf32>
    %144 = vector.extract_strided_slice %142 {offsets = [0, 0, 8], sizes = [8, 4, 8], strides = [1, 1, 1]} : vector<8x4x24xf32> to vector<8x4x8xf32>
    %145 = vector.extract_strided_slice %142 {offsets = [0, 0, 16], sizes = [8, 4, 8], strides = [1, 1, 1]} : vector<8x4x24xf32> to vector<8x4x8xf32>
    "tpu.trace_start"() <{level = 10 : i32, message = "gqe,gke->gqk"}> : () -> ()
    %cst_52 = arith.constant dense<0.000000e+00> : vector<8x4x4xf32>
    %146 = tpu.matmul %143, %144, %cst_52 {dimension_numbers = #tpu.dot_dimension_numbers<[2], [2], [1], [1], [0, 0, 0, 1, 1, 1], [0], [0]>} : vector<8x4x8xf32>, vector<8x4x8xf32>, vector<8x4x4xf32> -> vector<8x4x4xf32>
    "tpu.trace_stop"() : () -> ()
    %cst_53 = arith.constant 0.353553385 : f32
    %147 = vector.broadcast %cst_53 : f32 to vector<8x4x4xf32>
    %148 = arith.mulf %146, %147 : vector<8x4x4xf32>
    %149 = vector.shape_cast %64 : vector<4x4xf32> to vector<1x4x4xf32>
    %150 = vector.broadcast %149 : vector<1x4x4xf32> to vector<8x4x4xf32>
    %151 = arith.addf %148, %150 : vector<8x4x4xf32>
    %cst_54 = arith.constant dense<0xFF800000> : vector<8x4xf32>
    %152 = vector.multi_reduction <maximumf>, %151, %cst_54 [2] : vector<8x4x4xf32> to vector<8x4xf32>
    %153 = vector.shape_cast %152 : vector<8x4xf32> to vector<8x4x1xf32>
    %154 = vector.broadcast %153 : vector<8x4x1xf32> to vector<8x4x4xf32>
    %155 = arith.subf %151, %154 : vector<8x4x4xf32>
    %156 = math.exp %155 : vector<8x4x4xf32>
    %cst_55 = arith.constant dense<0.000000e+00> : vector<8x4xf32>
    %157 = vector.multi_reduction <add>, %156, %cst_55 [2] : vector<8x4x4xf32> to vector<8x4xf32>
    %158 = vector.shape_cast %157 : vector<8x4xf32> to vector<8x4x1xf32>
    %159 = vector.broadcast %158 : vector<8x4x1xf32> to vector<8x4x4xf32>
    %160 = arith.divf %156, %159 : vector<8x4x4xf32>
    "tpu.trace_start"() <{level = 10 : i32, message = "gqk,gke->gqe"}> : () -> ()
    %cst_56 = arith.constant dense<0.000000e+00> : vector<8x4x8xf32>
    %161 = tpu.matmul %160, %145, %cst_56 {dimension_numbers = #tpu.dot_dimension_numbers<[2], [1], [1], [2], [0, 0, 0, 1, 1, 2], [0], [0]>} : vector<8x4x4xf32>, vector<8x4x8xf32>, vector<8x4x8xf32> -> vector<8x4x8xf32>
    "tpu.trace_stop"() : () -> ()
    %c0_57 = arith.constant 0 : index
    %c0_58 = arith.constant 0 : index
    %c0_59 = arith.constant 0 : index
    %c0_60 = arith.constant 0 : index
    %162 = vector.load %arg16[%c0_57, %c0_58, %c0_59, %c0_60] : memref<2x4x8x32xf32, #tpu.memory_space<vmem>>, vector<1x4x8x32xf32>
    %163 = vector.shape_cast %162 : vector<1x4x8x32xf32> to vector<4x8x32xf32>
    %164 = vector.extract_strided_slice %163 {offsets = [0, 0, 0], sizes = [1, 8, 32], strides = [1, 1, 1]} : vector<4x8x32xf32> to vector<1x8x32xf32>
    %165 = vector.shape_cast %164 : vector<1x8x32xf32> to vector<8x32xf32>
    %166 = vector.shape_cast %165 : vector<8x32xf32> to vector<1x8x32xf32>
    %167 = vector.shape_cast %166 : vector<1x8x32xf32> to vector<1x8x32xf32>
    %168 = vector.broadcast %167 : vector<1x8x32xf32> to vector<2x8x32xf32>
    %169 = vector.extract_strided_slice %163 {offsets = [1, 0, 0], sizes = [1, 8, 32], strides = [1, 1, 1]} : vector<4x8x32xf32> to vector<1x8x32xf32>
    %170 = vector.shape_cast %169 : vector<1x8x32xf32> to vector<8x32xf32>
    %171 = vector.shape_cast %170 : vector<8x32xf32> to vector<1x8x32xf32>
    %172 = vector.shape_cast %171 : vector<1x8x32xf32> to vector<1x8x32xf32>
    %173 = vector.broadcast %172 : vector<1x8x32xf32> to vector<2x8x32xf32>
    %174 = vector.extract_strided_slice %163 {offsets = [2, 0, 0], sizes = [1, 8, 32], strides = [1, 1, 1]} : vector<4x8x32xf32> to vector<1x8x32xf32>
    %175 = vector.shape_cast %174 : vector<1x8x32xf32> to vector<8x32xf32>
    %176 = vector.shape_cast %175 : vector<8x32xf32> to vector<1x8x32xf32>
    %177 = vector.shape_cast %176 : vector<1x8x32xf32> to vector<1x8x32xf32>
    %178 = vector.broadcast %177 : vector<1x8x32xf32> to vector<2x8x32xf32>
    %179 = vector.extract_strided_slice %163 {offsets = [3, 0, 0], sizes = [1, 8, 32], strides = [1, 1, 1]} : vector<4x8x32xf32> to vector<1x8x32xf32>
    %180 = vector.shape_cast %179 : vector<1x8x32xf32> to vector<8x32xf32>
    %181 = vector.shape_cast %180 : vector<8x32xf32> to vector<1x8x32xf32>
    %182 = vector.shape_cast %181 : vector<1x8x32xf32> to vector<1x8x32xf32>
    %183 = vector.broadcast %182 : vector<1x8x32xf32> to vector<2x8x32xf32>
    %184 = tpu.concatenate %168, %173, %178, %183 in 0 : vector<2x8x32xf32>, vector<2x8x32xf32>, vector<2x8x32xf32>, vector<2x8x32xf32> -> vector<8x8x32xf32>
    "tpu.trace_start"() <{level = 10 : i32, message = "gse,ged->gsd"}> : () -> ()
    %cst_61 = arith.constant dense<0.000000e+00> : vector<8x4x32xf32>
    %185 = tpu.matmul %161, %184, %cst_61 {dimension_numbers = #tpu.dot_dimension_numbers<[2], [1], [1], [2], [0, 0, 0, 1, 1, 2], [0], [0]>} : vector<8x4x8xf32>, vector<8x8x32xf32>, vector<8x4x32xf32> -> vector<8x4x32xf32>
    "tpu.trace_stop"() : () -> ()
    %186 = vector.extract_strided_slice %185 {offsets = [0, 0, 0], sizes = [2, 4, 32], strides = [1, 1, 1]} : vector<8x4x32xf32> to vector<2x4x32xf32>
    %187 = vector.extract_strided_slice %185 {offsets = [2, 0, 0], sizes = [2, 4, 32], strides = [1, 1, 1]} : vector<8x4x32xf32> to vector<2x4x32xf32>
    %188 = arith.addf %186, %187 : vector<2x4x32xf32>
    %189 = vector.extract_strided_slice %185 {offsets = [4, 0, 0], sizes = [2, 4, 32], strides = [1, 1, 1]} : vector<8x4x32xf32> to vector<2x4x32xf32>
    %190 = arith.addf %188, %189 : vector<2x4x32xf32>
    %191 = vector.extract_strided_slice %185 {offsets = [6, 0, 0], sizes = [2, 4, 32], strides = [1, 1, 1]} : vector<8x4x32xf32> to vector<2x4x32xf32>
    %192 = arith.addf %190, %191 : vector<2x4x32xf32>
    %193 = arith.addf %58, %192 : vector<2x4x32xf32>
    %c0_62 = arith.constant 0 : index
    %c0_63 = arith.constant 0 : index
    %c0_64 = arith.constant 0 : index
    %194 = vector.load %arg17[%c0_62, %c0_63, %c0_64] : memref<2x1x32xf32, #tpu.memory_space<vmem>>, vector<1x1x32xf32>
    %195 = vector.shape_cast %194 : vector<1x1x32xf32> to vector<1x32xf32>
    %196 = vector.shape_cast %195 : vector<1x32xf32> to vector<1x1x32xf32>
    %197 = vector.broadcast %196 : vector<1x1x32xf32> to vector<2x4x32xf32>
    %198 = arith.addf %193, %197 : vector<2x4x32xf32>
    %c0_65 = arith.constant 0 : index
    %c0_66 = arith.constant 0 : index
    %c0_67 = arith.constant 0 : index
    %199 = vector.load %arg12[%c0_65, %c0_66, %c0_67] : memref<2x1x32xf32, #tpu.memory_space<vmem>>, vector<1x1x32xf32>
    %200 = vector.shape_cast %199 : vector<1x1x32xf32> to vector<1x32xf32>
    %c0_68 = arith.constant 0 : index
    %c0_69 = arith.constant 0 : index
    %c0_70 = arith.constant 0 : index
    %201 = vector.load %arg13[%c0_68, %c0_69, %c0_70] : memref<2x1x32xf32, #tpu.memory_space<vmem>>, vector<1x1x32xf32>
    %202 = vector.shape_cast %201 : vector<1x1x32xf32> to vector<1x32xf32>
    %cst_71 = arith.constant dense<0.000000e+00> : vector<2x4xf32>
    %203 = vector.multi_reduction <add>, %198, %cst_71 [2] : vector<2x4x32xf32> to vector<2x4xf32>
    %204 = vector.shape_cast %203 : vector<2x4xf32> to vector<2x4x1xf32>
    %cst_72 = arith.constant 3.200000e+01 : f32
    %205 = vector.broadcast %cst_72 : f32 to vector<2x4x1xf32>
    %206 = arith.divf %204, %205 : vector<2x4x1xf32>
    %207 = vector.broadcast %206 : vector<2x4x1xf32> to vector<2x4x32xf32>
    %208 = arith.subf %198, %207 : vector<2x4x32xf32>
    %209 = arith.mulf %208, %208 : vector<2x4x32xf32>
    %cst_73 = arith.constant dense<0.000000e+00> : vector<2x4xf32>
    %210 = vector.multi_reduction <add>, %209, %cst_73 [2] : vector<2x4x32xf32> to vector<2x4xf32>
    %211 = vector.shape_cast %210 : vector<2x4xf32> to vector<2x4x1xf32>
    %cst_74 = arith.constant 3.200000e+01 : f32
    %212 = vector.broadcast %cst_74 : f32 to vector<2x4x1xf32>
    %213 = arith.divf %211, %212 : vector<2x4x1xf32>
    %214 = vector.broadcast %206 : vector<2x4x1xf32> to vector<2x4x32xf32>
    %215 = arith.subf %198, %214 : vector<2x4x32xf32>
    %cst_75 = arith.constant 9.99999974E-6 : f32
    %216 = vector.broadcast %cst_75 : f32 to vector<2x4x1xf32>
    %217 = arith.addf %213, %216 : vector<2x4x1xf32>
    %218 = math.rsqrt %217 : vector<2x4x1xf32>
    %219 = vector.broadcast %218 : vector<2x4x1xf32> to vector<2x4x32xf32>
    %220 = arith.mulf %215, %219 : vector<2x4x32xf32>
    %221 = vector.shape_cast %200 : vector<1x32xf32> to vector<1x1x32xf32>
    %222 = vector.broadcast %221 : vector<1x1x32xf32> to vector<2x4x32xf32>
    %223 = arith.mulf %220, %222 : vector<2x4x32xf32>
    %224 = vector.shape_cast %202 : vector<1x32xf32> to vector<1x1x32xf32>
    %225 = vector.broadcast %224 : vector<1x1x32xf32> to vector<2x4x32xf32>
    %226 = arith.addf %223, %225 : vector<2x4x32xf32>
    %c0_76 = arith.constant 0 : index
    %c0_77 = arith.constant 0 : index
    %c0_78 = arith.constant 0 : index
    %227 = vector.load %arg18[%c0_76, %c0_77, %c0_78] : memref<2x32x64xf32, #tpu.memory_space<vmem>>, vector<1x32x64xf32>
    %228 = vector.shape_cast %227 : vector<1x32x64xf32> to vector<32x64xf32>
    %229 = vector.shape_cast %228 : vector<32x64xf32> to vector<1x32x64xf32>
    %230 = vector.shape_cast %229 : vector<1x32x64xf32> to vector<1x32x64xf32>
    %231 = vector.broadcast %230 : vector<1x32x64xf32> to vector<2x32x64xf32>
    "tpu.trace_start"() <{level = 10 : i32, message = "bsd,bdf->bsf"}> : () -> ()
    %cst_79 = arith.constant dense<0.000000e+00> : vector<2x4x64xf32>
    %232 = tpu.matmul %226, %231, %cst_79 {dimension_numbers = #tpu.dot_dimension_numbers<[2], [1], [1], [2], [0, 0, 0, 1, 1, 2], [0], [0]>} : vector<2x4x32xf32>, vector<2x32x64xf32>, vector<2x4x64xf32> -> vector<2x4x64xf32>
    "tpu.trace_stop"() : () -> ()
    %c0_80 = arith.constant 0 : index
    %c0_81 = arith.constant 0 : index
    %c0_82 = arith.constant 0 : index
    %233 = vector.load %arg19[%c0_80, %c0_81, %c0_82] : memref<2x1x64xf32, #tpu.memory_space<vmem>>, vector<1x1x64xf32>
    %234 = vector.shape_cast %233 : vector<1x1x64xf32> to vector<1x64xf32>
    %235 = vector.shape_cast %234 : vector<1x64xf32> to vector<1x1x64xf32>
    %236 = vector.broadcast %235 : vector<1x1x64xf32> to vector<2x4x64xf32>
    %237 = arith.addf %232, %236 : vector<2x4x64xf32>
    %cst_83 = arith.constant 0.000000e+00 : f32
    %238 = vector.broadcast %cst_83 : f32 to vector<2x4x64xf32>
    %239 = arith.maximumf %237, %238 : vector<2x4x64xf32>
    %c0_84 = arith.constant 0 : index
    %c0_85 = arith.constant 0 : index
    %c0_86 = arith.constant 0 : index
    %240 = vector.load %arg20[%c0_84, %c0_85, %c0_86] : memref<2x64x32xf32, #tpu.memory_space<vmem>>, vector<1x64x32xf32>
    %241 = vector.shape_cast %240 : vector<1x64x32xf32> to vector<64x32xf32>
    %242 = vector.shape_cast %241 : vector<64x32xf32> to vector<1x64x32xf32>
    %243 = vector.shape_cast %242 : vector<1x64x32xf32> to vector<1x64x32xf32>
    %244 = vector.broadcast %243 : vector<1x64x32xf32> to vector<2x64x32xf32>
    "tpu.trace_start"() <{level = 10 : i32, message = "bsf,bfd->bsd"}> : () -> ()
    %cst_87 = arith.constant dense<0.000000e+00> : vector<2x4x32xf32>
    %245 = tpu.matmul %239, %244, %cst_87 {dimension_numbers = #tpu.dot_dimension_numbers<[2], [1], [1], [2], [0, 0, 0, 1, 1, 2], [0], [0]>} : vector<2x4x64xf32>, vector<2x64x32xf32>, vector<2x4x32xf32> -> vector<2x4x32xf32>
    "tpu.trace_stop"() : () -> ()
    %246 = arith.addf %198, %245 : vector<2x4x32xf32>
    %c0_88 = arith.constant 0 : index
    %c0_89 = arith.constant 0 : index
    %c0_90 = arith.constant 0 : index
    %247 = vector.load %arg21[%c0_88, %c0_89, %c0_90] : memref<2x1x32xf32, #tpu.memory_space<vmem>>, vector<1x1x32xf32>
    %248 = vector.shape_cast %247 : vector<1x1x32xf32> to vector<1x32xf32>
    %249 = vector.shape_cast %248 : vector<1x32xf32> to vector<1x1x32xf32>
    %250 = vector.broadcast %249 : vector<1x1x32xf32> to vector<2x4x32xf32>
    %251 = arith.addf %246, %250 : vector<2x4x32xf32>
    %c1 = arith.constant 1 : index
    %c0_91 = arith.constant 0 : index
    %c0_92 = arith.constant 0 : index
    %252 = vector.load %arg10[%c1, %c0_91, %c0_92] : memref<2x1x32xf32, #tpu.memory_space<vmem>>, vector<1x1x32xf32>
    %253 = vector.shape_cast %252 : vector<1x1x32xf32> to vector<1x32xf32>
    %c1_93 = arith.constant 1 : index
    %c0_94 = arith.constant 0 : index
    %c0_95 = arith.constant 0 : index
    %254 = vector.load %arg11[%c1_93, %c0_94, %c0_95] : memref<2x1x32xf32, #tpu.memory_space<vmem>>, vector<1x1x32xf32>
    %255 = vector.shape_cast %254 : vector<1x1x32xf32> to vector<1x32xf32>
    %cst_96 = arith.constant dense<0.000000e+00> : vector<2x4xf32>
    %256 = vector.multi_reduction <add>, %251, %cst_96 [2] : vector<2x4x32xf32> to vector<2x4xf32>
    %257 = vector.shape_cast %256 : vector<2x4xf32> to vector<2x4x1xf32>
    %cst_97 = arith.constant 3.200000e+01 : f32
    %258 = vector.broadcast %cst_97 : f32 to vector<2x4x1xf32>
    %259 = arith.divf %257, %258 : vector<2x4x1xf32>
    %260 = vector.broadcast %259 : vector<2x4x1xf32> to vector<2x4x32xf32>
    %261 = arith.subf %251, %260 : vector<2x4x32xf32>
    %262 = arith.mulf %261, %261 : vector<2x4x32xf32>
    %cst_98 = arith.constant dense<0.000000e+00> : vector<2x4xf32>
    %263 = vector.multi_reduction <add>, %262, %cst_98 [2] : vector<2x4x32xf32> to vector<2x4xf32>
    %264 = vector.shape_cast %263 : vector<2x4xf32> to vector<2x4x1xf32>
    %cst_99 = arith.constant 3.200000e+01 : f32
    %265 = vector.broadcast %cst_99 : f32 to vector<2x4x1xf32>
    %266 = arith.divf %264, %265 : vector<2x4x1xf32>
    %267 = vector.broadcast %259 : vector<2x4x1xf32> to vector<2x4x32xf32>
    %268 = arith.subf %251, %267 : vector<2x4x32xf32>
    %cst_100 = arith.constant 9.99999974E-6 : f32
    %269 = vector.broadcast %cst_100 : f32 to vector<2x4x1xf32>
    %270 = arith.addf %266, %269 : vector<2x4x1xf32>
    %271 = math.rsqrt %270 : vector<2x4x1xf32>
    %272 = vector.broadcast %271 : vector<2x4x1xf32> to vector<2x4x32xf32>
    %273 = arith.mulf %268, %272 : vector<2x4x32xf32>
    %274 = vector.shape_cast %253 : vector<1x32xf32> to vector<1x1x32xf32>
    %275 = vector.broadcast %274 : vector<1x1x32xf32> to vector<2x4x32xf32>
    %276 = arith.mulf %273, %275 : vector<2x4x32xf32>
    %277 = vector.shape_cast %255 : vector<1x32xf32> to vector<1x1x32xf32>
    %278 = vector.broadcast %277 : vector<1x1x32xf32> to vector<2x4x32xf32>
    %279 = arith.addf %276, %278 : vector<2x4x32xf32>
    %280 = tpu.concatenate %279, %279, %279, %279 in 0 : vector<2x4x32xf32>, vector<2x4x32xf32>, vector<2x4x32xf32>, vector<2x4x32xf32> -> vector<8x4x32xf32>
    %c1_101 = arith.constant 1 : index
    %c0_102 = arith.constant 0 : index
    %c0_103 = arith.constant 0 : index
    %c0_104 = arith.constant 0 : index
    %281 = vector.load %arg14[%c1_101, %c0_102, %c0_103, %c0_104] : memref<2x4x32x24xf32, #tpu.memory_space<vmem>>, vector<1x4x32x24xf32>
    %282 = vector.shape_cast %281 : vector<1x4x32x24xf32> to vector<4x32x24xf32>
    %283 = vector.extract_strided_slice %282 {offsets = [0, 0, 0], sizes = [1, 32, 24], strides = [1, 1, 1]} : vector<4x32x24xf32> to vector<1x32x24xf32>
    %284 = vector.shape_cast %283 : vector<1x32x24xf32> to vector<32x24xf32>
    %285 = vector.shape_cast %284 : vector<32x24xf32> to vector<1x32x24xf32>
    %286 = vector.shape_cast %285 : vector<1x32x24xf32> to vector<1x32x24xf32>
    %287 = vector.broadcast %286 : vector<1x32x24xf32> to vector<2x32x24xf32>
    %288 = vector.extract_strided_slice %282 {offsets = [1, 0, 0], sizes = [1, 32, 24], strides = [1, 1, 1]} : vector<4x32x24xf32> to vector<1x32x24xf32>
    %289 = vector.shape_cast %288 : vector<1x32x24xf32> to vector<32x24xf32>
    %290 = vector.shape_cast %289 : vector<32x24xf32> to vector<1x32x24xf32>
    %291 = vector.shape_cast %290 : vector<1x32x24xf32> to vector<1x32x24xf32>
    %292 = vector.broadcast %291 : vector<1x32x24xf32> to vector<2x32x24xf32>
    %293 = vector.extract_strided_slice %282 {offsets = [2, 0, 0], sizes = [1, 32, 24], strides = [1, 1, 1]} : vector<4x32x24xf32> to vector<1x32x24xf32>
    %294 = vector.shape_cast %293 : vector<1x32x24xf32> to vector<32x24xf32>
    %295 = vector.shape_cast %294 : vector<32x24xf32> to vector<1x32x24xf32>
    %296 = vector.shape_cast %295 : vector<1x32x24xf32> to vector<1x32x24xf32>
    %297 = vector.broadcast %296 : vector<1x32x24xf32> to vector<2x32x24xf32>
    %298 = vector.extract_strided_slice %282 {offsets = [3, 0, 0], sizes = [1, 32, 24], strides = [1, 1, 1]} : vector<4x32x24xf32> to vector<1x32x24xf32>
    %299 = vector.shape_cast %298 : vector<1x32x24xf32> to vector<32x24xf32>
    %300 = vector.shape_cast %299 : vector<32x24xf32> to vector<1x32x24xf32>
    %301 = vector.shape_cast %300 : vector<1x32x24xf32> to vector<1x32x24xf32>
    %302 = vector.broadcast %301 : vector<1x32x24xf32> to vector<2x32x24xf32>
    %303 = tpu.concatenate %287, %292, %297, %302 in 0 : vector<2x32x24xf32>, vector<2x32x24xf32>, vector<2x32x24xf32>, vector<2x32x24xf32> -> vector<8x32x24xf32>
    "tpu.trace_start"() <{level = 10 : i32, message = "gsd,gde->gse"}> : () -> ()
    %cst_105 = arith.constant dense<0.000000e+00> : vector<8x4x24xf32>
    %304 = tpu.matmul %280, %303, %cst_105 {dimension_numbers = #tpu.dot_dimension_numbers<[2], [1], [1], [2], [0, 0, 0, 1, 1, 2], [0], [0]>} : vector<8x4x32xf32>, vector<8x32x24xf32>, vector<8x4x24xf32> -> vector<8x4x24xf32>
    "tpu.trace_stop"() : () -> ()
    %c1_106 = arith.constant 1 : index
    %c0_107 = arith.constant 0 : index
    %c0_108 = arith.constant 0 : index
    %c0_109 = arith.constant 0 : index
    %305 = vector.load %arg15[%c1_106, %c0_107, %c0_108, %c0_109] : memref<2x4x1x24xf32, #tpu.memory_space<vmem>>, vector<1x4x1x24xf32>
    %306 = vector.shape_cast %305 : vector<1x4x1x24xf32> to vector<4x1x24xf32>
    %307 = vector.extract_strided_slice %306 {offsets = [0, 0, 0], sizes = [1, 1, 24], strides = [1, 1, 1]} : vector<4x1x24xf32> to vector<1x1x24xf32>
    %308 = vector.shape_cast %307 : vector<1x1x24xf32> to vector<1x24xf32>
    %309 = vector.shape_cast %308 : vector<1x24xf32> to vector<1x1x24xf32>
    %310 = vector.shape_cast %309 : vector<1x1x24xf32> to vector<1x1x24xf32>
    %311 = vector.broadcast %310 : vector<1x1x24xf32> to vector<2x1x24xf32>
    %312 = vector.extract_strided_slice %306 {offsets = [1, 0, 0], sizes = [1, 1, 24], strides = [1, 1, 1]} : vector<4x1x24xf32> to vector<1x1x24xf32>
    %313 = vector.shape_cast %312 : vector<1x1x24xf32> to vector<1x24xf32>
    %314 = vector.shape_cast %313 : vector<1x24xf32> to vector<1x1x24xf32>
    %315 = vector.shape_cast %314 : vector<1x1x24xf32> to vector<1x1x24xf32>
    %316 = vector.broadcast %315 : vector<1x1x24xf32> to vector<2x1x24xf32>
    %317 = vector.extract_strided_slice %306 {offsets = [2, 0, 0], sizes = [1, 1, 24], strides = [1, 1, 1]} : vector<4x1x24xf32> to vector<1x1x24xf32>
    %318 = vector.shape_cast %317 : vector<1x1x24xf32> to vector<1x24xf32>
    %319 = vector.shape_cast %318 : vector<1x24xf32> to vector<1x1x24xf32>
    %320 = vector.shape_cast %319 : vector<1x1x24xf32> to vector<1x1x24xf32>
    %321 = vector.broadcast %320 : vector<1x1x24xf32> to vector<2x1x24xf32>
    %322 = vector.extract_strided_slice %306 {offsets = [3, 0, 0], sizes = [1, 1, 24], strides = [1, 1, 1]} : vector<4x1x24xf32> to vector<1x1x24xf32>
    %323 = vector.shape_cast %322 : vector<1x1x24xf32> to vector<1x24xf32>
    %324 = vector.shape_cast %323 : vector<1x24xf32> to vector<1x1x24xf32>
    %325 = vector.shape_cast %324 : vector<1x1x24xf32> to vector<1x1x24xf32>
    %326 = vector.broadcast %325 : vector<1x1x24xf32> to vector<2x1x24xf32>
    %327 = tpu.concatenate %311, %316, %321, %326 in 0 : vector<2x1x24xf32>, vector<2x1x24xf32>, vector<2x1x24xf32>, vector<2x1x24xf32> -> vector<8x1x24xf32>
    %328 = vector.broadcast %327 : vector<8x1x24xf32> to vector<8x4x24xf32>
    %329 = arith.addf %304, %328 : vector<8x4x24xf32>
    %330 = vector.extract_strided_slice %329 {offsets = [0, 0, 0], sizes = [8, 4, 8], strides = [1, 1, 1]} : vector<8x4x24xf32> to vector<8x4x8xf32>
    %331 = vector.extract_strided_slice %329 {offsets = [0, 0, 8], sizes = [8, 4, 8], strides = [1, 1, 1]} : vector<8x4x24xf32> to vector<8x4x8xf32>
    %332 = vector.extract_strided_slice %329 {offsets = [0, 0, 16], sizes = [8, 4, 8], strides = [1, 1, 1]} : vector<8x4x24xf32> to vector<8x4x8xf32>
    "tpu.trace_start"() <{level = 10 : i32, message = "gqe,gke->gqk"}> : () -> ()
    %cst_110 = arith.constant dense<0.000000e+00> : vector<8x4x4xf32>
    %333 = tpu.matmul %330, %331, %cst_110 {dimension_numbers = #tpu.dot_dimension_numbers<[2], [2], [1], [1], [0, 0, 0, 1, 1, 1], [0], [0]>} : vector<8x4x8xf32>, vector<8x4x8xf32>, vector<8x4x4xf32> -> vector<8x4x4xf32>
    "tpu.trace_stop"() : () -> ()
    %cst_111 = arith.constant 0.353553385 : f32
    %334 = vector.broadcast %cst_111 : f32 to vector<8x4x4xf32>
    %335 = arith.mulf %333, %334 : vector<8x4x4xf32>
    %336 = vector.shape_cast %64 : vector<4x4xf32> to vector<1x4x4xf32>
    %337 = vector.broadcast %336 : vector<1x4x4xf32> to vector<8x4x4xf32>
    %338 = arith.addf %335, %337 : vector<8x4x4xf32>
    %cst_112 = arith.constant dense<0xFF800000> : vector<8x4xf32>
    %339 = vector.multi_reduction <maximumf>, %338, %cst_112 [2] : vector<8x4x4xf32> to vector<8x4xf32>
    %340 = vector.shape_cast %339 : vector<8x4xf32> to vector<8x4x1xf32>
    %341 = vector.broadcast %340 : vector<8x4x1xf32> to vector<8x4x4xf32>
    %342 = arith.subf %338, %341 : vector<8x4x4xf32>
    %343 = math.exp %342 : vector<8x4x4xf32>
    %cst_113 = arith.constant dense<0.000000e+00> : vector<8x4xf32>
    %344 = vector.multi_reduction <add>, %343, %cst_113 [2] : vector<8x4x4xf32> to vector<8x4xf32>
    %345 = vector.shape_cast %344 : vector<8x4xf32> to vector<8x4x1xf32>
    %346 = vector.broadcast %345 : vector<8x4x1xf32> to vector<8x4x4xf32>
    %347 = arith.divf %343, %346 : vector<8x4x4xf32>
    "tpu.trace_start"() <{level = 10 : i32, message = "gqk,gke->gqe"}> : () -> ()
    %cst_114 = arith.constant dense<0.000000e+00> : vector<8x4x8xf32>
    %348 = tpu.matmul %347, %332, %cst_114 {dimension_numbers = #tpu.dot_dimension_numbers<[2], [1], [1], [2], [0, 0, 0, 1, 1, 2], [0], [0]>} : vector<8x4x4xf32>, vector<8x4x8xf32>, vector<8x4x8xf32> -> vector<8x4x8xf32>
    "tpu.trace_stop"() : () -> ()
    %c1_115 = arith.constant 1 : index
    %c0_116 = arith.constant 0 : index
    %c0_117 = arith.constant 0 : index
    %c0_118 = arith.constant 0 : index
    %349 = vector.load %arg16[%c1_115, %c0_116, %c0_117, %c0_118] : memref<2x4x8x32xf32, #tpu.memory_space<vmem>>, vector<1x4x8x32xf32>
    %350 = vector.shape_cast %349 : vector<1x4x8x32xf32> to vector<4x8x32xf32>
    %351 = vector.extract_strided_slice %350 {offsets = [0, 0, 0], sizes = [1, 8, 32], strides = [1, 1, 1]} : vector<4x8x32xf32> to vector<1x8x32xf32>
    %352 = vector.shape_cast %351 : vector<1x8x32xf32> to vector<8x32xf32>
    %353 = vector.shape_cast %352 : vector<8x32xf32> to vector<1x8x32xf32>
    %354 = vector.shape_cast %353 : vector<1x8x32xf32> to vector<1x8x32xf32>
    %355 = vector.broadcast %354 : vector<1x8x32xf32> to vector<2x8x32xf32>
    %356 = vector.extract_strided_slice %350 {offsets = [1, 0, 0], sizes = [1, 8, 32], strides = [1, 1, 1]} : vector<4x8x32xf32> to vector<1x8x32xf32>
    %357 = vector.shape_cast %356 : vector<1x8x32xf32> to vector<8x32xf32>
    %358 = vector.shape_cast %357 : vector<8x32xf32> to vector<1x8x32xf32>
    %359 = vector.shape_cast %358 : vector<1x8x32xf32> to vector<1x8x32xf32>
    %360 = vector.broadcast %359 : vector<1x8x32xf32> to vector<2x8x32xf32>
    %361 = vector.extract_strided_slice %350 {offsets = [2, 0, 0], sizes = [1, 8, 32], strides = [1, 1, 1]} : vector<4x8x32xf32> to vector<1x8x32xf32>
    %362 = vector.shape_cast %361 : vector<1x8x32xf32> to vector<8x32xf32>
    %363 = vector.shape_cast %362 : vector<8x32xf32> to vector<1x8x32xf32>
    %364 = vector.shape_cast %363 : vector<1x8x32xf32> to vector<1x8x32xf32>
    %365 = vector.broadcast %364 : vector<1x8x32xf32> to vector<2x8x32xf32>
    %366 = vector.extract_strided_slice %350 {offsets = [3, 0, 0], sizes = [1, 8, 32], strides = [1, 1, 1]} : vector<4x8x32xf32> to vector<1x8x32xf32>
    %367 = vector.shape_cast %366 : vector<1x8x32xf32> to vector<8x32xf32>
    %368 = vector.shape_cast %367 : vector<8x32xf32> to vector<1x8x32xf32>
    %369 = vector.shape_cast %368 : vector<1x8x32xf32> to vector<1x8x32xf32>
    %370 = vector.broadcast %369 : vector<1x8x32xf32> to vector<2x8x32xf32>
    %371 = tpu.concatenate %355, %360, %365, %370 in 0 : vector<2x8x32xf32>, vector<2x8x32xf32>, vector<2x8x32xf32>, vector<2x8x32xf32> -> vector<8x8x32xf32>
    "tpu.trace_start"() <{level = 10 : i32, message = "gse,ged->gsd"}> : () -> ()
    %cst_119 = arith.constant dense<0.000000e+00> : vector<8x4x32xf32>
    %372 = tpu.matmul %348, %371, %cst_119 {dimension_numbers = #tpu.dot_dimension_numbers<[2], [1], [1], [2], [0, 0, 0, 1, 1, 2], [0], [0]>} : vector<8x4x8xf32>, vector<8x8x32xf32>, vector<8x4x32xf32> -> vector<8x4x32xf32>
    "tpu.trace_stop"() : () -> ()
    %373 = vector.extract_strided_slice %372 {offsets = [0, 0, 0], sizes = [2, 4, 32], strides = [1, 1, 1]} : vector<8x4x32xf32> to vector<2x4x32xf32>
    %374 = vector.extract_strided_slice %372 {offsets = [2, 0, 0], sizes = [2, 4, 32], strides = [1, 1, 1]} : vector<8x4x32xf32> to vector<2x4x32xf32>
    %375 = arith.addf %373, %374 : vector<2x4x32xf32>
    %376 = vector.extract_strided_slice %372 {offsets = [4, 0, 0], sizes = [2, 4, 32], strides = [1, 1, 1]} : vector<8x4x32xf32> to vector<2x4x32xf32>
    %377 = arith.addf %375, %376 : vector<2x4x32xf32>
    %378 = vector.extract_strided_slice %372 {offsets = [6, 0, 0], sizes = [2, 4, 32], strides = [1, 1, 1]} : vector<8x4x32xf32> to vector<2x4x32xf32>
    %379 = arith.addf %377, %378 : vector<2x4x32xf32>
    %380 = arith.addf %251, %379 : vector<2x4x32xf32>
    %c1_120 = arith.constant 1 : index
    %c0_121 = arith.constant 0 : index
    %c0_122 = arith.constant 0 : index
    %381 = vector.load %arg17[%c1_120, %c0_121, %c0_122] : memref<2x1x32xf32, #tpu.memory_space<vmem>>, vector<1x1x32xf32>
    %382 = vector.shape_cast %381 : vector<1x1x32xf32> to vector<1x32xf32>
    %383 = vector.shape_cast %382 : vector<1x32xf32> to vector<1x1x32xf32>
    %384 = vector.broadcast %383 : vector<1x1x32xf32> to vector<2x4x32xf32>
    %385 = arith.addf %380, %384 : vector<2x4x32xf32>
    %c1_123 = arith.constant 1 : index
    %c0_124 = arith.constant 0 : index
    %c0_125 = arith.constant 0 : index
    %386 = vector.load %arg12[%c1_123, %c0_124, %c0_125] : memref<2x1x32xf32, #tpu.memory_space<vmem>>, vector<1x1x32xf32>
    %387 = vector.shape_cast %386 : vector<1x1x32xf32> to vector<1x32xf32>
    %c1_126 = arith.constant 1 : index
    %c0_127 = arith.constant 0 : index
    %c0_128 = arith.constant 0 : index
    %388 = vector.load %arg13[%c1_126, %c0_127, %c0_128] : memref<2x1x32xf32, #tpu.memory_space<vmem>>, vector<1x1x32xf32>
    %389 = vector.shape_cast %388 : vector<1x1x32xf32> to vector<1x32xf32>
    %cst_129 = arith.constant dense<0.000000e+00> : vector<2x4xf32>
    %390 = vector.multi_reduction <add>, %385, %cst_129 [2] : vector<2x4x32xf32> to vector<2x4xf32>
    %391 = vector.shape_cast %390 : vector<2x4xf32> to vector<2x4x1xf32>
    %cst_130 = arith.constant 3.200000e+01 : f32
    %392 = vector.broadcast %cst_130 : f32 to vector<2x4x1xf32>
    %393 = arith.divf %391, %392 : vector<2x4x1xf32>
    %394 = vector.broadcast %393 : vector<2x4x1xf32> to vector<2x4x32xf32>
    %395 = arith.subf %385, %394 : vector<2x4x32xf32>
    %396 = arith.mulf %395, %395 : vector<2x4x32xf32>
    %cst_131 = arith.constant dense<0.000000e+00> : vector<2x4xf32>
    %397 = vector.multi_reduction <add>, %396, %cst_131 [2] : vector<2x4x32xf32> to vector<2x4xf32>
    %398 = vector.shape_cast %397 : vector<2x4xf32> to vector<2x4x1xf32>
    %cst_132 = arith.constant 3.200000e+01 : f32
    %399 = vector.broadcast %cst_132 : f32 to vector<2x4x1xf32>
    %400 = arith.divf %398, %399 : vector<2x4x1xf32>
    %401 = vector.broadcast %393 : vector<2x4x1xf32> to vector<2x4x32xf32>
    %402 = arith.subf %385, %401 : vector<2x4x32xf32>
    %cst_133 = arith.constant 9.99999974E-6 : f32
    %403 = vector.broadcast %cst_133 : f32 to vector<2x4x1xf32>
    %404 = arith.addf %400, %403 : vector<2x4x1xf32>
    %405 = math.rsqrt %404 : vector<2x4x1xf32>
    %406 = vector.broadcast %405 : vector<2x4x1xf32> to vector<2x4x32xf32>
    %407 = arith.mulf %402, %406 : vector<2x4x32xf32>
    %408 = vector.shape_cast %387 : vector<1x32xf32> to vector<1x1x32xf32>
    %409 = vector.broadcast %408 : vector<1x1x32xf32> to vector<2x4x32xf32>
    %410 = arith.mulf %407, %409 : vector<2x4x32xf32>
    %411 = vector.shape_cast %389 : vector<1x32xf32> to vector<1x1x32xf32>
    %412 = vector.broadcast %411 : vector<1x1x32xf32> to vector<2x4x32xf32>
    %413 = arith.addf %410, %412 : vector<2x4x32xf32>
    %c1_134 = arith.constant 1 : index
    %c0_135 = arith.constant 0 : index
    %c0_136 = arith.constant 0 : index
    %414 = vector.load %arg18[%c1_134, %c0_135, %c0_136] : memref<2x32x64xf32, #tpu.memory_space<vmem>>, vector<1x32x64xf32>
    %415 = vector.shape_cast %414 : vector<1x32x64xf32> to vector<32x64xf32>
    %416 = vector.shape_cast %415 : vector<32x64xf32> to vector<1x32x64xf32>
    %417 = vector.shape_cast %416 : vector<1x32x64xf32> to vector<1x32x64xf32>
    %418 = vector.broadcast %417 : vector<1x32x64xf32> to vector<2x32x64xf32>
    "tpu.trace_start"() <{level = 10 : i32, message = "bsd,bdf->bsf"}> : () -> ()
    %cst_137 = arith.constant dense<0.000000e+00> : vector<2x4x64xf32>
    %419 = tpu.matmul %413, %418, %cst_137 {dimension_numbers = #tpu.dot_dimension_numbers<[2], [1], [1], [2], [0, 0, 0, 1, 1, 2], [0], [0]>} : vector<2x4x32xf32>, vector<2x32x64xf32>, vector<2x4x64xf32> -> vector<2x4x64xf32>
    "tpu.trace_stop"() : () -> ()
    %c1_138 = arith.constant 1 : index
    %c0_139 = arith.constant 0 : index
    %c0_140 = arith.constant 0 : index
    %420 = vector.load %arg19[%c1_138, %c0_139, %c0_140] : memref<2x1x64xf32, #tpu.memory_space<vmem>>, vector<1x1x64xf32>
    %421 = vector.shape_cast %420 : vector<1x1x64xf32> to vector<1x64xf32>
    %422 = vector.shape_cast %421 : vector<1x64xf32> to vector<1x1x64xf32>
    %423 = vector.broadcast %422 : vector<1x1x64xf32> to vector<2x4x64xf32>
    %424 = arith.addf %419, %423 : vector<2x4x64xf32>
    %cst_141 = arith.constant 0.000000e+00 : f32
    %425 = vector.broadcast %cst_141 : f32 to vector<2x4x64xf32>
    %426 = arith.maximumf %424, %425 : vector<2x4x64xf32>
    %c1_142 = arith.constant 1 : index
    %c0_143 = arith.constant 0 : index
    %c0_144 = arith.constant 0 : index
    %427 = vector.load %arg20[%c1_142, %c0_143, %c0_144] : memref<2x64x32xf32, #tpu.memory_space<vmem>>, vector<1x64x32xf32>
    %428 = vector.shape_cast %427 : vector<1x64x32xf32> to vector<64x32xf32>
    %429 = vector.shape_cast %428 : vector<64x32xf32> to vector<1x64x32xf32>
    %430 = vector.shape_cast %429 : vector<1x64x32xf32> to vector<1x64x32xf32>
    %431 = vector.broadcast %430 : vector<1x64x32xf32> to vector<2x64x32xf32>
    "tpu.trace_start"() <{level = 10 : i32, message = "bsf,bfd->bsd"}> : () -> ()
    %cst_145 = arith.constant dense<0.000000e+00> : vector<2x4x32xf32>
    %432 = tpu.matmul %426, %431, %cst_145 {dimension_numbers = #tpu.dot_dimension_numbers<[2], [1], [1], [2], [0, 0, 0, 1, 1, 2], [0], [0]>} : vector<2x4x64xf32>, vector<2x64x32xf32>, vector<2x4x32xf32> -> vector<2x4x32xf32>
    "tpu.trace_stop"() : () -> ()
    %433 = arith.addf %385, %432 : vector<2x4x32xf32>
    %c1_146 = arith.constant 1 : index
    %c0_147 = arith.constant 0 : index
    %c0_148 = arith.constant 0 : index
    %434 = vector.load %arg21[%c1_146, %c0_147, %c0_148] : memref<2x1x32xf32, #tpu.memory_space<vmem>>, vector<1x1x32xf32>
    %435 = vector.shape_cast %434 : vector<1x1x32xf32> to vector<1x32xf32>
    %436 = vector.shape_cast %435 : vector<1x32xf32> to vector<1x1x32xf32>
    %437 = vector.broadcast %436 : vector<1x1x32xf32> to vector<2x4x32xf32>
    %438 = arith.addf %433, %437 : vector<2x4x32xf32>
    %c0_149 = arith.constant 0 : index
    %c0_150 = arith.constant 0 : index
    %439 = vector.load %arg22[%c0_149, %c0_150] : memref<1x32xf32, #tpu.memory_space<vmem>>, vector<1x32xf32>
    %c0_151 = arith.constant 0 : index
    %c0_152 = arith.constant 0 : index
    %440 = vector.load %arg23[%c0_151, %c0_152] : memref<1x32xf32, #tpu.memory_space<vmem>>, vector<1x32xf32>
    %cst_153 = arith.constant dense<0.000000e+00> : vector<2x4xf32>
    %441 = vector.multi_reduction <add>, %438, %cst_153 [2] : vector<2x4x32xf32> to vector<2x4xf32>
    %442 = vector.shape_cast %441 : vector<2x4xf32> to vector<2x4x1xf32>
    %cst_154 = arith.constant 3.200000e+01 : f32
    %443 = vector.broadcast %cst_154 : f32 to vector<2x4x1xf32>
    %444 = arith.divf %442, %443 : vector<2x4x1xf32>
    %445 = vector.broadcast %444 : vector<2x4x1xf32> to vector<2x4x32xf32>
    %446 = arith.subf %438, %445 : vector<2x4x32xf32>
    %447 = arith.mulf %446, %446 : vector<2x4x32xf32>
    %cst_155 = arith.constant dense<0.000000e+00> : vector<2x4xf32>
    %448 = vector.multi_reduction <add>, %447, %cst_155 [2] : vector<2x4x32xf32> to vector<2x4xf32>
    %449 = vector.shape_cast %448 : vector<2x4xf32> to vector<2x4x1xf32>
    %cst_156 = arith.constant 3.200000e+01 : f32
    %450 = vector.broadcast %cst_156 : f32 to vector<2x4x1xf32>
    %451 = arith.divf %449, %450 : vector<2x4x1xf32>
    %452 = vector.broadcast %444 : vector<2x4x1xf32> to vector<2x4x32xf32>
    %453 = arith.subf %438, %452 : vector<2x4x32xf32>
    %cst_157 = arith.constant 1.000000e-03 : f32
    %454 = vector.broadcast %cst_157 : f32 to vector<2x4x1xf32>
    %455 = arith.addf %451, %454 : vector<2x4x1xf32>
    %456 = math.rsqrt %455 : vector<2x4x1xf32>
    %457 = vector.broadcast %456 : vector<2x4x1xf32> to vector<2x4x32xf32>
    %458 = arith.mulf %453, %457 : vector<2x4x32xf32>
    %459 = vector.shape_cast %439 : vector<1x32xf32> to vector<1x1x32xf32>
    %460 = vector.broadcast %459 : vector<1x1x32xf32> to vector<2x4x32xf32>
    %461 = arith.mulf %458, %460 : vector<2x4x32xf32>
    %462 = vector.shape_cast %440 : vector<1x32xf32> to vector<1x1x32xf32>
    %463 = vector.broadcast %462 : vector<1x1x32xf32> to vector<2x4x32xf32>
    %464 = arith.addf %461, %463 : vector<2x4x32xf32>
    %cst_158 = arith.constant -1.000000e+01 : f32
    %cst_159 = arith.constant 1.000000e+01 : f32
    %465 = vector.broadcast %cst_158 : f32 to vector<2x4x32xf32>
    %466 = arith.maximumf %465, %464 : vector<2x4x32xf32>
    %467 = vector.broadcast %cst_159 : f32 to vector<2x4x32xf32>
    %468 = arith.minimumf %467, %466 : vector<2x4x32xf32>
    %469 = vector.extract_strided_slice %468 {offsets = [0, 0, 0], sizes = [2, 3, 32], strides = [1, 1, 1]} : vector<2x4x32xf32> to vector<2x3x32xf32>
    %c0_160 = arith.constant 0 : index
    %c0_161 = arith.constant 0 : index
    %470 = vector.load %arg24[%c0_160, %c0_161] : memref<32x128xf32, #tpu.memory_space<vmem>>, vector<32x128xf32>
    %471 = vector.shape_cast %470 : vector<32x128xf32> to vector<1x32x128xf32>
    %472 = vector.shape_cast %471 : vector<1x32x128xf32> to vector<1x32x128xf32>
    %473 = vector.broadcast %472 : vector<1x32x128xf32> to vector<2x32x128xf32>
    "tpu.trace_start"() <{level = 10 : i32, message = "bld,bdw->blw"}> : () -> ()
    %cst_162 = arith.constant dense<0.000000e+00> : vector<2x3x128xf32>
    %474 = tpu.matmul %469, %473, %cst_162 {dimension_numbers = #tpu.dot_dimension_numbers<[2], [1], [1], [2], [0, 0, 0, 1, 1, 2], [0], [0]>} : vector<2x3x32xf32>, vector<2x32x128xf32>, vector<2x3x128xf32> -> vector<2x3x128xf32>
    "tpu.trace_stop"() : () -> ()
    %c0_163 = arith.constant 0 : index
    %c0_164 = arith.constant 0 : index
    %475 = vector.load %arg25[%c0_163, %c0_164] : memref<1x128xf32, #tpu.memory_space<vmem>>, vector<1x128xf32>
    %476 = vector.shape_cast %475 : vector<1x128xf32> to vector<1x1x128xf32>
    %477 = vector.broadcast %476 : vector<1x1x128xf32> to vector<2x3x128xf32>
    %478 = arith.addf %474, %477 : vector<2x3x128xf32>
    %c0_165 = arith.constant 0 : index
    %c0_166 = arith.constant 0 : index
    %c0_167 = arith.constant 0 : index
    %479 = vector.load %arg26[%c0_165, %c0_166, %c0_167] : memref<2x3x128xf32, #tpu.memory_space<vmem>>, vector<2x3x128xf32>
    tpu.vector_store %arg26[%c0_165, %c0_166, %c0_167], %478 {strides = array<i32>} : memref<2x3x128xf32, #tpu.memory_space<vmem>>, vector<2x3x128xf32>,
    return
  }
  func.func @transform_0(%arg0: i32) -> (i32, i32, i32) {
    %c0_i32 = arith.constant 0 : i32
    %c0_i32_0 = arith.constant 0 : i32
    %c0_i32_1 = arith.constant 0 : i32
    return %arg0, %c0_i32, %c0_i32_0 : i32, i32, i32
  }
  func.func @transform_1(%arg0: i32) -> (i32, i32, i32) {
    %c0_i32 = arith.constant 0 : i32
    %c0_i32_0 = arith.constant 0 : i32
    %c0_i32_1 = arith.constant 0 : i32
    return %arg0, %c0_i32, %c0_i32_0 : i32, i32, i32
  }
  func.func @transform_2(%arg0: i32) -> (i32, i32, i32) {
    %c0_i32 = arith.constant 0 : i32
    %c0_i32_0 = arith.constant 0 : i32
    %c0_i32_1 = arith.constant 0 : i32
    return %arg0, %c0_i32, %c0_i32_0 : i32, i32, i32
  }
  func.func @transform_3(%arg0: i32) -> (i32, i32) {
    %c0_i32 = arith.constant 0 : i32
    %c0_i32_0 = arith.constant 0 : i32
    %c0_i32_1 = arith.constant 0 : i32
    return %c0_i32, %c0_i32_0 : i32, i32
  }
  func.func @transform_4(%arg0: i32) -> (i32, i32) {
    %c0_i32 = arith.constant 0 : i32
    %c0_i32_0 = arith.constant 0 : i32
    %c0_i32_1 = arith.constant 0 : i32
    return %c0_i32, %c0_i32_0 : i32, i32
  }
  func.func @transform_5(%arg0: i32) -> (i32, i32) {
    %c0_i32 = arith.constant 0 : i32
    %c0_i32_0 = arith.constant 0 : i32
    %c0_i32_1 = arith.constant 0 : i32
    return %c0_i32, %c0_i32_0 : i32, i32
  }
  func.func @transform_6(%arg0: i32) -> (i32, i32) {
    %c0_i32 = arith.constant 0 : i32
    %c0_i32_0 = arith.constant 0 : i32
    %c0_i32_1 = arith.constant 0 : i32
    return %c0_i32, %c0_i32_0 : i32, i32
  }
  func.func @transform_7(%arg0: i32) -> (i32, i32) {
    %c0_i32 = arith.constant 0 : i32
    %c0_i32_0 = arith.constant 0 : i32
    %c0_i32_1 = arith.constant 0 : i32
    return %c0_i32, %c0_i32_0 : i32, i32
  }
  func.func @transform_8(%arg0: i32) -> (i32, i32) {
    %c0_i32 = arith.constant 0 : i32
    %c0_i32_0 = arith.constant 0 : i32
    %c0_i32_1 = arith.constant 0 : i32
    return %c0_i32, %c0_i32_0 : i32, i32
  }
  func.func @transform_9(%arg0: i32) -> (i32, i32, i32) {
    %c0_i32 = arith.constant 0 : i32
    %c0_i32_0 = arith.constant 0 : i32
    %c0_i32_1 = arith.constant 0 : i32
    %c0_i32_2 = arith.constant 0 : i32
    return %c0_i32, %c0_i32_0, %c0_i32_1 : i32, i32, i32
  }
  func.func @transform_10(%arg0: i32) -> (i32, i32, i32) {
    %c0_i32 = arith.constant 0 : i32
    %c0_i32_0 = arith.constant 0 : i32
    %c0_i32_1 = arith.constant 0 : i32
    %c0_i32_2 = arith.constant 0 : i32
    return %c0_i32, %c0_i32_0, %c0_i32_1 : i32, i32, i32
  }
  func.func @transform_11(%arg0: i32) -> (i32, i32, i32) {
    %c0_i32 = arith.constant 0 : i32
    %c0_i32_0 = arith.constant 0 : i32
    %c0_i32_1 = arith.constant 0 : i32
    %c0_i32_2 = arith.constant 0 : i32
    return %c0_i32, %c0_i32_0, %c0_i32_1 : i32, i32, i32
  }
  func.func @transform_12(%arg0: i32) -> (i32, i32, i32) {
    %c0_i32 = arith.constant 0 : i32
    %c0_i32_0 = arith.constant 0 : i32
    %c0_i32_1 = arith.constant 0 : i32
    %c0_i32_2 = arith.constant 0 : i32
    return %c0_i32, %c0_i32_0, %c0_i32_1 : i32, i32, i32
  }
  func.func @transform_13(%arg0: i32) -> (i32, i32, i32, i32) {
    %c0_i32 = arith.constant 0 : i32
    %c0_i32_0 = arith.constant 0 : i32
    %c0_i32_1 = arith.constant 0 : i32
    %c0_i32_2 = arith.constant 0 : i32
    %c0_i32_3 = arith.constant 0 : i32
    return %c0_i32, %c0_i32_0, %c0_i32_1, %c0_i32_2 : i32, i32, i32, i32
  }
  func.func @transform_14(%arg0: i32) -> (i32, i32, i32, i32) {
    %c0_i32 = arith.constant 0 : i32
    %c0_i32_0 = arith.constant 0 : i32
    %c0_i32_1 = arith.constant 0 : i32
    %c0_i32_2 = arith.constant 0 : i32
    %c0_i32_3 = arith.constant 0 : i32
    return %c0_i32, %c0_i32_0, %c0_i32_1, %c0_i32_2 : i32, i32, i32, i32
  }
  func.func @transform_15(%arg0: i32) -> (i32, i32, i32, i32) {
    %c0_i32 = arith.constant 0 : i32
    %c0_i32_0 = arith.constant 0 : i32
    %c0_i32_1 = arith.constant 0 : i32
    %c0_i32_2 = arith.constant 0 : i32
    %c0_i32_3 = arith.constant 0 : i32
    return %c0_i32, %c0_i32_0, %c0_i32_1, %c0_i32_2 : i32, i32, i32, i32
  }
  func.func @transform_16(%arg0: i32) -> (i32, i32, i32) {
    %c0_i32 = arith.constant 0 : i32
    %c0_i32_0 = arith.constant 0 : i32
    %c0_i32_1 = arith.constant 0 : i32
    %c0_i32_2 = arith.constant 0 : i32
    return %c0_i32, %c0_i32_0, %c0_i32_1 : i32, i32, i32
  }
  func.func @transform_17(%arg0: i32) -> (i32, i32, i32) {
    %c0_i32 = arith.constant 0 : i32
    %c0_i32_0 = arith.constant 0 : i32
    %c0_i32_1 = arith.constant 0 : i32
    %c0_i32_2 = arith.constant 0 : i32
    return %c0_i32, %c0_i32_0, %c0_i32_1 : i32, i32, i32
  }
  func.func @transform_18(%arg0: i32) -> (i32, i32, i32) {
    %c0_i32 = arith.constant 0 : i32
    %c0_i32_0 = arith.constant 0 : i32
    %c0_i32_1 = arith.constant 0 : i32
    %c0_i32_2 = arith.constant 0 : i32
    return %c0_i32, %c0_i32_0, %c0_i32_1 : i32, i32, i32
  }
  func.func @transform_19(%arg0: i32) -> (i32, i32, i32) {
    %c0_i32 = arith.constant 0 : i32
    %c0_i32_0 = arith.constant 0 : i32
    %c0_i32_1 = arith.constant 0 : i32
    %c0_i32_2 = arith.constant 0 : i32
    return %c0_i32, %c0_i32_0, %c0_i32_1 : i32, i32, i32
  }
  func.func @transform_20(%arg0: i32) -> (i32, i32, i32) {
    %c0_i32 = arith.constant 0 : i32
    %c0_i32_0 = arith.constant 0 : i32
    %c0_i32_1 = arith.constant 0 : i32
    %c0_i32_2 = arith.constant 0 : i32
    return %c0_i32, %c0_i32_0, %c0_i32_1 : i32, i32, i32
  }
  func.func @transform_21(%arg0: i32) -> (i32, i32) {
    %c0_i32 = arith.constant 0 : i32
    %c0_i32_0 = arith.constant 0 : i32
    %c0_i32_1 = arith.constant 0 : i32
    return %c0_i32, %c0_i32_0 : i32, i32
  }
  func.func @transform_22(%arg0: i32) -> (i32, i32) {
    %c0_i32 = arith.constant 0 : i32
    %c0_i32_0 = arith.constant 0 : i32
    %c0_i32_1 = arith.constant 0 : i32
    return %c0_i32, %c0_i32_0 : i32, i32
  }
  func.func @transform_23(%arg0: i32) -> (i32, i32) {
    %c0_i32 = arith.constant 0 : i32
    %c0_i32_0 = arith.constant 0 : i32
    %c0_i32_1 = arith.constant 0 : i32
    return %c0_i32, %c0_i32_0 : i32, i32
  }
  func.func @transform_24(%arg0: i32) -> (i32, i32) {
    %c0_i32 = arith.constant 0 : i32
    %c0_i32_0 = arith.constant 0 : i32
    %c0_i32_1 = arith.constant 0 : i32
    return %c0_i32, %c0_i32_0 : i32, i32
  }
  func.func @transform_25(%arg0: i32) -> (i32, i32, i32) {
    %c0_i32 = arith.constant 0 : i32
    %c0_i32_0 = arith.constant 0 : i32
    %c0_i32_1 = arith.constant 0 : i32
    return %arg0, %c0_i32, %c0_i32_0 : i32, i32, i32
  }
}

</mosaic_0001>

<bundles_post_ra>
// kernel: tpu_custom_call.1
= control target key start
LH: loop header
LB: loop body
LE: loop exit
PB: predicated region body
PF: predicated region fallthrough
CT: control target
= control target key end

     0   :  { %vm84_vm0 = vcmask 257024   ;;  %vm137_vm1 = vcmask 1044480   ;;  %v7737_v2 = vmov 0.0   ;;  %vm7738_vm2 = vmmov 0   ;;  %s8947_s0 = inlined_call_operand.vmem [shape: f32[2,4,32], index: 0, kind: input, shape index: {}]   ;;  %s8948_s5 = inlined_call_operand.vmem [shape: f32[5,32], index: 5, kind: input, shape index: {}]   ;;  %s8949_s1 = inlined_call_operand.vmem [shape: f32[2,1,5], index: 1, kind: input, shape index: {}]   ;;  %s8950_s7 = inlined_call_operand.vmem [shape: f32[6,32], index: 7, kind: input, shape index: {}]   ;;  %s8951_s2 = inlined_call_operand.vmem [shape: f32[2,1,6], index: 2, kind: input, shape index: {}]   ;;  %s8952_s6 = inlined_call_operand.vmem [shape: f32[1,32], index: 6, kind: input, shape index: {}]   ;;  %s8953_s8 = inlined_call_operand.vmem [shape: f32[1,32], index: 8, kind: input, shape index: {}]   ;;  %s8954_s3 = inlined_call_operand.vmem [shape: f32[1,32], index: 3, kind: input, shape index: {}]   ;;  %s8955_s4 = inlined_call_operand.vmem [shape: f32[1,32], index: 4, kind: input, shape index: {}]   ;;  %s8956_s13 = inlined_call_operand.vmem [shape: f32[2,4,32,24], index: 13, kind: input, shape index: {}]   ;;  %s8957_s9 = inlined_call_operand.vmem [shape: f32[2,1,32], index: 9, kind: input, shape index: {}]   ;;  %s8958_s10 = inlined_call_operand.vmem [shape: f32[2,1,32], index: 10, kind: input, shape index: {}]   ;;  %s8959_s14 = inlined_call_operand.vmem [shape: f32[2,4,1,24], index: 14, kind: input, shape index: {}]   ;;  %s8960_s15 = inlined_call_operand.vmem [shape: f32[2,4,8,32], index: 15, kind: input, shape index: {}]   ;;  %s8961_s16 = inlined_call_operand.vmem [shape: f32[2,1,32], index: 16, kind: input, shape index: {}]   ;;  %s8962_s17 = inlined_call_operand.vmem [shape: f32[2,32,64], index: 17, kind: input, shape index: {}]   ;;  %s8963_s11 = inlined_call_operand.vmem [shape: f32[2,1,32], index: 11, kind: input, shape index: {}]   ;;  %s8964_s12 = inlined_call_operand.vmem [shape: f32[2,1,32], index: 12, kind: input, shape index: {}]   ;;  %s8965_s19 = inlined_call_operand.vmem [shape: f32[2,64,32], index: 19, kind: input, shape index: {}]   ;;  %s8966_s18 = inlined_call_operand.vmem [shape: f32[2,1,64], index: 18, kind: input, shape index: {}]   ;;  %s8967_s20 = inlined_call_operand.vmem [shape: f32[2,1,32], index: 20, kind: input, shape index: {}]   ;;  %s8968_s23 = inlined_call_operand.vmem [shape: f32[32,128], index: 23, kind: input, shape index: {}]   ;;  %s8969_s21 = inlined_call_operand.vmem [shape: f32[1,32], index: 21, kind: input, shape index: {}]   ;;  %s8970_s22 = inlined_call_operand.vmem [shape: f32[1,32], index: 22, kind: input, shape index: {}]   ;;  %s8971_s24 = inlined_call_operand.vmem [shape: f32[1,128], index: 24, kind: input, shape index: {}]   ;;  %s8972_s25 = inlined_call_operand.vmem [shape: f32[2,3,128], index: 25, kind: output, shape index: {}]  }
   0x1   :  { %8977 = sst [smem:[#allocation2_spill]] %s8947_s0  ;;  %7067 = vmatprep.subr.mxu0 %v7737_v2  ;;  %7069 = vmatprep.mubr.msk.f32.mxu0 %vm7738_vm2, %v7737_v2  ;;  %vm133_vm3 = vcmask 39936   ;;  %vm295_vm4 = vcmask 1045504   ;;  %vm291_vm5 = vcmask 48128   ;;  %v446_v21 = vlaneseq }
   0x2   :  { %8978 = sst [smem:[#allocation3_spill]] %s8948_s5  ;;  %7072 = vmatprep.subr.mxu1 %v7737_v2  ;;  %7074 = vmatprep.mubr.msk.f32.mxu1 %vm7738_vm2, %v7737_v2  ;;  %vm560_vm7 = vcmask 261120   ;;  %vm1130_vm8 = vcmask 64512   ;;  %vm1760_vm9 = vcmask 27648   ;;  %vm1855_vm10 = vcmask 1043456  }
   0x3   :  { %8979 = sst [smem:[#allocation4_spill]] %s8949_s1  ;;  %v7921_v22 = vshrl.u32 %v446_v21, 7  ;;  %v7923_v23 = vand.u32 127, %v446_v21  ;;  %vm1851_vm11 = vcmask 31744   ;;  %vm3283_vm12 = vcmask 523264  }
   0x4   :  { %8980 = sst [smem:[#allocation5_spill]] %s8950_s7 }
   0x5   :  { %8981 = sst [smem:[#allocation6_spill]] %s8951_s2  ;;  %vm470_vm6 = vcmp.le.s32.totalorder %v7923_v23, %v7921_v22  ;;  %v448_v45 = vsub.s32 0, %v7921_v22 }
   0x6   :  { %8982 = sst [smem:[#allocation7_spill]] %s8952_s6 }
   0x7   :  { %8983 = sst [smem:[#allocation8_spill]] %s8953_s8 }
   0x8   :  { %8984 = sst [smem:[#allocation9_spill]] %s8954_s3 }
   0x9   :  { %8985 = sst [smem:[#allocation10_spill]] %s8955_s4 }
   0xa   :  { %8986 = sst [smem:[#allocation11_spill]] %s8956_s13 }
   0xb   :  { %s8987_s8 = sld [smem:[#allocation2_spill]] }
   0xc   :  { %s8988_s2 = sld [smem:[#allocation3_spill]] }
   0xd   :  { %s8989_s5 = sld [smem:[#allocation4_spill]] }
   0xe   :  { %s8990_s6 = sld [smem:[#allocation5_spill]] }
   0xf   :  { %s8991_s30 = sld [smem:[#allocation6_spill]] }
  0x10   :  { %s8992_s4 = sld [smem:[#allocation7_spill]] }
  0x11   :  { %v80_v0 = vld [vmem:[%s8987_s8] sm:$0xf]  ;;  %v81_v1 = vld [vmem:[%s8987_s8 + $0x4] sm:$0xf]  ;;  %s8993_s28 = sld [smem:[#allocation8_spill]] }
  0x12   :  { %v128_v3 = vld [vmem:[%s8988_s2] sm:$0x1f]  ;;  %v85_v4 = vsel %vm84_vm0, %v80_v0, 0.0  ;;  %v88_v8 = vsel %vm84_vm0, %v81_v1, 0.0  ;;  %s8994_s0 = sld [smem:[#allocation9_spill]]  ;;  %s7740_s2 = smov 112  }
  0x13   :  { %7068 = vmatpush3.msk.msra.mxu0 %vm137_vm1, %v128_v3  ;;  %v130_v5 = vld [vmem:[%s8989_s5] sm:$0x1]  ;;  %86 = vadd.xlane.f32.xlu0 %v85_v4  ;;  %v131_v7 = vld [vmem:[%s8989_s5 + $0x1] sm:$0x1]  ;;  %s8995_s8 = sld [smem:[#allocation10_spill]] }
  0x14   :  { %7070 = vmatmul.mubr.msk.f32.vlgmr.msra.gmra.mxu0 %vm133_vm3, %v130_v5  ;;  %v129_v6 = vld [vmem:[%s8990_s6] sm:$0x3f]  ;;  %7077 = vmatprep.subr.mxu0 %v7737_v2  ;;  %s8996_s7 = sld [smem:[#allocation11_spill]] }
  0x15   :  { %7073 = vmatpush3.msk.msra.mxu1 %vm137_vm1, %v128_v3  ;;  %v288_v9 = vld [vmem:[%s8991_s30] sm:$0x1]  ;;  %7078 = vmatpush3.msk.msra.mxu0 %vm295_vm4, %v129_v6  ;;  %v289_v10 = vld [vmem:[%s8991_s30 + $0x1] sm:$0x1] }
  0x16   :  { %7079 = vmatprep.mubr.msk.f32.mxu0 %vm7738_vm2, %v7737_v2  ;;  %7075 = vmatmul.mubr.msk.f32.vlgmr.msra.gmra.mxu1 %vm133_vm3, %v131_v7  ;;  %v132_v38 = vld [vmem:[%s8992_s4] sm:$0x1] }
  0x17   :  { %89 = vadd.xlane.f32.xlu0 %v88_v8  ;;  %7082 = vmatprep.subr.mxu1 %v7737_v2  ;;  %v290_v39 = vld [vmem:[%s8993_s28] sm:$0x1] }
  0x18   :  { %7080 = vmatmul.mubr.msk.f32.vlgmr.msra.gmra.mxu0 %vm291_vm5, %v288_v9  ;;  %7084 = vmatprep.mubr.msk.f32.mxu1 %vm7738_vm2, %v7737_v2  ;;  %v6627_v43 = vld [vmem:[%s8994_s0] ss:$0 sm:$0xff]  ;;  %s7739_s0 = smov 120  }
  0x19   :  { %7083 = vmatpush3.msk.msra.mxu1 %vm295_vm4, %v129_v6  ;;  %7087 = vmatprep.subr.mxu0 %v7737_v2  ;;  %v6628_v50 = vld [vmem:[%s8995_s8] ss:$0 sm:$0xff] }
  0x1a   :  { %7085 = vmatmul.mubr.msk.f32.vlgmr.msra.gmra.mxu1 %vm291_vm5, %v289_v10  ;;  %7098 = vmatprep.subr.mxu1 %v7737_v2 }
  0x1b   :  { %7095 = vmatprep.mubr.msk.f32.mxu0 %vm7738_vm2, %v7737_v2  ;;  %7106 = vmatprep.mubr.msk.f32.mxu1 %vm7738_vm2, %v7737_v2 }
  0x9c   :  { %v87_v11 = vpop.xlane.xlu0 %86 }
  0x9d   :  { %v92_v12 = vmul.f32 0.03125, %v87_v11 }
  0x9f   :  { %v94_v13 = vsub.f32 %v80_v0, %v92_v12 }
  0xa0   :  { %v90_v14 = vpop.xlane.xlu0 %89 }
  0xa1   :  { %v93_v15 = vmul.f32 0.03125, %v90_v14  ;;  %v96_v16 = vmul.f32 %v94_v13, %v94_v13 }
  0xa3   :  { %v95_v17 = vsub.f32 %v81_v1, %v93_v15  ;;  %v98_v18 = vsel %vm84_vm0, %v96_v16, 0.0  ;;  %v519_v16 = vld [vmem:[%s8996_s7 + $0x18] sm:$0xff] }
  0xa4   :  { %99 = vadd.xlane.f32.xlu1 %v98_v18  ;;  %7088 = vmatpush3.msra.mxu0 %v519_v16  ;;  %v517_v18 = vld [vmem:[%s8996_s7 + $0x8] sm:$0xff] }
  0xa5   :  { %v97_v19 = vmul.f32 %v95_v17, %v95_v17  ;;  %7099 = vmatpush3.msra.mxu1 %v519_v16  ;;  %7089 = vmatprep.subr.mxu0 %v7737_v2 }
  0xa6   :  { %7100 = vmatprep.subr.mxu1 %v7737_v2 }
  0xa7   :  { %v101_v20 = vsel %vm84_vm0, %v97_v19, 0.0  ;;  %v516_v19 = vld [vmem:[%s8996_s7] sm:$0xff] }
  0xa8   :  { %102 = vadd.xlane.f32.xlu1 %v101_v20 }
  0xd4   :  { %v207_v24 = vpop.f32.mrf.mxu0 }
  0xd5   :  { %v208_v40 = vadd.f32 %v207_v24, %v132_v38 }
  0xd6   :  { %v7071_v25 = vpop.f32.mrf.mxu0  ;;  %v280_v26 = vpop.f32.mrf.mxu1 }
  0xd7   :  { %v6633_v44 = vclamps-f32 %v208_v40, 10.0  ;;  %v281_v46 = vadd.f32 %v280_v26, %v132_v38  ;;  %v521_v40 = vld [vmem:[%s8996_s7 + $0x28] sm:$0xff] }
  0xd8   :  { %v365_v27 = vpop.f32.mrf.mxu0  ;;  %v7076_v28 = vpop.f32.mrf.mxu1 }
  0xd9   :  { %v366_v41 = vadd.f32 %v365_v27, %v290_v39  ;;  %v449_v53 = vrot.slane %v6633_v44, %v448_v45  ;;  %v6634_v54 = vclamps-f32 %v281_v46, 10.0  ;;  %v525_v44 = vld [vmem:[%s8996_s7 + $0x48] sm:$0xff]  ;;  %v531_v46 = vld [vmem:[%s8996_s7 + $0x78] sm:$0xff] }
  0xda   :  { %v7081_v29 = vpop.f32.mrf.mxu0  ;;  %v438_v30 = vpop.f32.mrf.mxu1 }
  0xdb   :  { %v6639_v48 = vclamps-f32 %v366_v41, 10.0  ;;  %v439_v49 = vadd.f32 %v438_v30, %v290_v39  ;;  %v453_v62 = vrot.slane %v6634_v54, %v448_v45  ;;  %v6641_v29 = vld [vmem:[%s8957_s9] ss:$0 sm:$0xff] }
  0xdc   :  { %v7086_v31 = vpop.f32.mrf.mxu1  ;;  %v520_v41 = vld [vmem:[%s8996_s7 + $0x20] sm:$0xff] }
  0xdd   :  { %v459_v57 = vrot.slane %v6639_v48, %v448_v45  ;;  %v6640_v58 = vclamps-f32 %v439_v49, 10.0  ;;  %v6642_v31 = vld [vmem:[%s8958_s10] ss:$0 sm:$0xff]  ;;  %v529_v48 = vld [vmem:[%s8996_s7 + $0x68] sm:$0xff] }
  0xde   :  { %v528_v49 = vld [vmem:[%s8996_s7 + $0x60] sm:$0xff] }
  0xdf   :  { %v463_v63 = vrot.slane %v6640_v58, %v448_v45  ;;  %v524_v45 = vld [vmem:[%s8996_s7 + $0x40] sm:$0xff] }
 0x12d   :  { %v100_v32 = vpop.xlane.xlu1 %99 }
 0x12e   :  { %v104_v33 = vmul.f32 0.03125, %v100_v32 }
 0x130   :  { %v106_v34 = vadd.f32 0.001, %v104_v33 }
 0x131   :  { %v103_v35 = vpop.xlane.xlu1 %102 }
 0x132   :  { %7649 = vrsqrt.f32 %v106_v34  ;;  %v105_v36 = vmul.f32 0.03125, %v103_v35 }
 0x134   :  { %v107_v37 = vadd.f32 0.001, %v105_v36  ;;  %v523_v36 = vld [vmem:[%s8996_s7 + $0x38] sm:$0xff] }
 0x136   :  { %7651 = vrsqrt.f32 %v107_v37  ;;  %v522_v37 = vld [vmem:[%s8996_s7 + $0x30] sm:$0xff] }
 0x13f   :  { %v7650_v42 = vpop.eup %7649 }
 0x140   :  { %v110_v47 = vmul.f32 %v7650_v42, %v94_v13  ;;  %v527_v42 = vld [vmem:[%s8996_s7 + $0x58] sm:$0xff] }
 0x142   :  { %v118_v51 = vmul.f32 %v6627_v43, %v110_v47  ;;  %v530_v47 = vld [vmem:[%s8996_s7 + $0x70] sm:$0xff] }
 0x143   :  { %v7652_v52 = vpop.eup %7651 }
 0x144   :  { %v126_v55 = vadd.f32 %v6628_v50, %v118_v51  ;;  %v111_v56 = vmul.f32 %v7652_v52, %v95_v17  ;;  %v518_v17 = vld [vmem:[%s8996_s7 + $0x10] sm:$0xff] }
 0x145   :  { %7090 = vmatpush3.msra.mxu0 %v518_v17  ;;  %7101 = vmatpush3.msra.mxu1 %v518_v17 }
 0x146   :  { %v454_v59 = vadd.f32 %v449_v53, %v126_v55  ;;  %v119_v60 = vmul.f32 %v6627_v43, %v111_v56  ;;  %7091 = vmatprep.subr.mxu0 %v7737_v2  ;;  %7102 = vmatprep.subr.mxu1 %v7737_v2  ;;  %v526_v43 = vld [vmem:[%s8996_s7 + $0x50] sm:$0xff] }
 0x147   :  { %7092 = vmatpush3.msra.mxu0 %v517_v18  ;;  %7103 = vmatpush3.msra.mxu1 %v517_v18 }
 0x148   :  { %v127_v61 = vadd.f32 %v6628_v50, %v119_v60  ;;  %v7940_v0 = vadd.f32 %v459_v57, %v454_v59  ;;  %7093 = vmatprep.subr.mxu0 %v7737_v2  ;;  %7104 = vmatprep.subr.mxu1 %v7737_v2  ;;  %v6643_v50 = vld [vmem:[%s8959_s14] ss:$0 sm:$0xff]  ;;  %v6644_v57 = vld [vmem:[%s8959_s14 + $0x1] ss:$0 sm:$0xff] }
 0x149   :  { %7094 = vmatpush3.msra.mxu0 %v516_v19  ;;  %7105 = vmatpush3.msra.mxu1 %v516_v19 }
 0x14a   :  { %v455_v1 = vadd.f32 %v453_v62, %v127_v61  ;;  %v474_v3 = vsel %vm84_vm0, %v7940_v0, 0.0  ;;  %7109 = vmatprep.subr.mxu0 %v7737_v2  ;;  %7120 = vmatprep.subr.mxu1 %v7737_v2 }
 0x14b   :  { %475 = vadd.xlane.f32.xlu0 %v474_v3 }
 0x14c   :  { %v7944_v4 = vadd.f32 %v463_v63, %v455_v1  ;;  %v6645_v1 = vld [vmem:[%s8959_s14 + $0x2] ss:$0 sm:$0xff] }
 0x14e   :  { %v477_v5 = vsel %vm84_vm0, %v7944_v4, 0.0 }
 0x14f   :  { %478 = vadd.xlane.f32.xlu1 %v477_v5 }
 0x1d4   :  { %v476_v6 = vpop.xlane.xlu0 %475 }
 0x1d5   :  { %v480_v7 = vmul.f32 0.03125, %v476_v6 }
 0x1d7   :  { %v482_v8 = vsub.f32 %v7940_v0, %v480_v7 }
 0x1d8   :  { %v479_v9 = vpop.xlane.xlu1 %478 }
 0x1d9   :  { %v481_v10 = vmul.f32 0.03125, %v479_v9  ;;  %v484_v11 = vmul.f32 %v482_v8, %v482_v8 }
 0x1db   :  { %v483_v12 = vsub.f32 %v7944_v4, %v481_v10  ;;  %v486_v13 = vsel %vm84_vm0, %v484_v11, 0.0  ;;  %v6646_v10 = vld [vmem:[%s8959_s14 + $0x3] ss:$0 sm:$0xff] }
 0x1dc   :  { %487 = vadd.xlane.f32.xlu0 %v486_v13 }
 0x1dd   :  { %v485_v14 = vmul.f32 %v483_v12, %v483_v12 }
 0x1df   :  { %v489_v15 = vsel %vm84_vm0, %v485_v14, 0.0 }
 0x1e0   :  { %490 = vadd.xlane.f32.xlu1 %v489_v15 }
 0x265   :  { %v488_v20 = vpop.xlane.xlu0 %487 }
 0x266   :  { %v492_v21 = vmul.f32 0.03125, %v488_v20 }
 0x268   :  { %v494_v24 = vadd.f32 1e-05, %v492_v21 }
 0x269   :  { %v491_v25 = vpop.xlane.xlu1 %490 }
 0x26a   :  { %7653 = vrsqrt.f32 %v494_v24  ;;  %v493_v26 = vmul.f32 0.03125, %v491_v25 }
 0x26c   :  { %v495_v27 = vadd.f32 1e-05, %v493_v26 }
 0x26e   :  { %7655 = vrsqrt.f32 %v495_v27  ;;  %v8170_v27 = vsel %vm470_vm6, -1e+09, %v7737_v2 }
 0x277   :  { %v7654_v28 = vpop.eup %7653 }
 0x278   :  { %v498_v30 = vmul.f32 %v7654_v28, %v482_v8 }
 0x27a   :  { %v506_v32 = vmul.f32 %v6641_v29, %v498_v30 }
 0x27b   :  { %v7656_v33 = vpop.eup %7655 }
 0x27c   :  { %v499_v34 = vmul.f32 %v7656_v33, %v483_v12  ;;  %v7978_v35 = vadd.f32 %v6642_v31, %v506_v32 }
 0x27e   :  { %7096 = vmatmul.mubr.msk.f32.vlgmr.msra.gmra.mxu0 %vm560_vm7, %v7978_v35  ;;  %v507_v38 = vmul.f32 %v6641_v29, %v499_v34 }
 0x27f   :  { %7110 = vmatpush3.msra.mxu0 %v523_v36  ;;  %7117 = vmatprep.mubr.msk.f32.mxu0 %vm7738_vm2, %v7737_v2 }
 0x280   :  { %7111 = vmatprep.subr.mxu0 %v7737_v2  ;;  %v7991_v39 = vadd.f32 %v6642_v31, %v507_v38 }
 0x281   :  { %7112 = vmatpush3.msra.mxu0 %v522_v37 }
 0x282   :  { %7113 = vmatprep.subr.mxu0 %v7737_v2  ;;  %7107 = vmatmul.mubr.msk.f32.vlgmr.msra.gmra.mxu1 %vm560_vm7, %v7991_v39 }
 0x283   :  { %7114 = vmatpush3.msra.mxu0 %v521_v40  ;;  %7121 = vmatpush3.msra.mxu1 %v523_v36 }
 0x284   :  { %7115 = vmatprep.subr.mxu0 %v7737_v2  ;;  %7122 = vmatprep.subr.mxu1 %v7737_v2 }
 0x285   :  { %7116 = vmatpush3.msra.mxu0 %v520_v41  ;;  %7123 = vmatpush3.msra.mxu1 %v522_v37 }
 0x286   :  { %7118 = vmatmul.mubr.msk.f32.vlgmr.msra.gmra.mxu0 %vm560_vm7, %v7978_v35  ;;  %7124 = vmatprep.subr.mxu1 %v7737_v2 }
 0x287   :  { %7131 = vmatprep.subr.mxu0 %v7737_v2  ;;  %7125 = vmatpush3.msra.mxu1 %v521_v40 }
 0x288   :  { %7132 = vmatpush3.msra.mxu0 %v527_v42  ;;  %7126 = vmatprep.subr.mxu1 %v7737_v2 }
 0x289   :  { %7133 = vmatprep.subr.mxu0 %v7737_v2  ;;  %7127 = vmatpush3.msra.mxu1 %v520_v41 }
 0x28a   :  { %7128 = vmatprep.mubr.msk.f32.mxu1 %vm7738_vm2, %v7737_v2  ;;  %7134 = vmatpush3.msra.mxu0 %v526_v43 }
 0x28b   :  { %7129 = vmatmul.mubr.msk.f32.vlgmr.msra.gmra.mxu1 %vm560_vm7, %v7991_v39  ;;  %7135 = vmatprep.subr.mxu0 %v7737_v2 }
 0x28c   :  { %7142 = vmatprep.subr.mxu1 %v7737_v2  ;;  %7136 = vmatpush3.msra.mxu0 %v525_v44 }
 0x28d   :  { %7143 = vmatpush3.msra.mxu1 %v527_v42  ;;  %7137 = vmatprep.subr.mxu0 %v7737_v2 }
 0x28e   :  { %7144 = vmatprep.subr.mxu1 %v7737_v2  ;;  %7138 = vmatpush3.msra.mxu0 %v524_v45 }
 0x28f   :  { %7139 = vmatprep.mubr.msk.f32.mxu0 %vm7738_vm2, %v7737_v2  ;;  %7145 = vmatpush3.msra.mxu1 %v526_v43 }
 0x290   :  { %7140 = vmatmul.mubr.msk.f32.vlgmr.msra.gmra.mxu0 %vm560_vm7, %v7978_v35  ;;  %7146 = vmatprep.subr.mxu1 %v7737_v2 }
 0x291   :  { %7153 = vmatprep.subr.mxu0 %v7737_v2  ;;  %7147 = vmatpush3.msra.mxu1 %v525_v44 }
 0x292   :  { %7154 = vmatpush3.msra.mxu0 %v531_v46  ;;  %7148 = vmatprep.subr.mxu1 %v7737_v2 }
 0x293   :  { %7155 = vmatprep.subr.mxu0 %v7737_v2  ;;  %7149 = vmatpush3.msra.mxu1 %v524_v45 }
 0x294   :  { %7150 = vmatprep.mubr.msk.f32.mxu1 %vm7738_vm2, %v7737_v2  ;;  %7156 = vmatpush3.msra.mxu0 %v530_v47 }
 0x295   :  { %7151 = vmatmul.mubr.msk.f32.vlgmr.msra.gmra.mxu1 %vm560_vm7, %v7991_v39  ;;  %7157 = vmatprep.subr.mxu0 %v7737_v2 }
 0x296   :  { %7164 = vmatprep.subr.mxu1 %v7737_v2  ;;  %7158 = vmatpush3.msra.mxu0 %v529_v48 }
 0x297   :  { %7165 = vmatpush3.msra.mxu1 %v531_v46  ;;  %7159 = vmatprep.subr.mxu0 %v7737_v2 }
 0x298   :  { %7166 = vmatprep.subr.mxu1 %v7737_v2  ;;  %7160 = vmatpush3.msra.mxu0 %v528_v49 }
 0x299   :  { %7161 = vmatprep.mubr.msk.f32.mxu0 %vm7738_vm2, %v7737_v2  ;;  %7167 = vmatpush3.msra.mxu1 %v530_v47 }
 0x29a   :  { %7162 = vmatmul.mubr.msk.f32.vlgmr.msra.gmra.mxu0 %vm560_vm7, %v7978_v35  ;;  %7168 = vmatprep.subr.mxu1 %v7737_v2 }
 0x29b   :  { %7169 = vmatpush3.msra.mxu1 %v529_v48  ;;  %7172 = vmatprep.mubr.msk.f32.mxu1 %vm7738_vm2, %v7737_v2 }
 0x29c   :  { %7170 = vmatprep.subr.mxu1 %v7737_v2  ;;  %7175 = vmatprep.subr.mxu0 %v7737_v2 }
 0x29d   :  { %7171 = vmatpush3.msra.mxu1 %v528_v49  ;;  %7177 = vmatprep.mubr.msk.f32.mxu0 %vm7738_vm2, %v7737_v2 }
 0x29e   :  { %7173 = vmatmul.mubr.msk.f32.vlgmr.msra.gmra.mxu1 %vm560_vm7, %v7991_v39  ;;  %7180 = vmatprep.subr.mxu1 %v7737_v2 }
 0x29f   :  { %7182 = vmatprep.mubr.msk.f32.mxu1 %vm7738_vm2, %v7737_v2 }
 0x33e   :  { %v630_v51 = vpop.f32.mrf.mxu0 }
 0x33f   :  { %v8077_v52 = vadd.f32 %v6643_v50, %v630_v51 }
 0x340   :  { %v7097_v53 = vpop.f32.mrf.mxu0 }
 0x341   :  { %1128 = vrot.lane.b32.xlu0 %v8077_v52, %s7739_s0 }
 0x342   :  { %v703_v54 = vpop.f32.mrf.mxu1 }
 0x343   :  { %v8081_v55 = vadd.f32 %v6643_v50, %v703_v54 }
 0x344   :  { %v7108_v56 = vpop.f32.mrf.mxu1 }
 0x345   :  { %1206 = vrot.lane.b32.xlu1 %v8081_v55, %s7739_s0 }
 0x346   :  { %v773_v58 = vpop.f32.mrf.mxu0 }
 0x347   :  { %v8088_v59 = vadd.f32 %v6644_v57, %v773_v58 }
 0x348   :  { %v7119_v60 = vpop.f32.mrf.mxu0 }
 0x349   :  { %1283 = vrot.lane.b32.xlu1 %v8088_v59, %s7739_s0 }
 0x34b   :  { %v843_v61 = vpop.f32.mrf.mxu1 }
 0x34c   :  { %v8092_v62 = vadd.f32 %v6644_v57, %v843_v61 }
 0x34d   :  { %v7130_v63 = vpop.f32.mrf.mxu1 }
 0x34e   :  { %1360 = vrot.lane.b32.xlu1 %v8092_v62, %s7739_s0 }
 0x350   :  { %v913_v3 = vpop.f32.mrf.mxu0 }
 0x351   :  { %v8099_v5 = vadd.f32 %v6645_v1, %v913_v3 }
 0x352   :  { %v7141_v6 = vpop.f32.mrf.mxu0 }
 0x353   :  { %1437 = vrot.lane.b32.xlu0 %v8099_v5, %s7739_s0 }
 0x355   :  { %v983_v7 = vpop.f32.mrf.mxu1 }
 0x356   :  { %v8103_v8 = vadd.f32 %v6645_v1, %v983_v7 }
 0x357   :  { %v7152_v9 = vpop.f32.mrf.mxu1 }
 0x358   :  { %1514 = vrot.lane.b32.xlu1 %v8103_v8, %s7739_s0 }
 0x35a   :  { %v1053_v11 = vpop.f32.mrf.mxu0 }
 0x35b   :  { %v8110_v12 = vadd.f32 %v6646_v10, %v1053_v11 }
 0x35c   :  { %v7163_v13 = vpop.f32.mrf.mxu0 }
 0x35d   :  { %1591 = vrot.lane.b32.xlu0 %v8110_v12, %s7739_s0 }
 0x35e   :  { %v1123_v14 = vpop.f32.mrf.mxu1 }
 0x35f   :  { %v8114_v15 = vadd.f32 %v6646_v10, %v1123_v14 }
 0x360   :  { %v7174_v16 = vpop.f32.mrf.mxu1 }
 0x361   :  { %1668 = vrot.lane.b32.xlu1 %v8114_v15, %s7739_s0 }
 0x3b3   :  { %v1129_v17 = vpop.permute.xlu0 %1128 }
 0x3b4   :  { %7176 = vmatpush3.xpose.msk.msra.mxu0 %vm1130_vm8, %v1129_v17 }
 0x3b5   :  { %7185 = vmatprep.subr.mxu0 %v7737_v2 }
 0x3b7   :  { %v1207_v18 = vpop.permute.xlu1 %1206  ;;  %7178 = vmatmul.mubr.msk.f32.vlgmr.msra.gmra.mxu0 %vm1130_vm8, %v8077_v52 }
 0x3b8   :  { %7181 = vmatpush3.xpose.msk.msra.mxu1 %vm1130_vm8, %v1207_v18  ;;  %7187 = vmatprep.mubr.msk.f32.mxu0 %vm7738_vm2, %v7737_v2 }
 0x3b9   :  { %7190 = vmatprep.subr.mxu1 %v7737_v2 }
 0x3bb   :  { %7183 = vmatmul.mubr.msk.f32.vlgmr.msra.gmra.mxu1 %vm1130_vm8, %v8081_v55  ;;  %v1284_v19 = vpop.permute.xlu1 %1283 }
 0x3bc   :  { %7186 = vmatpush3.xpose.msk.msra.mxu0 %vm1130_vm8, %v1284_v19  ;;  %7192 = vmatprep.mubr.msk.f32.mxu1 %vm7738_vm2, %v7737_v2 }
 0x3bd   :  { %7195 = vmatprep.subr.mxu0 %v7737_v2 }
 0x3bf   :  { %7188 = vmatmul.mubr.msk.f32.vlgmr.msra.gmra.mxu0 %vm1130_vm8, %v8088_v59 }
 0x3c0   :  { %v1361_v20 = vpop.permute.xlu1 %1360  ;;  %7197 = vmatprep.mubr.msk.f32.mxu0 %vm7738_vm2, %v7737_v2 }
 0x3c1   :  { %7191 = vmatpush3.xpose.msk.msra.mxu1 %vm1130_vm8, %v1361_v20 }
 0x3c2   :  { %7200 = vmatprep.subr.mxu1 %v7737_v2 }
 0x3c4   :  { %7193 = vmatmul.mubr.msk.f32.vlgmr.msra.gmra.mxu1 %vm1130_vm8, %v8092_v62 }
 0x3c5   :  { %v1438_v21 = vpop.permute.xlu0 %1437  ;;  %7202 = vmatprep.mubr.msk.f32.mxu1 %vm7738_vm2, %v7737_v2 }
 0x3c6   :  { %7196 = vmatpush3.xpose.msk.msra.mxu0 %vm1130_vm8, %v1438_v21 }
 0x3c7   :  { %7205 = vmatprep.subr.mxu0 %v7737_v2 }
 0x3c9   :  { %7198 = vmatmul.mubr.msk.f32.vlgmr.msra.gmra.mxu0 %vm1130_vm8, %v8099_v5 }
 0x3ca   :  { %v1515_v24 = vpop.permute.xlu1 %1514  ;;  %7207 = vmatprep.mubr.msk.f32.mxu0 %vm7738_vm2, %v7737_v2 }
 0x3cb   :  { %7201 = vmatpush3.xpose.msk.msra.mxu1 %vm1130_vm8, %v1515_v24 }
 0x3cc   :  { %7210 = vmatprep.subr.mxu1 %v7737_v2 }
 0x3ce   :  { %7203 = vmatmul.mubr.msk.f32.vlgmr.msra.gmra.mxu1 %vm1130_vm8, %v8103_v8 }
 0x3cf   :  { %v1592_v25 = vpop.permute.xlu0 %1591  ;;  %7212 = vmatprep.mubr.msk.f32.mxu1 %vm7738_vm2, %v7737_v2 }
 0x3d0   :  { %7206 = vmatpush3.xpose.msk.msra.mxu0 %vm1130_vm8, %v1592_v25 }
 0x3d1   :  { %7215 = vmatprep.subr.mxu0 %v7737_v2 }
 0x3d3   :  { %v1669_v26 = vpop.permute.xlu1 %1668  ;;  %7208 = vmatmul.mubr.msk.f32.vlgmr.msra.gmra.mxu0 %vm1130_vm8, %v8110_v12 }
 0x3d4   :  { %7211 = vmatpush3.xpose.msk.msra.mxu1 %vm1130_vm8, %v1669_v26  ;;  %7217 = vmatprep.mubr.msk.f32.mxu0 %vm7738_vm2, %v7737_v2 }
 0x3d5   :  { %7220 = vmatprep.subr.mxu1 %v7737_v2 }
 0x3d7   :  { %7213 = vmatmul.mubr.msk.f32.vlgmr.msra.gmra.mxu1 %vm1130_vm8, %v8114_v15 }
 0x3d8   :  { %7222 = vmatprep.mubr.msk.f32.mxu1 %vm7738_vm2, %v7737_v2 }
 0x477   :  { %v1201_v28 = vpop.f32.mrf.mxu0 }
 0x478   :  { %v1744_v29 = vmul.f32 0.35355338, %v1201_v28 }
 0x479   :  { %v7179_v30 = vpop.f32.mrf.mxu0 }
 0x47a   :  { %v1752_v31 = vadd.f32 %v1744_v29, %v8170_v27 }
 0x47b   :  { %v1278_v32 = vpop.f32.mrf.mxu1 }
 0x47c   :  { %v1745_v33 = vmul.f32 0.35355338, %v1278_v32  ;;  %v1761_v34 = vsel %vm1760_vm9, %v1752_v31, -inf }
 0x47d   :  { %v7184_v35 = vpop.f32.mrf.mxu1  ;;  %1762 = vmax.xlane.f32.xlu0 %v1761_v34 }
 0x47e   :  { %v1753_v36 = vadd.f32 %v1745_v33, %v8170_v27 }
 0x47f   :  { %v1355_v37 = vpop.f32.mrf.mxu0 }
 0x480   :  { %v1746_v38 = vmul.f32 0.35355338, %v1355_v37  ;;  %v1764_v22 = vsel %vm1760_vm9, %v1753_v36, -inf }
 0x481   :  { %1765 = vmax.xlane.f32.xlu1 %v1764_v22  ;;  %v7189_v23 = vpop.f32.mrf.mxu0 }
 0x482   :  { %v1754_v39 = vadd.f32 %v1746_v38, %v8170_v27 }
 0x484   :  { %v1432_v40 = vpop.f32.mrf.mxu1  ;;  %v1767_v41 = vsel %vm1760_vm9, %v1754_v39, -inf }
 0x485   :  { %v1747_v42 = vmul.f32 0.35355338, %v1432_v40  ;;  %1768 = vmax.xlane.f32.xlu0 %v1767_v41 }
 0x486   :  { %v7194_v43 = vpop.f32.mrf.mxu1 }
 0x487   :  { %v1755_v44 = vadd.f32 %v1747_v42, %v8170_v27 }
 0x489   :  { %v1509_v45 = vpop.f32.mrf.mxu0  ;;  %v1770_v46 = vsel %vm1760_vm9, %v1755_v44, -inf }
 0x48a   :  { %v1748_v47 = vmul.f32 0.35355338, %v1509_v45  ;;  %1771 = vmax.xlane.f32.xlu0 %v1770_v46 }
 0x48b   :  { %v7199_v48 = vpop.f32.mrf.mxu0 }
 0x48c   :  { %v1756_v49 = vadd.f32 %v1748_v47, %v8170_v27 }
 0x48e   :  { %v1586_v50 = vpop.f32.mrf.mxu1  ;;  %v1773_v51 = vsel %vm1760_vm9, %v1756_v49, -inf }
 0x48f   :  { %v1749_v53 = vmul.f32 0.35355338, %v1586_v50  ;;  %1774 = vmax.xlane.f32.xlu0 %v1773_v51 }
 0x490   :  { %v7204_v54 = vpop.f32.mrf.mxu1 }
 0x491   :  { %v1757_v56 = vadd.f32 %v1749_v53, %v8170_v27 }
 0x493   :  { %v1663_v57 = vpop.f32.mrf.mxu0  ;;  %v1776_v58 = vsel %vm1760_vm9, %v1757_v56, -inf }
 0x494   :  { %v1750_v60 = vmul.f32 0.35355338, %v1663_v57  ;;  %1777 = vmax.xlane.f32.xlu1 %v1776_v58 }
 0x495   :  { %v7209_v61 = vpop.f32.mrf.mxu0 }
 0x496   :  { %v1758_v63 = vadd.f32 %v1750_v60, %v8170_v27 }
 0x497   :  { %v1740_v1 = vpop.f32.mrf.mxu1 }
 0x498   :  { %v1751_v3 = vmul.f32 0.35355338, %v1740_v1  ;;  %v1779_v6 = vsel %vm1760_vm9, %v1758_v63, -inf }
 0x499   :  { %v7214_v7 = vpop.f32.mrf.mxu1  ;;  %1780 = vmax.xlane.f32.xlu0 %v1779_v6 }
 0x49a   :  { %v1759_v9 = vadd.f32 %v1751_v3, %v8170_v27 }
 0x49c   :  { %v1782_v10 = vsel %vm1760_vm9, %v1759_v9, -inf }
 0x49d   :  { %1783 = vmax.xlane.f32.xlu1 %v1782_v10 }
 0x4ae   :  { %1928 = vrot.lane.b32.xlu1 %v8081_v55, %s7740_s2 }
 0x4af   :  { %1849 = vrot.lane.b32.xlu0 %v8077_v52, %s7740_s2 }
 0x4b2   :  { %2005 = vrot.lane.b32.xlu1 %v8088_v59, %s7740_s2 }
 0x4b3   :  { %2159 = vrot.lane.b32.xlu0 %v8099_v5, %s7740_s2 }
 0x4b6   :  { %2082 = vrot.lane.b32.xlu1 %v8092_v62, %s7740_s2 }
 0x4ba   :  { %2236 = vrot.lane.b32.xlu1 %v8103_v8, %s7740_s2 }
 0x506   :  { %v1763_v11 = vpop.xlane.xlu0 %1762 }
 0x507   :  { %v1785_v13 = vsub.f32 %v1752_v31, %v1763_v11 }
 0x509   :  { %v1793_v14 = vmul.f32 1.442695, %v1785_v13 }
 0x50a   :  { %v1766_v16 = vpop.xlane.xlu1 %1765 }
 0x50b   :  { %7657 = vpow2.f32 %v1793_v14  ;;  %v1786_v55 = vsub.f32 %v1753_v36, %v1766_v16 }
 0x50d   :  { %v1795_v17 = vmul.f32 1.442695, %v1786_v55 }
 0x50e   :  { %v1769_v52 = vpop.xlane.xlu0 %1768 }
 0x50f   :  { %7659 = vpow2.f32 %v1795_v17  ;;  %v1787_v18 = vsub.f32 %v1754_v39, %v1769_v52 }
 0x511   :  { %v1797_v59 = vmul.f32 1.442695, %v1787_v18 }
 0x513   :  { %7661 = vpow2.f32 %v1797_v59  ;;  %v1772_v19 = vpop.xlane.xlu0 %1771 }
 0x514   :  { %v1788_v5 = vsub.f32 %v1755_v44, %v1772_v19 }
 0x516   :  { %v1799_v20 = vmul.f32 1.442695, %v1788_v5 }
 0x518   :  { %v8200_v21 = vpop.eup %7657  ;;  %7663 = vpow2.f32 %v1799_v20  ;;  %v1775_v62 = vpop.xlane.xlu0 %1774 }
 0x519   :  { %v1789_v8 = vsub.f32 %v1756_v49, %v1775_v62  ;;  %v1809_v24 = vsel %vm1760_vm9, %v8200_v21, 0.0  ;;  %v2468_v62 = vld [vmem:[%s8960_s15 + $0x8] sm:$0xff] }
 0x51a   :  { %1810 = vadd.xlane.f32.xlu0 %v1809_v24 }
 0x51b   :  { %v1801_v25 = vmul.f32 1.442695, %v1789_v8 }
 0x51c   :  { %v8204_v26 = vpop.eup %7659 }
 0x51d   :  { %7665 = vpow2.f32 %v1801_v25  ;;  %v1778_v28 = vpop.xlane.xlu1 %1777  ;;  %v1812_v29 = vsel %vm1760_vm9, %v8204_v26, 0.0 }
 0x51e   :  { %v1790_v30 = vsub.f32 %v1757_v56, %v1778_v28  ;;  %1813 = vadd.xlane.f32.xlu1 %v1812_v29  ;;  %v2469_v28 = vld [vmem:[%s8960_s15 + $0x10] sm:$0xff] }
 0x520   :  { %v8208_v31 = vpop.eup %7661  ;;  %v1803_v32 = vmul.f32 1.442695, %v1790_v30 }
 0x521   :  { %v1815_v33 = vsel %vm1760_vm9, %v8208_v31, 0.0 }
 0x522   :  { %7667 = vpow2.f32 %v1803_v32  ;;  %v1781_v34 = vpop.xlane.xlu0 %1780  ;;  %1816 = vadd.xlane.f32.xlu0 %v1815_v33  ;;  %v2470_v33 = vld [vmem:[%s8960_s15 + $0x18] sm:$0xff] }
 0x523   :  { %v1791_v35 = vsub.f32 %v1758_v63, %v1781_v34 }
 0x525   :  { %v8212_v36 = vpop.eup %7663  ;;  %v1805_v37 = vmul.f32 1.442695, %v1791_v35 }
 0x526   :  { %v1784_v38 = vpop.xlane.xlu1 %1783  ;;  %v1850_v22 = vpop.permute.xlu0 %1849  ;;  %v1818_v23 = vsel %vm1760_vm9, %v8212_v36, 0.0 }
 0x527   :  { %7669 = vpow2.f32 %v1805_v37  ;;  %v1792_v39 = vsub.f32 %v1759_v9, %v1784_v38  ;;  %7216 = vmatpush3.msk.msra.mxu0 %vm1855_vm10, %v1850_v22  ;;  %1819 = vadd.xlane.f32.xlu1 %v1818_v23 }
 0x528   :  { %7225 = vmatprep.subr.mxu0 %v7737_v2 }
 0x529   :  { %v1807_v40 = vmul.f32 1.442695, %v1792_v39 }
 0x52a   :  { %v8218_v41 = vpop.eup %7665  ;;  %v1929_v42 = vpop.permute.xlu1 %1928 }
 0x52b   :  { %7671 = vpow2.f32 %v1807_v40  ;;  %7221 = vmatpush3.msk.msra.mxu1 %vm1855_vm10, %v1929_v42  ;;  %v1821_v43 = vsel %vm1760_vm9, %v8218_v41, 0.0  ;;  %v2160_v53 = vpop.permute.xlu0 %2159 }
 0x52c   :  { %1822 = vadd.xlane.f32.xlu0 %v1821_v43  ;;  %7230 = vmatprep.subr.mxu1 %v7737_v2 }
 0x52e   :  { %v2006_v50 = vpop.permute.xlu1 %2005 }
 0x52f   :  { %v8224_v44 = vpop.eup %7667 }
 0x530   :  { %v1824_v45 = vsel %vm1760_vm9, %v8224_v44, 0.0 }
 0x531   :  { %1825 = vadd.xlane.f32.xlu1 %v1824_v45 }
 0x532   :  { %v2083_v51 = vpop.permute.xlu1 %2082 }
 0x534   :  { %v8228_v46 = vpop.eup %7669 }
 0x535   :  { %v1827_v47 = vsel %vm1760_vm9, %v8228_v46, 0.0 }
 0x536   :  { %1828 = vadd.xlane.f32.xlu0 %v1827_v47  ;;  %v2237_v54 = vpop.permute.xlu1 %2236 }
 0x538   :  { %v8232_v48 = vpop.eup %7671 }
 0x539   :  { %v1830_v49 = vsel %vm1760_vm9, %v8232_v48, 0.0 }
 0x53a   :  { %1831 = vadd.xlane.f32.xlu1 %v1830_v49 }
 0x54b   :  { %2390 = vrot.lane.b32.xlu1 %v8114_v15, %s7740_s2 }
 0x54c   :  { %2313 = vrot.lane.b32.xlu0 %v8110_v12, %s7740_s2 }
 0x5a3   :  { %v1811_v56 = vpop.xlane.xlu0 %1810 }
 0x5a4   :  { %7673 = vrcp.f32 %v1811_v56 }
 0x5a7   :  { %v1814_v57 = vpop.xlane.xlu1 %1813 }
 0x5a8   :  { %7675 = vrcp.f32 %v1814_v57 }
 0x5ab   :  { %v1817_v58 = vpop.xlane.xlu0 %1816 }
 0x5ac   :  { %7677 = vrcp.f32 %v1817_v58 }
 0x5b0   :  { %v1820_v60 = vpop.xlane.xlu1 %1819 }
 0x5b1   :  { %v7674_v61 = vpop.eup %7673  ;;  %7679 = vrcp.f32 %v1820_v60  ;;  %v6695_v60 = vld [vmem:[%s8961_s16] ss:$0 sm:$0xff] }
 0x5b2   :  { %v1834_v63 = vmul.f32 %v7674_v61, %v8200_v21  ;;  %v2467_v21 = vld [vmem:[%s8960_s15] sm:$0xff] }
 0x5b4   :  { %7218 = vmatmul.mubr.msk.f32.vlgmr.msra.gmra.mxu0 %vm1851_vm11, %v1834_v63 }
 0x5b5   :  { %v7676_v15 = vpop.eup %7675  ;;  %v1823_v12 = vpop.xlane.xlu0 %1822  ;;  %7226 = vmatpush3.msk.msra.mxu0 %vm1855_vm10, %v2006_v50  ;;  %7227 = vmatprep.mubr.msk.f32.mxu0 %vm7738_vm2, %v7737_v2 }
 0x5b6   :  { %7681 = vrcp.f32 %v1823_v12  ;;  %v1836_v1 = vmul.f32 %v7676_v15, %v8204_v26  ;;  %7235 = vmatprep.subr.mxu0 %v7737_v2 }
 0x5b8   :  { %7223 = vmatmul.mubr.msk.f32.vlgmr.msra.gmra.mxu1 %vm1851_vm11, %v1836_v1 }
 0x5b9   :  { %v7678_v3 = vpop.eup %7677  ;;  %7231 = vmatpush3.msk.msra.mxu1 %vm1855_vm10, %v2083_v51  ;;  %7232 = vmatprep.mubr.msk.f32.mxu1 %vm7738_vm2, %v7737_v2 }
 0x5ba   :  { %v1826_v6 = vpop.xlane.xlu1 %1825  ;;  %v1838_v7 = vmul.f32 %v7678_v3, %v8208_v31  ;;  %7240 = vmatprep.subr.mxu1 %v7737_v2 }
 0x5bb   :  { %7683 = vrcp.f32 %v1826_v6 }
 0x5bc   :  { %7228 = vmatmul.mubr.msk.f32.vlgmr.msra.gmra.mxu0 %vm1851_vm11, %v1838_v7 }
 0x5bd   :  { %7236 = vmatpush3.msk.msra.mxu0 %vm1855_vm10, %v2160_v53  ;;  %7237 = vmatprep.mubr.msk.f32.mxu0 %vm7738_vm2, %v7737_v2 }
 0x5be   :  { %v7680_v9 = vpop.eup %7679  ;;  %7245 = vmatprep.subr.mxu0 %v7737_v2 }
 0x5bf   :  { %v1829_v10 = vpop.xlane.xlu0 %1828  ;;  %v1840_v11 = vmul.f32 %v7680_v9, %v8212_v36 }
 0x5c0   :  { %7685 = vrcp.f32 %v1829_v10 }
 0x5c1   :  { %7233 = vmatmul.mubr.msk.f32.vlgmr.msra.gmra.mxu1 %vm1851_vm11, %v1840_v11 }
 0x5c2   :  { %7241 = vmatpush3.msk.msra.mxu1 %vm1855_vm10, %v2237_v54  ;;  %7242 = vmatprep.mubr.msk.f32.mxu1 %vm7738_vm2, %v7737_v2 }
 0x5c3   :  { %v7682_v13 = vpop.eup %7681  ;;  %v1832_v14 = vpop.xlane.xlu1 %1831  ;;  %7250 = vmatprep.subr.mxu1 %v7737_v2 }
 0x5c4   :  { %7687 = vrcp.f32 %v1832_v14  ;;  %v1842_v16 = vmul.f32 %v7682_v13, %v8218_v41  ;;  %v2314_v55 = vpop.permute.xlu0 %2313 }
 0x5c6   :  { %7238 = vmatmul.mubr.msk.f32.vlgmr.msra.gmra.mxu0 %vm1851_vm11, %v1842_v16 }
 0x5c7   :  { %7246 = vmatpush3.msk.msra.mxu0 %vm1855_vm10, %v2314_v55  ;;  %7247 = vmatprep.mubr.msk.f32.mxu0 %vm7738_vm2, %v7737_v2  ;;  %v2391_v18 = vpop.permute.xlu1 %2390 }
 0x5c8   :  { %v7684_v17 = vpop.eup %7683  ;;  %7255 = vmatprep.subr.mxu0 %v7737_v2 }
 0x5c9   :  { %v1844_v52 = vmul.f32 %v7684_v17, %v8224_v44 }
 0x5cb   :  { %7243 = vmatmul.mubr.msk.f32.vlgmr.msra.gmra.mxu1 %vm1851_vm11, %v1844_v52 }
 0x5cc   :  { %7251 = vmatpush3.msk.msra.mxu1 %vm1855_vm10, %v2391_v18  ;;  %7252 = vmatprep.mubr.msk.f32.mxu1 %vm7738_vm2, %v7737_v2 }
 0x5cd   :  { %v7686_v59 = vpop.eup %7685  ;;  %7260 = vmatprep.subr.mxu1 %v7737_v2 }
 0x5ce   :  { %v1846_v19 = vmul.f32 %v7686_v59, %v8228_v46 }
 0x5d0   :  { %7248 = vmatmul.mubr.msk.f32.vlgmr.msra.gmra.mxu0 %vm1851_vm11, %v1846_v19  ;;  %v3119_v19 = vld [vmem:[%s8962_s17 + $0x18] sm:$0xff] }
 0x5d1   :  { %v7688_v5 = vpop.eup %7687  ;;  %7257 = vmatprep.mubr.msk.f32.mxu0 %vm7738_vm2, %v7737_v2  ;;  %7256 = vmatpush3.msra.mxu0 %v2467_v21 }
 0x5d2   :  { %v1848_v20 = vmul.f32 %v7688_v5, %v8232_v48  ;;  %7265 = vmatprep.subr.mxu0 %v7737_v2  ;;  %v3118_v5 = vld [vmem:[%s8962_s17 + $0x10] sm:$0xff] }
 0x5d4   :  { %7253 = vmatmul.mubr.msk.f32.vlgmr.msra.gmra.mxu1 %vm1851_vm11, %v1848_v20  ;;  %v3117_v20 = vld [vmem:[%s8962_s17 + $0x8] sm:$0xff] }
 0x5d5   :  { %7262 = vmatprep.mubr.msk.f32.mxu1 %vm7738_vm2, %v7737_v2  ;;  %7261 = vmatpush3.msra.mxu1 %v2467_v21  ;;  %v3116_v21 = vld [vmem:[%s8962_s17] sm:$0xff] }
 0x5d6   :  { %7270 = vmatprep.subr.mxu1 %v7737_v2 }
 0x674   :  { %v1924_v8 = vpop.f32.mrf.mxu0 }
 0x675   :  { %7258 = vmatmul.mubr.msk.f32.vlgmr.msra.gmra.mxu0 %vm1130_vm8, %v1924_v8 }
 0x676   :  { %v7219_v24 = vpop.f32.mrf.mxu0  ;;  %7266 = vmatpush3.msra.mxu0 %v2468_v62  ;;  %7267 = vmatprep.mubr.msk.f32.mxu0 %vm7738_vm2, %v7737_v2 }
 0x677   :  { %7275 = vmatprep.subr.mxu0 %v7737_v2 }
 0x678   :  { %v2001_v25 = vpop.f32.mrf.mxu1 }
 0x679   :  { %7263 = vmatmul.mubr.msk.f32.vlgmr.msra.gmra.mxu1 %vm1130_vm8, %v2001_v25 }
 0x67a   :  { %v7224_v26 = vpop.f32.mrf.mxu1  ;;  %7271 = vmatpush3.msra.mxu1 %v2468_v62  ;;  %7272 = vmatprep.mubr.msk.f32.mxu1 %vm7738_vm2, %v7737_v2 }
 0x67b   :  { %7280 = vmatprep.subr.mxu1 %v7737_v2 }
 0x67c   :  { %v2078_v29 = vpop.f32.mrf.mxu0 }
 0x67d   :  { %7268 = vmatmul.mubr.msk.f32.vlgmr.msra.gmra.mxu0 %vm1130_vm8, %v2078_v29 }
 0x67e   :  { %v7229_v30 = vpop.f32.mrf.mxu0  ;;  %7276 = vmatpush3.msra.mxu0 %v2469_v28  ;;  %7277 = vmatprep.mubr.msk.f32.mxu0 %vm7738_vm2, %v7737_v2 }
 0x67f   :  { %7285 = vmatprep.subr.mxu0 %v7737_v2  ;;  %v6696_v30 = vld [vmem:[%s8963_s11] ss:$0 sm:$0xff] }
 0x681   :  { %v2155_v31 = vpop.f32.mrf.mxu1 }
 0x682   :  { %7273 = vmatmul.mubr.msk.f32.vlgmr.msra.gmra.mxu1 %vm1130_vm8, %v2155_v31 }
 0x683   :  { %v7234_v32 = vpop.f32.mrf.mxu1  ;;  %7281 = vmatpush3.msra.mxu1 %v2469_v28  ;;  %7282 = vmatprep.mubr.msk.f32.mxu1 %vm7738_vm2, %v7737_v2 }
 0x684   :  { %7290 = vmatprep.subr.mxu1 %v7737_v2  ;;  %v6697_v32 = vld [vmem:[%s8964_s12] ss:$0 sm:$0xff] }
 0x686   :  { %v2232_v34 = vpop.f32.mrf.mxu0 }
 0x687   :  { %7278 = vmatmul.mubr.msk.f32.vlgmr.msra.gmra.mxu0 %vm1130_vm8, %v2232_v34 }
 0x688   :  { %v7239_v35 = vpop.f32.mrf.mxu0  ;;  %7286 = vmatpush3.msra.mxu0 %v2470_v33  ;;  %7287 = vmatprep.mubr.msk.f32.mxu0 %vm7738_vm2, %v7737_v2 }
 0x689   :  { %7295 = vmatprep.subr.mxu0 %v7737_v2 }
 0x68b   :  { %v2309_v36 = vpop.f32.mrf.mxu1 }
 0x68c   :  { %7283 = vmatmul.mubr.msk.f32.vlgmr.msra.gmra.mxu1 %vm1130_vm8, %v2309_v36 }
 0x68d   :  { %v7244_v37 = vpop.f32.mrf.mxu1  ;;  %7291 = vmatpush3.msra.mxu1 %v2470_v33  ;;  %7292 = vmatprep.mubr.msk.f32.mxu1 %vm7738_vm2, %v7737_v2 }
 0x68e   :  { %7306 = vmatprep.subr.mxu1 %v7737_v2  ;;  %v3282_v37 = vld [vmem:[%s8965_s19 + $0x38] sm:$0xff] }
 0x690   :  { %v2386_v38 = vpop.f32.mrf.mxu0 }
 0x691   :  { %7288 = vmatmul.mubr.msk.f32.vlgmr.msra.gmra.mxu0 %vm1130_vm8, %v2386_v38 }
 0x692   :  { %v7249_v22 = vpop.f32.mrf.mxu0  ;;  %7303 = vmatprep.mubr.msk.f32.mxu0 %vm7738_vm2, %v7737_v2  ;;  %7296 = vmatpush3.msra.mxu0 %v3119_v19 }
 0x693   :  { %7297 = vmatprep.subr.mxu0 %v7737_v2  ;;  %v3281_v22 = vld [vmem:[%s8965_s19 + $0x30] sm:$0xff] }
 0x694   :  { %v2463_v23 = vpop.f32.mrf.mxu1  ;;  %7298 = vmatpush3.msra.mxu0 %v3118_v5 }
 0x695   :  { %7293 = vmatmul.mubr.msk.f32.vlgmr.msra.gmra.mxu1 %vm1130_vm8, %v2463_v23  ;;  %7299 = vmatprep.subr.mxu0 %v7737_v2 }
 0x696   :  { %v7254_v39 = vpop.f32.mrf.mxu1  ;;  %7314 = vmatprep.mubr.msk.f32.mxu1 %vm7738_vm2, %v7737_v2  ;;  %7307 = vmatpush3.msra.mxu1 %v3119_v19 }
 0x697   :  { %7308 = vmatprep.subr.mxu1 %v7737_v2  ;;  %7300 = vmatpush3.msra.mxu0 %v3117_v20  ;;  %v3280_v39 = vld [vmem:[%s8965_s19 + $0x28] sm:$0xff] }
 0x698   :  { %7309 = vmatpush3.msra.mxu1 %v3118_v5  ;;  %7301 = vmatprep.subr.mxu0 %v7737_v2 }
 0x699   :  { %7310 = vmatprep.subr.mxu1 %v7737_v2  ;;  %7302 = vmatpush3.msra.mxu0 %v3116_v21 }
 0x69a   :  { %7311 = vmatpush3.msra.mxu1 %v3117_v20  ;;  %7317 = vmatprep.subr.mxu0 %v7737_v2 }
 0x69b   :  { %7312 = vmatprep.subr.mxu1 %v7737_v2 }
 0x69c   :  { %7313 = vmatpush3.msra.mxu1 %v3116_v21 }
 0x69d   :  { %7336 = vmatprep.subr.mxu1 %v7737_v2 }
 0x735   :  { %v2540_v40 = vpop.f32.mrf.mxu0 }
 0x737   :  { %v7259_v41 = vpop.f32.mrf.mxu0 }
 0x738   :  { %v3278_v41 = vld [vmem:[%s8965_s19 + $0x18] sm:$0xff] }
 0x739   :  { %v2613_v42 = vpop.f32.mrf.mxu1 }
 0x73b   :  { %v7264_v43 = vpop.f32.mrf.mxu1 }
 0x73c   :  { %v3276_v43 = vld [vmem:[%s8965_s19 + $0x8] sm:$0xff] }
 0x73d   :  { %v2686_v44 = vpop.f32.mrf.mxu0 }
 0x73e   :  { %v3055_v51 = vadd.f32 %v2686_v44, %v2540_v40  ;;  %v3279_v40 = vld [vmem:[%s8965_s19 + $0x20] sm:$0xff] }
 0x73f   :  { %v7269_v45 = vpop.f32.mrf.mxu0  ;;  %v3275_v44 = vld [vmem:[%s8965_s19] sm:$0xff] }
 0x740   :  { %v6698_v45 = vld [vmem:[%s8966_s18] ss:$0 sm:$0xff] }
 0x742   :  { %v2759_v46 = vpop.f32.mrf.mxu1 }
 0x743   :  { %v3056_v57 = vadd.f32 %v2759_v46, %v2613_v42  ;;  %v3277_v42 = vld [vmem:[%s8965_s19 + $0x10] sm:$0xff] }
 0x744   :  { %v7274_v47 = vpop.f32.mrf.mxu1 }
 0x747   :  { %v2832_v48 = vpop.f32.mrf.mxu0 }
 0x748   :  { %v3057_v54 = vadd.f32 %v3055_v51, %v2832_v48 }
 0x749   :  { %v7279_v49 = vpop.f32.mrf.mxu0 }
 0x74c   :  { %v2905_v50 = vpop.f32.mrf.mxu1 }
 0x74d   :  { %v3058_v63 = vadd.f32 %v3056_v57, %v2905_v50  ;;  %v6703_v57 = vld [vmem:[%s8967_s20] ss:$0 sm:$0xff] }
 0x74e   :  { %v7284_v53 = vpop.f32.mrf.mxu1 }
 0x751   :  { %v2978_v56 = vpop.f32.mrf.mxu0 }
 0x752   :  { %v3059_v58 = vadd.f32 %v3057_v54, %v2978_v56 }
 0x753   :  { %v7289_v61 = vpop.f32.mrf.mxu0 }
 0x754   :  { %v3061_v15 = vadd.f32 %v3059_v58, %v7940_v0 }
 0x755   :  { %v3051_v12 = vpop.f32.mrf.mxu1 }
 0x756   :  { %v8332_v1 = vadd.f32 %v6695_v60, %v3061_v15  ;;  %v3060_v3 = vadd.f32 %v3058_v63, %v3051_v12 }
 0x757   :  { %v7294_v6 = vpop.f32.mrf.mxu1 }
 0x758   :  { %v3062_v7 = vadd.f32 %v3060_v3, %v7944_v4  ;;  %v3074_v9 = vsel %vm84_vm0, %v8332_v1, 0.0 }
 0x759   :  { %3075 = vadd.xlane.f32.xlu0 %v3074_v9 }
 0x75a   :  { %v8337_v10 = vadd.f32 %v6695_v60, %v3062_v7 }
 0x75c   :  { %v3077_v11 = vsel %vm84_vm0, %v8337_v10, 0.0 }
 0x75d   :  { %3078 = vadd.xlane.f32.xlu1 %v3077_v11 }
 0x7e2   :  { %v3076_v13 = vpop.xlane.xlu0 %3075 }
 0x7e3   :  { %v3080_v14 = vmul.f32 0.03125, %v3076_v13 }
 0x7e5   :  { %v3082_v0 = vsub.f32 %v8332_v1, %v3080_v14 }
 0x7e6   :  { %v3079_v16 = vpop.xlane.xlu1 %3078 }
 0x7e7   :  { %v3081_v55 = vmul.f32 0.03125, %v3079_v16  ;;  %v3084_v17 = vmul.f32 %v3082_v0, %v3082_v0 }
 0x7e9   :  { %v3083_v52 = vsub.f32 %v8337_v10, %v3081_v55  ;;  %v3086_v4 = vsel %vm84_vm0, %v3084_v17, 0.0 }
 0x7ea   :  { %3087 = vadd.xlane.f32.xlu0 %v3086_v4  ;;  %v6710_v4 = vld [vmem:[%s8996_s7 + $0x90] sm:$0xff] }
 0x7eb   :  { %v3085_v18 = vmul.f32 %v3083_v52, %v3083_v52 }
 0x7ed   :  { %v3089_v59 = vsel %vm84_vm0, %v3085_v18, 0.0  ;;  %v6709_v18 = vld [vmem:[%s8996_s7 + $0x88] sm:$0xff] }
 0x7ee   :  { %3090 = vadd.xlane.f32.xlu0 %v3089_v59  ;;  %v6708_v59 = vld [vmem:[%s8996_s7 + $0x80] sm:$0xff] }
 0x873   :  { %v3088_v62 = vpop.xlane.xlu0 %3087 }
 0x874   :  { %v3092_v8 = vmul.f32 0.03125, %v3088_v62 }
 0x876   :  { %v3094_v24 = vadd.f32 1e-05, %v3092_v8 }
 0x877   :  { %v3091_v25 = vpop.xlane.xlu0 %3090 }
 0x878   :  { %7689 = vrsqrt.f32 %v3094_v24  ;;  %v3093_v26 = vmul.f32 0.03125, %v3091_v25  ;;  %v6706_v25 = vld [vmem:[%s8957_s9 + $0x1] ss:$0 sm:$0xff] }
 0x87a   :  { %v3095_v28 = vadd.f32 1e-05, %v3093_v26 }
 0x87c   :  { %7691 = vrsqrt.f32 %v3095_v28  ;;  %v6707_v28 = vld [vmem:[%s8958_s10 + $0x1] ss:$0 sm:$0xff] }
 0x885   :  { %v7690_v29 = vpop.eup %7689 }
 0x886   :  { %v3098_v31 = vmul.f32 %v7690_v29, %v3082_v0 }
 0x888   :  { %v3106_v33 = vmul.f32 %v6696_v30, %v3098_v31 }
 0x889   :  { %v7692_v34 = vpop.eup %7691 }
 0x88a   :  { %v3099_v35 = vmul.f32 %v7692_v34, %v3083_v52  ;;  %v3114_v36 = vadd.f32 %v6697_v32, %v3106_v33  ;;  %v6711_v52 = vld [vmem:[%s8996_s7 + $0x98] sm:$0xff]  ;;  %v6714_v34 = vld [vmem:[%s8996_s7 + $0xb0] sm:$0xff] }
 0x88b   :  { %v6715_v33 = vld [vmem:[%s8996_s7 + $0xb8] sm:$0xff] }
 0x88c   :  { %7304 = vmatmul.mubr.msk.f32.vlgmr.msra.gmra.mxu0 %vm560_vm7, %v3114_v36  ;;  %v3107_v38 = vmul.f32 %v6696_v30, %v3099_v35 }
 0x88d   :  { %7318 = vmatpush3.msra.mxu0 %v3282_v37  ;;  %7333 = vmatprep.mubr.msk.f32.mxu0 %vm7738_vm2, %v7737_v2 }
 0x88e   :  { %v3115_v23 = vadd.f32 %v6697_v32, %v3107_v38  ;;  %7319 = vmatprep.subr.mxu0 %v7737_v2  ;;  %v6712_v38 = vld [vmem:[%s8996_s7 + $0xa0] sm:$0xff] }
 0x88f   :  { %7320 = vmatpush3.msra.mxu0 %v3281_v22 }
 0x890   :  { %7315 = vmatmul.mubr.msk.f32.vlgmr.msra.gmra.mxu1 %vm560_vm7, %v3115_v23  ;;  %7321 = vmatprep.subr.mxu0 %v7737_v2  ;;  %v6718_v23 = vld [vmem:[%s8996_s7 + $0xd0] sm:$0xff] }
 0x891   :  { %7322 = vmatpush3.msra.mxu0 %v3280_v39  ;;  %7337 = vmatpush3.msra.mxu1 %v3282_v37  ;;  %v6713_v37 = vld [vmem:[%s8996_s7 + $0xa8] sm:$0xff] }
 0x892   :  { %7323 = vmatprep.subr.mxu0 %v7737_v2  ;;  %7338 = vmatprep.subr.mxu1 %v7737_v2 }
 0x893   :  { %7324 = vmatpush3.msra.mxu0 %v3279_v40  ;;  %7339 = vmatpush3.msra.mxu1 %v3281_v22  ;;  %v6719_v22 = vld [vmem:[%s8996_s7 + $0xd8] sm:$0xff] }
 0x894   :  { %7325 = vmatprep.subr.mxu0 %v7737_v2  ;;  %7340 = vmatprep.subr.mxu1 %v7737_v2 }
 0x895   :  { %7326 = vmatpush3.msra.mxu0 %v3278_v41  ;;  %7341 = vmatpush3.msra.mxu1 %v3280_v39  ;;  %v6717_v39 = vld [vmem:[%s8996_s7 + $0xc8] sm:$0xff] }
 0x896   :  { %7327 = vmatprep.subr.mxu0 %v7737_v2  ;;  %7342 = vmatprep.subr.mxu1 %v7737_v2 }
 0x897   :  { %7343 = vmatpush3.msra.mxu1 %v3279_v40  ;;  %7352 = vmatprep.mubr.msk.f32.mxu1 %vm7738_vm2, %v7737_v2  ;;  %v6716_v40 = vld [vmem:[%s8996_s7 + $0xc0] sm:$0xff] }
 0x898   :  { %7344 = vmatprep.subr.mxu1 %v7737_v2  ;;  %7328 = vmatpush3.msra.mxu0 %v3277_v42 }
 0x899   :  { %7345 = vmatpush3.msra.mxu1 %v3278_v41  ;;  %7329 = vmatprep.subr.mxu0 %v7737_v2  ;;  %v6723_v41 = vld [vmem:[%s8996_s7 + $0xf8] sm:$0xff] }
 0x89a   :  { %7346 = vmatprep.subr.mxu1 %v7737_v2  ;;  %7330 = vmatpush3.msra.mxu0 %v3276_v43 }
 0x89b   :  { %7347 = vmatpush3.msra.mxu1 %v3277_v42  ;;  %7331 = vmatprep.subr.mxu0 %v7737_v2  ;;  %v6722_v42 = vld [vmem:[%s8996_s7 + $0xf0] sm:$0xff] }
 0x89c   :  { %7348 = vmatprep.subr.mxu1 %v7737_v2  ;;  %7332 = vmatpush3.msra.mxu0 %v3275_v44 }
 0x89d   :  { %7349 = vmatpush3.msra.mxu1 %v3276_v43  ;;  %7355 = vmatprep.subr.mxu0 %v7737_v2  ;;  %v6721_v43 = vld [vmem:[%s8996_s7 + $0xe8] sm:$0xff] }
 0x89e   :  { %7350 = vmatprep.subr.mxu1 %v7737_v2 }
 0x89f   :  { %7351 = vmatpush3.msra.mxu1 %v3275_v44  ;;  %v6720_v44 = vld [vmem:[%s8996_s7 + $0xe0] sm:$0xff] }
 0x8a0   :  { %7366 = vmatprep.subr.mxu1 %v7737_v2 }
 0x94c   :  { %v3196_v46 = vpop.f32.mrf.mxu0 }
 0x94d   :  { %v3197_v47 = vadd.f32 %v6698_v45, %v3196_v46 }
 0x94e   :  { %v7305_v48 = vpop.f32.mrf.mxu0 }
 0x94f   :  { %v3273_v49 = vmax.f32 %v3197_v47, 0.0 }
 0x950   :  { %v3269_v50 = vpop.f32.mrf.mxu1 }
 0x951   :  { %v3270_v51 = vadd.f32 %v6698_v45, %v3269_v50  ;;  %7334 = vmatmul.mubr.msk.f32.vlgmr.msra.gmra.mxu0 %vm3283_vm12, %v3273_v49  ;;  %v6728_v45 = vld [vmem:[%s8959_s14 + $0x4] ss:$0 sm:$0xff] }
 0x952   :  { %v7316_v53 = vpop.f32.mrf.mxu1  ;;  %7363 = vmatprep.mubr.msk.f32.mxu0 %vm7738_vm2, %v7737_v2  ;;  %7356 = vmatpush3.msra.mxu0 %v6711_v52 }
 0x953   :  { %v3274_v54 = vmax.f32 %v3270_v51, 0.0  ;;  %7357 = vmatprep.subr.mxu0 %v7737_v2  ;;  %v6729_v53 = vld [vmem:[%s8959_s14 + $0x5] ss:$0 sm:$0xff] }
 0x954   :  { %7358 = vmatpush3.msra.mxu0 %v6710_v4 }
 0x955   :  { %7353 = vmatmul.mubr.msk.f32.vlgmr.msra.gmra.mxu1 %vm3283_vm12, %v3274_v54  ;;  %7359 = vmatprep.subr.mxu0 %v7737_v2 }
 0x956   :  { %7374 = vmatprep.mubr.msk.f32.mxu1 %vm7738_vm2, %v7737_v2  ;;  %7367 = vmatpush3.msra.mxu1 %v6711_v52 }
 0x957   :  { %7368 = vmatprep.subr.mxu1 %v7737_v2  ;;  %7360 = vmatpush3.msra.mxu0 %v6709_v18 }
 0x958   :  { %7369 = vmatpush3.msra.mxu1 %v6710_v4  ;;  %7361 = vmatprep.subr.mxu0 %v7737_v2 }
 0x959   :  { %7370 = vmatprep.subr.mxu1 %v7737_v2  ;;  %7362 = vmatpush3.msra.mxu0 %v6708_v59 }
 0x95a   :  { %7371 = vmatpush3.msra.mxu1 %v6709_v18  ;;  %7377 = vmatprep.subr.mxu0 %v7737_v2 }
 0x95b   :  { %7372 = vmatprep.subr.mxu1 %v7737_v2 }
 0x95c   :  { %7373 = vmatpush3.msra.mxu1 %v6708_v59 }
 0x95d   :  { %7388 = vmatprep.subr.mxu1 %v7737_v2 }
 0xa11   :  { %v3353_v56 = vpop.f32.mrf.mxu0 }
 0xa12   :  { %v3430_v58 = vadd.f32 %v3353_v56, %v8332_v1 }
 0xa13   :  { %v7335_v60 = vpop.f32.mrf.mxu0 }
 0xa14   :  { %v8430_v61 = vadd.f32 %v6703_v57, %v3430_v58 }
 0xa15   :  { %v3426_v63 = vpop.f32.mrf.mxu1 }
 0xa16   :  { %v3431_v15 = vadd.f32 %v3426_v63, %v8337_v10  ;;  %v3445_v12 = vsel %vm84_vm0, %v8430_v61, 0.0 }
 0xa17   :  { %v7354_v3 = vpop.f32.mrf.mxu1  ;;  %3446 = vadd.xlane.f32.xlu0 %v3445_v12 }
 0xa18   :  { %v8435_v6 = vadd.f32 %v6703_v57, %v3431_v15  ;;  %v6730_v15 = vld [vmem:[%s8959_s14 + $0x6] ss:$0 sm:$0xff] }
 0xa1a   :  { %v3448_v7 = vsel %vm84_vm0, %v8435_v6, 0.0 }
 0xa1b   :  { %3449 = vadd.xlane.f32.xlu1 %v3448_v7 }
 0xaa0   :  { %v3447_v9 = vpop.xlane.xlu0 %3446 }
 0xaa1   :  { %v3451_v11 = vmul.f32 0.03125, %v3447_v9 }
 0xaa3   :  { %v3453_v1 = vsub.f32 %v8430_v61, %v3451_v11 }
 0xaa4   :  { %v3450_v13 = vpop.xlane.xlu1 %3449 }
 0xaa5   :  { %v3452_v14 = vmul.f32 0.03125, %v3450_v13  ;;  %v3455_v0 = vmul.f32 %v3453_v1, %v3453_v1  ;;  %v6731_v13 = vld [vmem:[%s8959_s14 + $0x7] ss:$0 sm:$0xff] }
 0xaa7   :  { %v3454_v10 = vsub.f32 %v8435_v6, %v3452_v14  ;;  %v3457_v16 = vsel %vm84_vm0, %v3455_v0, 0.0 }
 0xaa8   :  { %3458 = vadd.xlane.f32.xlu0 %v3457_v16 }
 0xaa9   :  { %v3456_v55 = vmul.f32 %v3454_v10, %v3454_v10 }
 0xaab   :  { %v3460_v17 = vsel %vm84_vm0, %v3456_v55, 0.0 }
 0xaac   :  { %3461 = vadd.xlane.f32.xlu1 %v3460_v17 }
 0xb31   :  { %v3459_v19 = vpop.xlane.xlu0 %3458 }
 0xb32   :  { %v3463_v5 = vmul.f32 0.03125, %v3459_v19 }
 0xb34   :  { %v3465_v20 = vadd.f32 1e-05, %v3463_v5 }
 0xb35   :  { %v3462_v21 = vpop.xlane.xlu1 %3461 }
 0xb36   :  { %7693 = vrsqrt.f32 %v3465_v20  ;;  %v3464_v62 = vmul.f32 0.03125, %v3462_v21 }
 0xb38   :  { %v3466_v8 = vadd.f32 1e-05, %v3464_v62 }
 0xb3a   :  { %7695 = vrsqrt.f32 %v3466_v8 }
 0xb43   :  { %v7694_v24 = vpop.eup %7693 }
 0xb44   :  { %v3469_v26 = vmul.f32 %v7694_v24, %v3453_v1 }
 0xb46   :  { %v3477_v29 = vmul.f32 %v6706_v25, %v3469_v26 }
 0xb47   :  { %v7696_v30 = vpop.eup %7695 }
 0xb48   :  { %v3470_v31 = vmul.f32 %v7696_v30, %v3454_v10  ;;  %v8469_v32 = vadd.f32 %v6707_v28, %v3477_v29 }
 0xb4a   :  { %7364 = vmatmul.mubr.msk.f32.vlgmr.msra.gmra.mxu0 %vm560_vm7, %v8469_v32  ;;  %v3478_v35 = vmul.f32 %v6706_v25, %v3470_v31 }
 0xb4b   :  { %7378 = vmatpush3.msra.mxu0 %v6715_v33  ;;  %7385 = vmatprep.mubr.msk.f32.mxu0 %vm7738_vm2, %v7737_v2 }
 0xb4c   :  { %7379 = vmatprep.subr.mxu0 %v7737_v2  ;;  %v8482_v36 = vadd.f32 %v6707_v28, %v3478_v35 }
 0xb4d   :  { %7380 = vmatpush3.msra.mxu0 %v6714_v34 }
 0xb4e   :  { %7381 = vmatprep.subr.mxu0 %v7737_v2  ;;  %7375 = vmatmul.mubr.msk.f32.vlgmr.msra.gmra.mxu1 %vm560_vm7, %v8482_v36 }
 0xb4f   :  { %7382 = vmatpush3.msra.mxu0 %v6713_v37  ;;  %7389 = vmatpush3.msra.mxu1 %v6715_v33 }
 0xb50   :  { %7383 = vmatprep.subr.mxu0 %v7737_v2  ;;  %7390 = vmatprep.subr.mxu1 %v7737_v2 }
 0xb51   :  { %7384 = vmatpush3.msra.mxu0 %v6712_v38  ;;  %7391 = vmatpush3.msra.mxu1 %v6714_v34 }
 0xb52   :  { %7386 = vmatmul.mubr.msk.f32.vlgmr.msra.gmra.mxu0 %vm560_vm7, %v8469_v32  ;;  %7392 = vmatprep.subr.mxu1 %v7737_v2 }
 0xb53   :  { %7399 = vmatprep.subr.mxu0 %v7737_v2  ;;  %7393 = vmatpush3.msra.mxu1 %v6713_v37 }
 0xb54   :  { %7400 = vmatpush3.msra.mxu0 %v6719_v22  ;;  %7394 = vmatprep.subr.mxu1 %v7737_v2 }
 0xb55   :  { %7401 = vmatprep.subr.mxu0 %v7737_v2  ;;  %7395 = vmatpush3.msra.mxu1 %v6712_v38 }
 0xb56   :  { %7396 = vmatprep.mubr.msk.f32.mxu1 %vm7738_vm2, %v7737_v2  ;;  %7402 = vmatpush3.msra.mxu0 %v6718_v23 }
 0xb57   :  { %7397 = vmatmul.mubr.msk.f32.vlgmr.msra.gmra.mxu1 %vm560_vm7, %v8482_v36  ;;  %7403 = vmatprep.subr.mxu0 %v7737_v2 }
 0xb58   :  { %7410 = vmatprep.subr.mxu1 %v7737_v2  ;;  %7404 = vmatpush3.msra.mxu0 %v6717_v39 }
 0xb59   :  { %7411 = vmatpush3.msra.mxu1 %v6719_v22  ;;  %7405 = vmatprep.subr.mxu0 %v7737_v2 }
 0xb5a   :  { %7412 = vmatprep.subr.mxu1 %v7737_v2  ;;  %7406 = vmatpush3.msra.mxu0 %v6716_v40 }
 0xb5b   :  { %7407 = vmatprep.mubr.msk.f32.mxu0 %vm7738_vm2, %v7737_v2  ;;  %7413 = vmatpush3.msra.mxu1 %v6718_v23 }
 0xb5c   :  { %7408 = vmatmul.mubr.msk.f32.vlgmr.msra.gmra.mxu0 %vm560_vm7, %v8469_v32  ;;  %7414 = vmatprep.subr.mxu1 %v7737_v2 }
 0xb5d   :  { %7421 = vmatprep.subr.mxu0 %v7737_v2  ;;  %7415 = vmatpush3.msra.mxu1 %v6717_v39 }
 0xb5e   :  { %7422 = vmatpush3.msra.mxu0 %v6723_v41  ;;  %7416 = vmatprep.subr.mxu1 %v7737_v2 }
 0xb5f   :  { %7423 = vmatprep.subr.mxu0 %v7737_v2  ;;  %7417 = vmatpush3.msra.mxu1 %v6716_v40 }
 0xb60   :  { %7418 = vmatprep.mubr.msk.f32.mxu1 %vm7738_vm2, %v7737_v2  ;;  %7424 = vmatpush3.msra.mxu0 %v6722_v42 }
 0xb61   :  { %7419 = vmatmul.mubr.msk.f32.vlgmr.msra.gmra.mxu1 %vm560_vm7, %v8482_v36  ;;  %7425 = vmatprep.subr.mxu0 %v7737_v2 }
 0xb62   :  { %7432 = vmatprep.subr.mxu1 %v7737_v2  ;;  %7426 = vmatpush3.msra.mxu0 %v6721_v43 }
 0xb63   :  { %7433 = vmatpush3.msra.mxu1 %v6723_v41  ;;  %7427 = vmatprep.subr.mxu0 %v7737_v2 }
 0xb64   :  { %7434 = vmatprep.subr.mxu1 %v7737_v2  ;;  %7428 = vmatpush3.msra.mxu0 %v6720_v44 }
 0xb65   :  { %7429 = vmatprep.mubr.msk.f32.mxu0 %vm7738_vm2, %v7737_v2  ;;  %7435 = vmatpush3.msra.mxu1 %v6722_v42 }
 0xb66   :  { %7430 = vmatmul.mubr.msk.f32.vlgmr.msra.gmra.mxu0 %vm560_vm7, %v8469_v32  ;;  %7436 = vmatprep.subr.mxu1 %v7737_v2 }
 0xb67   :  { %7437 = vmatpush3.msra.mxu1 %v6721_v43  ;;  %7440 = vmatprep.mubr.msk.f32.mxu1 %vm7738_vm2, %v7737_v2 }
 0xb68   :  { %7438 = vmatprep.subr.mxu1 %v7737_v2  ;;  %7443 = vmatprep.subr.mxu0 %v7737_v2 }
 0xb69   :  { %7439 = vmatpush3.msra.mxu1 %v6720_v44  ;;  %7445 = vmatprep.mubr.msk.f32.mxu0 %vm7738_vm2, %v7737_v2 }
 0xb6a   :  { %7441 = vmatmul.mubr.msk.f32.vlgmr.msra.gmra.mxu1 %vm560_vm7, %v8482_v36  ;;  %7448 = vmatprep.subr.mxu1 %v7737_v2 }
 0xb6b   :  { %7450 = vmatprep.mubr.msk.f32.mxu1 %vm7738_vm2, %v7737_v2 }
 0xc0a   :  { %v3602_v46 = vpop.f32.mrf.mxu0 }
 0xc0b   :  { %v8568_v47 = vadd.f32 %v6728_v45, %v3602_v46 }
 0xc0c   :  { %v7365_v48 = vpop.f32.mrf.mxu0 }
 0xc0d   :  { %4100 = vrot.lane.b32.xlu0 %v8568_v47, %s7739_s0 }
 0xc0e   :  { %v3675_v49 = vpop.f32.mrf.mxu1 }
 0xc0f   :  { %v8572_v50 = vadd.f32 %v6728_v45, %v3675_v49 }
 0xc10   :  { %v7376_v51 = vpop.f32.mrf.mxu1 }
 0xc11   :  { %4177 = vrot.lane.b32.xlu1 %v8572_v50, %s7739_s0 }
 0xc12   :  { %v3745_v54 = vpop.f32.mrf.mxu0 }
 0xc13   :  { %v8579_v56 = vadd.f32 %v6729_v53, %v3745_v54 }
 0xc14   :  { %v7387_v57 = vpop.f32.mrf.mxu0 }
 0xc15   :  { %4254 = vrot.lane.b32.xlu1 %v8579_v56, %s7739_s0 }
 0xc17   :  { %v3815_v58 = vpop.f32.mrf.mxu1 }
 0xc18   :  { %v8583_v60 = vadd.f32 %v6729_v53, %v3815_v58 }
 0xc19   :  { %v7398_v63 = vpop.f32.mrf.mxu1 }
 0xc1a   :  { %4331 = vrot.lane.b32.xlu1 %v8583_v60, %s7739_s0 }
 0xc1c   :  { %v3885_v12 = vpop.f32.mrf.mxu0 }
 0xc1d   :  { %v8590_v3 = vadd.f32 %v6730_v15, %v3885_v12 }
 0xc1e   :  { %v7409_v7 = vpop.f32.mrf.mxu0 }
 0xc1f   :  { %4408 = vrot.lane.b32.xlu0 %v8590_v3, %s7739_s0 }
 0xc21   :  { %v3955_v9 = vpop.f32.mrf.mxu1 }
 0xc22   :  { %v8594_v11 = vadd.f32 %v6730_v15, %v3955_v9 }
 0xc23   :  { %v7420_v1 = vpop.f32.mrf.mxu1 }
 0xc24   :  { %4485 = vrot.lane.b32.xlu1 %v8594_v11, %s7739_s0 }
 0xc26   :  { %v4025_v14 = vpop.f32.mrf.mxu0 }
 0xc27   :  { %v8601_v0 = vadd.f32 %v6731_v13, %v4025_v14 }
 0xc28   :  { %v7431_v10 = vpop.f32.mrf.mxu0 }
 0xc29   :  { %4562 = vrot.lane.b32.xlu0 %v8601_v0, %s7739_s0 }
 0xc2a   :  { %v4095_v16 = vpop.f32.mrf.mxu1 }
 0xc2b   :  { %v8605_v55 = vadd.f32 %v6731_v13, %v4095_v16 }
 0xc2c   :  { %v7442_v17 = vpop.f32.mrf.mxu1 }
 0xc2d   :  { %4639 = vrot.lane.b32.xlu1 %v8605_v55, %s7739_s0 }
 0xc7f   :  { %v4101_v52 = vpop.permute.xlu0 %4100 }
 0xc80   :  { %7444 = vmatpush3.xpose.msk.msra.mxu0 %vm1130_vm8, %v4101_v52 }
 0xc81   :  { %7453 = vmatprep.subr.mxu0 %v7737_v2 }
 0xc83   :  { %v4178_v4 = vpop.permute.xlu1 %4177  ;;  %7446 = vmatmul.mubr.msk.f32.vlgmr.msra.gmra.mxu0 %vm1130_vm8, %v8568_v47 }
 0xc84   :  { %7449 = vmatpush3.xpose.msk.msra.mxu1 %vm1130_vm8, %v4178_v4  ;;  %7455 = vmatprep.mubr.msk.f32.mxu0 %vm7738_vm2, %v7737_v2 }
 0xc85   :  { %7458 = vmatprep.subr.mxu1 %v7737_v2 }
 0xc87   :  { %7451 = vmatmul.mubr.msk.f32.vlgmr.msra.gmra.mxu1 %vm1130_vm8, %v8572_v50  ;;  %v4255_v18 = vpop.permute.xlu1 %4254 }
 0xc88   :  { %7454 = vmatpush3.xpose.msk.msra.mxu0 %vm1130_vm8, %v4255_v18  ;;  %7460 = vmatprep.mubr.msk.f32.mxu1 %vm7738_vm2, %v7737_v2 }
 0xc89   :  { %7463 = vmatprep.subr.mxu0 %v7737_v2 }
 0xc8b   :  { %7456 = vmatmul.mubr.msk.f32.vlgmr.msra.gmra.mxu0 %vm1130_vm8, %v8579_v56 }
 0xc8c   :  { %v4332_v59 = vpop.permute.xlu1 %4331  ;;  %7465 = vmatprep.mubr.msk.f32.mxu0 %vm7738_vm2, %v7737_v2 }
 0xc8d   :  { %7459 = vmatpush3.xpose.msk.msra.mxu1 %vm1130_vm8, %v4332_v59 }
 0xc8e   :  { %7468 = vmatprep.subr.mxu1 %v7737_v2 }
 0xc90   :  { %7461 = vmatmul.mubr.msk.f32.vlgmr.msra.gmra.mxu1 %vm1130_vm8, %v8583_v60 }
 0xc91   :  { %v4409_v19 = vpop.permute.xlu0 %4408  ;;  %7470 = vmatprep.mubr.msk.f32.mxu1 %vm7738_vm2, %v7737_v2 }
 0xc92   :  { %7464 = vmatpush3.xpose.msk.msra.mxu0 %vm1130_vm8, %v4409_v19 }
 0xc93   :  { %7473 = vmatprep.subr.mxu0 %v7737_v2 }
 0xc95   :  { %7466 = vmatmul.mubr.msk.f32.vlgmr.msra.gmra.mxu0 %vm1130_vm8, %v8590_v3 }
 0xc96   :  { %v4486_v5 = vpop.permute.xlu1 %4485  ;;  %7475 = vmatprep.mubr.msk.f32.mxu0 %vm7738_vm2, %v7737_v2 }
 0xc97   :  { %7469 = vmatpush3.xpose.msk.msra.mxu1 %vm1130_vm8, %v4486_v5 }
 0xc98   :  { %7478 = vmatprep.subr.mxu1 %v7737_v2 }
 0xc9a   :  { %7471 = vmatmul.mubr.msk.f32.vlgmr.msra.gmra.mxu1 %vm1130_vm8, %v8594_v11 }
 0xc9b   :  { %v4563_v20 = vpop.permute.xlu0 %4562  ;;  %7480 = vmatprep.mubr.msk.f32.mxu1 %vm7738_vm2, %v7737_v2 }
 0xc9c   :  { %7474 = vmatpush3.xpose.msk.msra.mxu0 %vm1130_vm8, %v4563_v20 }
 0xc9d   :  { %7483 = vmatprep.subr.mxu0 %v7737_v2 }
 0xc9f   :  { %v4640_v21 = vpop.permute.xlu1 %4639  ;;  %7476 = vmatmul.mubr.msk.f32.vlgmr.msra.gmra.mxu0 %vm1130_vm8, %v8601_v0 }
 0xca0   :  { %7479 = vmatpush3.xpose.msk.msra.mxu1 %vm1130_vm8, %v4640_v21  ;;  %7485 = vmatprep.mubr.msk.f32.mxu0 %vm7738_vm2, %v7737_v2 }
 0xca1   :  { %7488 = vmatprep.subr.mxu1 %v7737_v2 }
 0xca3   :  { %7481 = vmatmul.mubr.msk.f32.vlgmr.msra.gmra.mxu1 %vm1130_vm8, %v8605_v55 }
 0xca4   :  { %7490 = vmatprep.mubr.msk.f32.mxu1 %vm7738_vm2, %v7737_v2 }
 0xd43   :  { %v4172_v62 = vpop.f32.mrf.mxu0 }
 0xd44   :  { %v4715_v8 = vmul.f32 0.35355338, %v4172_v62 }
 0xd45   :  { %v7447_v24 = vpop.f32.mrf.mxu0 }
 0xd46   :  { %v4723_v25 = vadd.f32 %v4715_v8, %v8170_v27 }
 0xd47   :  { %v4249_v26 = vpop.f32.mrf.mxu1 }
 0xd48   :  { %v4716_v28 = vmul.f32 0.35355338, %v4249_v26  ;;  %v4731_v29 = vsel %vm1760_vm9, %v4723_v25, -inf }
 0xd49   :  { %v7452_v30 = vpop.f32.mrf.mxu1  ;;  %4732 = vmax.xlane.f32.xlu0 %v4731_v29 }
 0xd4a   :  { %v4724_v31 = vadd.f32 %v4716_v28, %v8170_v27 }
 0xd4b   :  { %v4326_v32 = vpop.f32.mrf.mxu0 }
 0xd4c   :  { %v4717_v33 = vmul.f32 0.35355338, %v4326_v32  ;;  %v4734_v34 = vsel %vm1760_vm9, %v4724_v31, -inf }
 0xd4d   :  { %4735 = vmax.xlane.f32.xlu1 %v4734_v34  ;;  %v7457_v35 = vpop.f32.mrf.mxu0 }
 0xd4e   :  { %v4725_v36 = vadd.f32 %v4717_v33, %v8170_v27 }
 0xd50   :  { %v4403_v37 = vpop.f32.mrf.mxu1  ;;  %v4737_v38 = vsel %vm1760_vm9, %v4725_v36, -inf }
 0xd51   :  { %v4718_v22 = vmul.f32 0.35355338, %v4403_v37  ;;  %4738 = vmax.xlane.f32.xlu0 %v4737_v38 }
 0xd52   :  { %v7462_v23 = vpop.f32.mrf.mxu1 }
 0xd53   :  { %v4726_v39 = vadd.f32 %v4718_v22, %v8170_v27 }
 0xd55   :  { %v4480_v40 = vpop.f32.mrf.mxu0  ;;  %v4740_v41 = vsel %vm1760_vm9, %v4726_v39, -inf }
 0xd56   :  { %v4719_v42 = vmul.f32 0.35355338, %v4480_v40  ;;  %4741 = vmax.xlane.f32.xlu0 %v4740_v41 }
 0xd57   :  { %v7467_v43 = vpop.f32.mrf.mxu0 }
 0xd58   :  { %v4727_v44 = vadd.f32 %v4719_v42, %v8170_v27 }
 0xd5a   :  { %v4557_v45 = vpop.f32.mrf.mxu1  ;;  %v4743_v46 = vsel %vm1760_vm9, %v4727_v44, -inf }
 0xd5b   :  { %v4720_v48 = vmul.f32 0.35355338, %v4557_v45  ;;  %4744 = vmax.xlane.f32.xlu0 %v4743_v46 }
 0xd5c   :  { %v7472_v49 = vpop.f32.mrf.mxu1 }
 0xd5d   :  { %v4728_v51 = vadd.f32 %v4720_v48, %v8170_v27 }
 0xd5f   :  { %v4634_v53 = vpop.f32.mrf.mxu0  ;;  %v4746_v54 = vsel %vm1760_vm9, %v4728_v51, -inf }
 0xd60   :  { %v4721_v57 = vmul.f32 0.35355338, %v4634_v53  ;;  %4747 = vmax.xlane.f32.xlu1 %v4746_v54 }
 0xd61   :  { %v7477_v58 = vpop.f32.mrf.mxu0 }
 0xd62   :  { %v4729_v63 = vadd.f32 %v4721_v57, %v8170_v27 }
 0xd63   :  { %v4711_v15 = vpop.f32.mrf.mxu1 }
 0xd64   :  { %v4722_v12 = vmul.f32 0.35355338, %v4711_v15  ;;  %v4749_v7 = vsel %vm1760_vm9, %v4729_v63, -inf }
 0xd65   :  { %v7482_v9 = vpop.f32.mrf.mxu1  ;;  %4750 = vmax.xlane.f32.xlu0 %v4749_v7 }
 0xd66   :  { %v4730_v1 = vadd.f32 %v4722_v12, %v8170_v27 }
 0xd68   :  { %v4752_v13 = vsel %vm1760_vm9, %v4730_v1, -inf }
 0xd69   :  { %4753 = vmax.xlane.f32.xlu1 %v4752_v13 }
 0xd7a   :  { %4896 = vrot.lane.b32.xlu1 %v8572_v50, %s7740_s2 }
 0xd7b   :  { %4819 = vrot.lane.b32.xlu0 %v8568_v47, %s7740_s2 }
 0xd7e   :  { %4973 = vrot.lane.b32.xlu1 %v8579_v56, %s7740_s2 }
 0xd7f   :  { %5127 = vrot.lane.b32.xlu0 %v8590_v3, %s7740_s2 }
 0xd82   :  { %5050 = vrot.lane.b32.xlu1 %v8583_v60, %s7740_s2 }
 0xd86   :  { %5204 = vrot.lane.b32.xlu1 %v8594_v11, %s7740_s2 }
 0xdd2   :  { %v4733_v27 = vpop.xlane.xlu0 %4732 }
 0xdd3   :  { %v4755_v14 = vsub.f32 %v4723_v25, %v4733_v27 }
 0xdd5   :  { %v4763_v10 = vmul.f32 1.442695, %v4755_v14 }
 0xdd6   :  { %v4736_v16 = vpop.xlane.xlu1 %4735 }
 0xdd7   :  { %7697 = vpow2.f32 %v4763_v10  ;;  %v4756_v50 = vsub.f32 %v4724_v31, %v4736_v16 }
 0xdd9   :  { %v4765_v17 = vmul.f32 1.442695, %v4756_v50 }
 0xdda   :  { %v4739_v47 = vpop.xlane.xlu0 %4738 }
 0xddb   :  { %7699 = vpow2.f32 %v4765_v17  ;;  %v4757_v52 = vsub.f32 %v4725_v36, %v4739_v47 }
 0xddd   :  { %v4767_v56 = vmul.f32 1.442695, %v4757_v52 }
 0xddf   :  { %7701 = vpow2.f32 %v4767_v56  ;;  %v4742_v4 = vpop.xlane.xlu0 %4741 }
 0xde0   :  { %v4758_v3 = vsub.f32 %v4726_v39, %v4742_v4 }
 0xde2   :  { %v4769_v18 = vmul.f32 1.442695, %v4758_v3 }
 0xde4   :  { %v7698_v59 = vpop.eup %7697  ;;  %7703 = vpow2.f32 %v4769_v18  ;;  %v4745_v60 = vpop.xlane.xlu0 %4744  ;;  %v6772_v18 = vld [vmem:[%s8960_s15 + $0x20] sm:$0xff] }
 0xde5   :  { %v4759_v19 = vsub.f32 %v4727_v44, %v4745_v60  ;;  %v4779_v11 = vsel %vm1760_vm9, %v7698_v59, 0.0 }
 0xde6   :  { %4780 = vadd.xlane.f32.xlu0 %v4779_v11 }
 0xde7   :  { %v4771_v5 = vmul.f32 1.442695, %v4759_v19 }
 0xde8   :  { %v7700_v20 = vpop.eup %7699 }
 0xde9   :  { %7705 = vpow2.f32 %v4771_v5  ;;  %v4748_v21 = vpop.xlane.xlu1 %4747  ;;  %v4782_v62 = vsel %vm1760_vm9, %v7700_v20, 0.0 }
 0xdea   :  { %v4760_v8 = vsub.f32 %v4728_v51, %v4748_v21  ;;  %4783 = vadd.xlane.f32.xlu1 %v4782_v62 }
 0xdec   :  { %v8687_v24 = vpop.eup %7701  ;;  %v4773_v25 = vmul.f32 1.442695, %v4760_v8 }
 0xded   :  { %v4785_v26 = vsel %vm1760_vm9, %v8687_v24, 0.0 }
 0xdee   :  { %7707 = vpow2.f32 %v4773_v25  ;;  %v4751_v28 = vpop.xlane.xlu0 %4750  ;;  %4786 = vadd.xlane.f32.xlu0 %v4785_v26  ;;  %v6775_v25 = vld [vmem:[%s8960_s15 + $0x38] sm:$0xff] }
 0xdef   :  { %v4761_v29 = vsub.f32 %v4729_v63, %v4751_v28 }
 0xdf1   :  { %v8691_v30 = vpop.eup %7703  ;;  %v4775_v31 = vmul.f32 1.442695, %v4761_v29 }
 0xdf2   :  { %v4754_v32 = vpop.xlane.xlu1 %4753  ;;  %v4820_v33 = vpop.permute.xlu0 %4819  ;;  %v4788_v34 = vsel %vm1760_vm9, %v8691_v30, 0.0 }
 0xdf3   :  { %7709 = vpow2.f32 %v4775_v31  ;;  %v4762_v35 = vsub.f32 %v4730_v1, %v4754_v32  ;;  %7484 = vmatpush3.msk.msra.mxu0 %vm1855_vm10, %v4820_v33  ;;  %4789 = vadd.xlane.f32.xlu1 %v4788_v34 }
 0xdf4   :  { %7493 = vmatprep.subr.mxu0 %v7737_v2 }
 0xdf5   :  { %v4777_v36 = vmul.f32 1.442695, %v4762_v35 }
 0xdf6   :  { %v8697_v37 = vpop.eup %7705  ;;  %v4897_v38 = vpop.permute.xlu1 %4896 }
 0xdf7   :  { %7711 = vpow2.f32 %v4777_v36  ;;  %7489 = vmatpush3.msk.msra.mxu1 %vm1855_vm10, %v4897_v38  ;;  %v4791_v22 = vsel %vm1760_vm9, %v8697_v37, 0.0  ;;  %v5128_v46 = vpop.permute.xlu0 %5127 }
 0xdf8   :  { %4792 = vadd.xlane.f32.xlu0 %v4791_v22  ;;  %7498 = vmatprep.subr.mxu1 %v7737_v2 }
 0xdfa   :  { %v4974_v44 = vpop.permute.xlu1 %4973 }
 0xdfb   :  { %v8703_v23 = vpop.eup %7707 }
 0xdfc   :  { %v4794_v39 = vsel %vm1760_vm9, %v8703_v23, 0.0 }
 0xdfd   :  { %4795 = vadd.xlane.f32.xlu1 %v4794_v39 }
 0xdfe   :  { %v5051_v45 = vpop.permute.xlu1 %5050 }
 0xe00   :  { %v8707_v40 = vpop.eup %7709 }
 0xe01   :  { %v4797_v41 = vsel %vm1760_vm9, %v8707_v40, 0.0 }
 0xe02   :  { %4798 = vadd.xlane.f32.xlu0 %v4797_v41  ;;  %v5205_v48 = vpop.permute.xlu1 %5204 }
 0xe04   :  { %v8711_v42 = vpop.eup %7711 }
 0xe05   :  { %v4800_v43 = vsel %vm1760_vm9, %v8711_v42, 0.0 }
 0xe06   :  { %4801 = vadd.xlane.f32.xlu1 %v4800_v43 }
 0xe17   :  { %5358 = vrot.lane.b32.xlu1 %v8605_v55, %s7740_s2 }
 0xe18   :  { %5281 = vrot.lane.b32.xlu0 %v8601_v0, %s7740_s2 }
 0xe6f   :  { %v4781_v49 = vpop.xlane.xlu0 %4780 }
 0xe70   :  { %7713 = vrcp.f32 %v4781_v49 }
 0xe73   :  { %v4784_v51 = vpop.xlane.xlu1 %4783 }
 0xe74   :  { %7715 = vrcp.f32 %v4784_v51 }
 0xe77   :  { %v4787_v53 = vpop.xlane.xlu0 %4786 }
 0xe78   :  { %7717 = vrcp.f32 %v4787_v53  ;;  %v6785_v53 = vld [vmem:[%s8961_s16 + $0x1] ss:$0 sm:$0xff] }
 0xe7c   :  { %v4790_v54 = vpop.xlane.xlu1 %4789 }
 0xe7d   :  { %v7714_v57 = vpop.eup %7713  ;;  %7719 = vrcp.f32 %v4790_v54 }
 0xe7e   :  { %v4804_v58 = vmul.f32 %v7714_v57, %v7698_v59  ;;  %v6773_v59 = vld [vmem:[%s8960_s15 + $0x28] sm:$0xff] }
 0xe80   :  { %7486 = vmatmul.mubr.msk.f32.vlgmr.msra.gmra.mxu0 %vm1851_vm11, %v4804_v58 }
 0xe81   :  { %v7716_v55 = vpop.eup %7715  ;;  %v4793_v63 = vpop.xlane.xlu0 %4792  ;;  %7494 = vmatpush3.msk.msra.mxu0 %vm1855_vm10, %v4974_v44  ;;  %7495 = vmatprep.mubr.msk.f32.mxu0 %vm7738_vm2, %v7737_v2 }
 0xe82   :  { %7721 = vrcp.f32 %v4793_v63  ;;  %v4806_v0 = vmul.f32 %v7716_v55, %v7700_v20  ;;  %7503 = vmatprep.subr.mxu0 %v7737_v2  ;;  %v6774_v20 = vld [vmem:[%s8960_s15 + $0x30] sm:$0xff] }
 0xe84   :  { %7491 = vmatmul.mubr.msk.f32.vlgmr.msra.gmra.mxu1 %vm1851_vm11, %v4806_v0 }
 0xe85   :  { %v7718_v15 = vpop.eup %7717  ;;  %7499 = vmatpush3.msk.msra.mxu1 %vm1855_vm10, %v5051_v45  ;;  %7500 = vmatprep.mubr.msk.f32.mxu1 %vm7738_vm2, %v7737_v2 }
 0xe86   :  { %v4796_v12 = vpop.xlane.xlu1 %4795  ;;  %v4808_v7 = vmul.f32 %v7718_v15, %v8687_v24  ;;  %7508 = vmatprep.subr.mxu1 %v7737_v2 }
 0xe87   :  { %7723 = vrcp.f32 %v4796_v12 }
 0xe88   :  { %7496 = vmatmul.mubr.msk.f32.vlgmr.msra.gmra.mxu0 %vm1851_vm11, %v4808_v7 }
 0xe89   :  { %7504 = vmatpush3.msk.msra.mxu0 %vm1855_vm10, %v5128_v46  ;;  %7505 = vmatprep.mubr.msk.f32.mxu0 %vm7738_vm2, %v7737_v2 }
 0xe8a   :  { %v7720_v9 = vpop.eup %7719  ;;  %7513 = vmatprep.subr.mxu0 %v7737_v2 }
 0xe8b   :  { %v4799_v1 = vpop.xlane.xlu0 %4798  ;;  %v4810_v13 = vmul.f32 %v7720_v9, %v8691_v30 }
 0xe8c   :  { %7725 = vrcp.f32 %v4799_v1 }
 0xe8d   :  { %7501 = vmatmul.mubr.msk.f32.vlgmr.msra.gmra.mxu1 %vm1851_vm11, %v4810_v13 }
 0xe8e   :  { %7509 = vmatpush3.msk.msra.mxu1 %vm1855_vm10, %v5205_v48  ;;  %7510 = vmatprep.mubr.msk.f32.mxu1 %vm7738_vm2, %v7737_v2 }
 0xe8f   :  { %v7722_v27 = vpop.eup %7721  ;;  %v4802_v14 = vpop.xlane.xlu1 %4801  ;;  %7518 = vmatprep.subr.mxu1 %v7737_v2 }
 0xe90   :  { %7727 = vrcp.f32 %v4802_v14  ;;  %v4812_v10 = vmul.f32 %v7722_v27, %v8697_v37  ;;  %v5282_v16 = vpop.permute.xlu0 %5281 }
 0xe92   :  { %7506 = vmatmul.mubr.msk.f32.vlgmr.msra.gmra.mxu0 %vm1851_vm11, %v4812_v10 }
 0xe93   :  { %7514 = vmatpush3.msk.msra.mxu0 %vm1855_vm10, %v5282_v16  ;;  %7515 = vmatprep.mubr.msk.f32.mxu0 %vm7738_vm2, %v7737_v2  ;;  %v5359_v47 = vpop.permute.xlu1 %5358 }
 0xe94   :  { %v7724_v50 = vpop.eup %7723  ;;  %7523 = vmatprep.subr.mxu0 %v7737_v2 }
 0xe95   :  { %v4814_v17 = vmul.f32 %v7724_v50, %v8703_v23 }
 0xe97   :  { %7511 = vmatmul.mubr.msk.f32.vlgmr.msra.gmra.mxu1 %vm1851_vm11, %v4814_v17 }
 0xe98   :  { %7519 = vmatpush3.msk.msra.mxu1 %vm1855_vm10, %v5359_v47  ;;  %7520 = vmatprep.mubr.msk.f32.mxu1 %vm7738_vm2, %v7737_v2 }
 0xe99   :  { %v7726_v52 = vpop.eup %7725  ;;  %7528 = vmatprep.subr.mxu1 %v7737_v2 }
 0xe9a   :  { %v4816_v56 = vmul.f32 %v7726_v52, %v8707_v40  ;;  %v6793_v52 = vld [vmem:[%s8962_s17 + $0x38] sm:$0xff] }
 0xe9c   :  { %7516 = vmatmul.mubr.msk.f32.vlgmr.msra.gmra.mxu0 %vm1851_vm11, %v4816_v56  ;;  %v6792_v56 = vld [vmem:[%s8962_s17 + $0x30] sm:$0xff] }
 0xe9d   :  { %v7728_v4 = vpop.eup %7727  ;;  %7525 = vmatprep.mubr.msk.f32.mxu0 %vm7738_vm2, %v7737_v2  ;;  %7524 = vmatpush3.msra.mxu0 %v6772_v18 }
 0xe9e   :  { %v4818_v3 = vmul.f32 %v7728_v4, %v8711_v42  ;;  %7533 = vmatprep.subr.mxu0 %v7737_v2  ;;  %v6791_v4 = vld [vmem:[%s8962_s17 + $0x28] sm:$0xff] }
 0xea0   :  { %7521 = vmatmul.mubr.msk.f32.vlgmr.msra.gmra.mxu1 %vm1851_vm11, %v4818_v3  ;;  %v6790_v3 = vld [vmem:[%s8962_s17 + $0x20] sm:$0xff] }
 0xea1   :  { %7530 = vmatprep.mubr.msk.f32.mxu1 %vm7738_vm2, %v7737_v2  ;;  %7529 = vmatpush3.msra.mxu1 %v6772_v18 }
 0xea2   :  { %7538 = vmatprep.subr.mxu1 %v7737_v2 }
 0xf40   :  { %v4892_v60 = vpop.f32.mrf.mxu0 }
 0xf41   :  { %7526 = vmatmul.mubr.msk.f32.vlgmr.msra.gmra.mxu0 %vm1130_vm8, %v4892_v60 }
 0xf42   :  { %v7487_v19 = vpop.f32.mrf.mxu0  ;;  %7534 = vmatpush3.msra.mxu0 %v6773_v59  ;;  %7535 = vmatprep.mubr.msk.f32.mxu0 %vm7738_vm2, %v7737_v2 }
 0xf43   :  { %7543 = vmatprep.subr.mxu0 %v7737_v2 }
 0xf44   :  { %v4969_v11 = vpop.f32.mrf.mxu1 }
 0xf45   :  { %7531 = vmatmul.mubr.msk.f32.vlgmr.msra.gmra.mxu1 %vm1130_vm8, %v4969_v11 }
 0xf46   :  { %v7492_v5 = vpop.f32.mrf.mxu1  ;;  %7539 = vmatpush3.msra.mxu1 %v6773_v59  ;;  %7540 = vmatprep.mubr.msk.f32.mxu1 %vm7738_vm2, %v7737_v2 }
 0xf47   :  { %7548 = vmatprep.subr.mxu1 %v7737_v2 }
 0xf48   :  { %v5046_v21 = vpop.f32.mrf.mxu0 }
 0xf49   :  { %7536 = vmatmul.mubr.msk.f32.vlgmr.msra.gmra.mxu0 %vm1130_vm8, %v5046_v21  ;;  %v6788_v21 = vld [vmem:[%s8963_s11 + $0x1] ss:$0 sm:$0xff] }
 0xf4a   :  { %v7497_v62 = vpop.f32.mrf.mxu0  ;;  %7544 = vmatpush3.msra.mxu0 %v6774_v20  ;;  %7545 = vmatprep.mubr.msk.f32.mxu0 %vm7738_vm2, %v7737_v2 }
 0xf4b   :  { %7553 = vmatprep.subr.mxu0 %v7737_v2 }
 0xf4d   :  { %v5123_v8 = vpop.f32.mrf.mxu1 }
 0xf4e   :  { %7541 = vmatmul.mubr.msk.f32.vlgmr.msra.gmra.mxu1 %vm1130_vm8, %v5123_v8  ;;  %v6789_v8 = vld [vmem:[%s8964_s12 + $0x1] ss:$0 sm:$0xff] }
 0xf4f   :  { %v7502_v24 = vpop.f32.mrf.mxu1  ;;  %7549 = vmatpush3.msra.mxu1 %v6774_v20  ;;  %7550 = vmatprep.mubr.msk.f32.mxu1 %vm7738_vm2, %v7737_v2 }
 0xf50   :  { %7558 = vmatprep.subr.mxu1 %v7737_v2 }
 0xf52   :  { %v5200_v26 = vpop.f32.mrf.mxu0 }
 0xf53   :  { %7546 = vmatmul.mubr.msk.f32.vlgmr.msra.gmra.mxu0 %vm1130_vm8, %v5200_v26 }
 0xf54   :  { %v7507_v28 = vpop.f32.mrf.mxu0  ;;  %7554 = vmatpush3.msra.mxu0 %v6775_v25  ;;  %7555 = vmatprep.mubr.msk.f32.mxu0 %vm7738_vm2, %v7737_v2 }
 0xf55   :  { %7563 = vmatprep.subr.mxu0 %v7737_v2 }
 0xf57   :  { %v5277_v29 = vpop.f32.mrf.mxu1 }
 0xf58   :  { %7551 = vmatmul.mubr.msk.f32.vlgmr.msra.gmra.mxu1 %vm1130_vm8, %v5277_v29  ;;  %v6805_v29 = vld [vmem:[%s8965_s19 + $0x78] sm:$0xff] }
 0xf59   :  { %v7512_v30 = vpop.f32.mrf.mxu1  ;;  %7559 = vmatpush3.msra.mxu1 %v6775_v25  ;;  %7560 = vmatprep.mubr.msk.f32.mxu1 %vm7738_vm2, %v7737_v2 }
 0xf5a   :  { %7574 = vmatprep.subr.mxu1 %v7737_v2 }
 0xf5c   :  { %v5354_v31 = vpop.f32.mrf.mxu0 }
 0xf5d   :  { %7556 = vmatmul.mubr.msk.f32.vlgmr.msra.gmra.mxu0 %vm1130_vm8, %v5354_v31  ;;  %v6804_v31 = vld [vmem:[%s8965_s19 + $0x70] sm:$0xff] }
 0xf5e   :  { %v7517_v32 = vpop.f32.mrf.mxu0  ;;  %7571 = vmatprep.mubr.msk.f32.mxu0 %vm7738_vm2, %v7737_v2  ;;  %7564 = vmatpush3.msra.mxu0 %v6793_v52 }
 0xf5f   :  { %7565 = vmatprep.subr.mxu0 %v7737_v2 }
 0xf60   :  { %v5431_v33 = vpop.f32.mrf.mxu1  ;;  %7566 = vmatpush3.msra.mxu0 %v6792_v56 }
 0xf61   :  { %7561 = vmatmul.mubr.msk.f32.vlgmr.msra.gmra.mxu1 %vm1130_vm8, %v5431_v33  ;;  %7567 = vmatprep.subr.mxu0 %v7737_v2  ;;  %v6803_v33 = vld [vmem:[%s8965_s19 + $0x68] sm:$0xff] }
 0xf62   :  { %v7522_v34 = vpop.f32.mrf.mxu1  ;;  %7582 = vmatprep.mubr.msk.f32.mxu1 %vm7738_vm2, %v7737_v2  ;;  %7575 = vmatpush3.msra.mxu1 %v6793_v52 }
 0xf63   :  { %7576 = vmatprep.subr.mxu1 %v7737_v2  ;;  %7568 = vmatpush3.msra.mxu0 %v6791_v4  ;;  %v6802_v34 = vld [vmem:[%s8965_s19 + $0x60] sm:$0xff] }
 0xf64   :  { %7577 = vmatpush3.msra.mxu1 %v6792_v56  ;;  %7569 = vmatprep.subr.mxu0 %v7737_v2 }
 0xf65   :  { %7578 = vmatprep.subr.mxu1 %v7737_v2  ;;  %7570 = vmatpush3.msra.mxu0 %v6790_v3 }
 0xf66   :  { %7579 = vmatpush3.msra.mxu1 %v6791_v4  ;;  %7585 = vmatprep.subr.mxu0 %v7737_v2 }
 0xf67   :  { %7580 = vmatprep.subr.mxu1 %v7737_v2 }
 0xf68   :  { %7581 = vmatpush3.msra.mxu1 %v6790_v3 }
 0xf69   :  { %7604 = vmatprep.subr.mxu1 %v7737_v2 }
0x1001   :  { %v5509_v35 = vpop.f32.mrf.mxu0 }
0x1003   :  { %v7527_v36 = vpop.f32.mrf.mxu0 }
0x1004   :  { %v6800_v36 = vld [vmem:[%s8965_s19 + $0x50] sm:$0xff] }
0x1005   :  { %v5582_v37 = vpop.f32.mrf.mxu1 }
0x1007   :  { %v7532_v38 = vpop.f32.mrf.mxu1 }
0x1008   :  { %v6798_v38 = vld [vmem:[%s8965_s19 + $0x40] sm:$0xff] }
0x1009   :  { %v5655_v22 = vpop.f32.mrf.mxu0 }
0x100a   :  { %v6024_v44 = vadd.f32 %v5655_v22, %v5509_v35  ;;  %v6801_v35 = vld [vmem:[%s8965_s19 + $0x58] sm:$0xff]  ;;  %v6795_v22 = vld [vmem:[%s8966_s18 + $0x1] ss:$0 sm:$0xff] }
0x100b   :  { %v7537_v23 = vpop.f32.mrf.mxu0 }
0x100e   :  { %v5728_v39 = vpop.f32.mrf.mxu1 }
0x100f   :  { %v6025_v49 = vadd.f32 %v5728_v39, %v5582_v37  ;;  %v6799_v37 = vld [vmem:[%s8965_s19 + $0x48] sm:$0xff] }
0x1010   :  { %v7542_v40 = vpop.f32.mrf.mxu1 }
0x1013   :  { %v5801_v41 = vpop.f32.mrf.mxu0 }
0x1014   :  { %v6026_v46 = vadd.f32 %v6024_v44, %v5801_v41 }
0x1015   :  { %v7547_v42 = vpop.f32.mrf.mxu0 }
0x1018   :  { %v5874_v43 = vpop.f32.mrf.mxu1 }
0x1019   :  { %v6027_v57 = vadd.f32 %v6025_v49, %v5874_v43 }
0x101a   :  { %v7552_v45 = vpop.f32.mrf.mxu1 }
0x101d   :  { %v5947_v48 = vpop.f32.mrf.mxu0 }
0x101e   :  { %v6028_v51 = vadd.f32 %v6026_v46, %v5947_v48  ;;  %v6809_v48 = vld [vmem:[%s8967_s20 + $0x1] ss:$0 sm:$0xff] }
0x101f   :  { %v7557_v54 = vpop.f32.mrf.mxu0 }
0x1020   :  { %v6030_v58 = vadd.f32 %v6028_v51, %v8430_v61 }
0x1021   :  { %v6020_v55 = vpop.f32.mrf.mxu1 }
0x1022   :  { %v8809_v63 = vadd.f32 %v6785_v53, %v6030_v58  ;;  %v6029_v0 = vadd.f32 %v6027_v57, %v6020_v55 }
0x1023   :  { %v7562_v15 = vpop.f32.mrf.mxu1 }
0x1024   :  { %v6031_v12 = vadd.f32 %v6029_v0, %v8435_v6  ;;  %v6046_v7 = vsel %vm84_vm0, %v8809_v63, 0.0 }
0x1025   :  { %6047 = vadd.xlane.f32.xlu0 %v6046_v7 }
0x1026   :  { %v8814_v9 = vadd.f32 %v6785_v53, %v6031_v12 }
0x1028   :  { %v6049_v1 = vsel %vm84_vm0, %v8814_v9, 0.0 }
0x1029   :  { %6050 = vadd.xlane.f32.xlu1 %v6049_v1 }
0x10ae   :  { %v6048_v13 = vpop.xlane.xlu0 %6047 }
0x10af   :  { %v6052_v27 = vmul.f32 0.03125, %v6048_v13 }
0x10b1   :  { %v6054_v61 = vsub.f32 %v8809_v63, %v6052_v27 }
0x10b2   :  { %v6051_v14 = vpop.xlane.xlu1 %6050 }
0x10b3   :  { %v6053_v10 = vmul.f32 0.03125, %v6051_v14  ;;  %v6056_v16 = vmul.f32 %v6054_v61, %v6054_v61 }
0x10b5   :  { %v6055_v50 = vsub.f32 %v8814_v9, %v6053_v10  ;;  %v6058_v6 = vsel %vm84_vm0, %v6056_v16, 0.0  ;;  %v6467_v16 = vld [vmem:[%s8968_s23 + $0x18] sm:$0xff] }
0x10b6   :  { %6059 = vadd.xlane.f32.xlu0 %v6058_v6  ;;  %v6465_v6 = vld [vmem:[%s8968_s23 + $0x8] sm:$0xff] }
0x10b7   :  { %v6057_v17 = vmul.f32 %v6055_v50, %v6055_v50 }
0x10b9   :  { %v6061_v47 = vsel %vm84_vm0, %v6057_v17, 0.0  ;;  %v6464_v17 = vld [vmem:[%s8968_s23] sm:$0xff] }
0x10ba   :  { %6062 = vadd.xlane.f32.xlu0 %v6061_v47 }
0x113f   :  { %v6060_v18 = vpop.xlane.xlu0 %6059 }
0x1140   :  { %v6064_v59 = vmul.f32 0.03125, %v6060_v18 }
0x1142   :  { %v6066_v60 = vadd.f32 1e-05, %v6064_v59 }
0x1143   :  { %v6063_v19 = vpop.xlane.xlu0 %6062 }
0x1144   :  { %7729 = vrsqrt.f32 %v6066_v60  ;;  %v6065_v11 = vmul.f32 0.03125, %v6063_v19  ;;  %v6810_v60 = vld [vmem:[%s8969_s21] ss:$0 sm:$0xff] }
0x1146   :  { %v6067_v5 = vadd.f32 1e-05, %v6065_v11 }
0x1148   :  { %7731 = vrsqrt.f32 %v6067_v5 }
0x1151   :  { %v7730_v20 = vpop.eup %7729 }
0x1152   :  { %v6070_v62 = vmul.f32 %v7730_v20, %v6054_v61 }
0x1154   :  { %v6078_v24 = vmul.f32 %v6788_v21, %v6070_v62 }
0x1155   :  { %v7732_v25 = vpop.eup %7731 }
0x1156   :  { %v6071_v26 = vmul.f32 %v7732_v25, %v6055_v50  ;;  %v6086_v28 = vadd.f32 %v6789_v8, %v6078_v24  ;;  %v6466_v50 = vld [vmem:[%s8968_s23 + $0x10] sm:$0xff] }
0x1158   :  { %7572 = vmatmul.mubr.msk.f32.vlgmr.msra.gmra.mxu0 %vm560_vm7, %v6086_v28  ;;  %v6079_v30 = vmul.f32 %v6788_v21, %v6071_v26  ;;  %v6814_v26 = vld [vmem:[%s8971_s24] ss:$0 sm:$0xff] }
0x1159   :  { %7586 = vmatpush3.msra.mxu0 %v6805_v29  ;;  %7601 = vmatprep.mubr.msk.f32.mxu0 %vm7738_vm2, %v7737_v2 }
0x115a   :  { %v6087_v32 = vadd.f32 %v6789_v8, %v6079_v30  ;;  %7587 = vmatprep.subr.mxu0 %v7737_v2 }
0x115b   :  { %7588 = vmatpush3.msra.mxu0 %v6804_v31 }
0x115c   :  { %7583 = vmatmul.mubr.msk.f32.vlgmr.msra.gmra.mxu1 %vm560_vm7, %v6087_v32  ;;  %7589 = vmatprep.subr.mxu0 %v7737_v2 }
0x115d   :  { %7590 = vmatpush3.msra.mxu0 %v6803_v33  ;;  %7605 = vmatpush3.msra.mxu1 %v6805_v29 }
0x115e   :  { %7591 = vmatprep.subr.mxu0 %v7737_v2  ;;  %7606 = vmatprep.subr.mxu1 %v7737_v2 }
0x115f   :  { %7592 = vmatpush3.msra.mxu0 %v6802_v34  ;;  %7607 = vmatpush3.msra.mxu1 %v6804_v31 }
0x1160   :  { %7593 = vmatprep.subr.mxu0 %v7737_v2  ;;  %7608 = vmatprep.subr.mxu1 %v7737_v2 }
0x1161   :  { %7594 = vmatpush3.msra.mxu0 %v6801_v35  ;;  %7609 = vmatpush3.msra.mxu1 %v6803_v33 }
0x1162   :  { %7595 = vmatprep.subr.mxu0 %v7737_v2  ;;  %7610 = vmatprep.subr.mxu1 %v7737_v2 }
0x1163   :  { %7611 = vmatpush3.msra.mxu1 %v6802_v34  ;;  %7620 = vmatprep.mubr.msk.f32.mxu1 %vm7738_vm2, %v7737_v2 }
0x1164   :  { %7612 = vmatprep.subr.mxu1 %v7737_v2  ;;  %7596 = vmatpush3.msra.mxu0 %v6800_v36 }
0x1165   :  { %7613 = vmatpush3.msra.mxu1 %v6801_v35  ;;  %7597 = vmatprep.subr.mxu0 %v7737_v2 }
0x1166   :  { %7614 = vmatprep.subr.mxu1 %v7737_v2  ;;  %7598 = vmatpush3.msra.mxu0 %v6799_v37 }
0x1167   :  { %7615 = vmatpush3.msra.mxu1 %v6800_v36  ;;  %7599 = vmatprep.subr.mxu0 %v7737_v2 }
0x1168   :  { %7616 = vmatprep.subr.mxu1 %v7737_v2  ;;  %7600 = vmatpush3.msra.mxu0 %v6798_v38 }
0x1169   :  { %7617 = vmatpush3.msra.mxu1 %v6799_v37  ;;  %7623 = vmatprep.subr.mxu0 %v7737_v2 }
0x116a   :  { %7618 = vmatprep.subr.mxu1 %v7737_v2 }
0x116b   :  { %7619 = vmatpush3.msra.mxu1 %v6798_v38 }
0x116c   :  { %7634 = vmatprep.subr.mxu1 %v7737_v2 }
0x1218   :  { %v6170_v23 = vpop.f32.mrf.mxu0 }
0x1219   :  { %v6171_v39 = vadd.f32 %v6795_v22, %v6170_v23 }
0x121a   :  { %v7573_v40 = vpop.f32.mrf.mxu0 }
0x121b   :  { %v6247_v41 = vmax.f32 %v6171_v39, 0.0 }
0x121c   :  { %v6243_v42 = vpop.f32.mrf.mxu1 }
0x121d   :  { %v6244_v43 = vadd.f32 %v6795_v22, %v6243_v42  ;;  %7602 = vmatmul.mubr.msk.f32.vlgmr.msra.gmra.mxu0 %vm3283_vm12, %v6247_v41 }
0x121e   :  { %v7584_v44 = vpop.f32.mrf.mxu1  ;;  %7631 = vmatprep.mubr.msk.f32.mxu0 %vm7738_vm2, %v7737_v2  ;;  %7624 = vmatpush3.msra.mxu0 %v6467_v16 }
0x121f   :  { %v6248_v45 = vmax.f32 %v6244_v43, 0.0  ;;  %7625 = vmatprep.subr.mxu0 %v7737_v2 }
0x1220   :  { %7626 = vmatpush3.msra.mxu0 %v6466_v50 }
0x1221   :  { %7621 = vmatmul.mubr.msk.f32.vlgmr.msra.gmra.mxu1 %vm3283_vm12, %v6248_v45  ;;  %7627 = vmatprep.subr.mxu0 %v7737_v2 }
0x1222   :  { %7642 = vmatprep.mubr.msk.f32.mxu1 %vm7738_vm2, %v7737_v2  ;;  %7635 = vmatpush3.msra.mxu1 %v6467_v16 }
0x1223   :  { %7636 = vmatprep.subr.mxu1 %v7737_v2  ;;  %7628 = vmatpush3.msra.mxu0 %v6465_v6 }
0x1224   :  { %7637 = vmatpush3.msra.mxu1 %v6466_v50  ;;  %7629 = vmatprep.subr.mxu0 %v7737_v2 }
0x1225   :  { %7638 = vmatprep.subr.mxu1 %v7737_v2  ;;  %7630 = vmatpush3.msra.mxu0 %v6464_v17 }
0x1226   :  { %7639 = vmatpush3.msra.mxu1 %v6465_v6 }
0x1227   :  { %7640 = vmatprep.subr.mxu1 %v7737_v2  ;;  %v6811_v2 = vld [vmem:[%s8970_s22] ss:$0 sm:$0xff] }
0x1228   :  { %7641 = vmatpush3.msra.mxu1 %v6464_v17 }
0x12dd   :  { %v6327_v46 = vpop.f32.mrf.mxu0 }
0x12de   :  { %v6404_v49 = vadd.f32 %v6327_v46, %v8809_v63 }
0x12df   :  { %v7603_v51 = vpop.f32.mrf.mxu0 }
0x12e0   :  { %v6414_v53 = vadd.f32 %v6809_v48, %v6404_v49 }
0x12e1   :  { %v6400_v54 = vpop.f32.mrf.mxu1 }
0x12e2   :  { %v6405_v57 = vadd.f32 %v6400_v54, %v8814_v9  ;;  %v6418_v58 = vsel %vm84_vm0, %v6414_v53, 0.0 }
0x12e3   :  { %v7622_v55 = vpop.f32.mrf.mxu1  ;;  %6419 = vadd.xlane.f32.xlu0 %v6418_v58 }
0x12e4   :  { %v6415_v0 = vadd.f32 %v6809_v48, %v6405_v57 }
0x12e6   :  { %v6421_v15 = vsel %vm84_vm0, %v6415_v0, 0.0 }
0x12e7   :  { %6422 = vadd.xlane.f32.xlu1 %v6421_v15 }
0x136c   :  { %v6420_v12 = vpop.xlane.xlu0 %6419 }
0x136d   :  { %v6424_v7 = vmul.f32 0.03125, %v6420_v12 }
0x136f   :  { %v6426_v1 = vsub.f32 %v6414_v53, %v6424_v7 }
0x1370   :  { %v6423_v13 = vpop.xlane.xlu1 %6422 }
0x1371   :  { %v6425_v27 = vmul.f32 0.03125, %v6423_v13  ;;  %v6428_v61 = vmul.f32 %v6426_v1, %v6426_v1 }
0x1373   :  { %v6427_v63 = vsub.f32 %v6415_v0, %v6425_v27  ;;  %v6430_v14 = vsel %vm84_vm0, %v6428_v61, 0.0 }
0x1374   :  { %6431 = vadd.xlane.f32.xlu0 %v6430_v14 }
0x1375   :  { %v6429_v10 = vmul.f32 %v6427_v63, %v6427_v63 }
0x1377   :  { %v6433_v9 = vsel %vm84_vm0, %v6429_v10, 0.0 }
0x1378   :  { %6434 = vadd.xlane.f32.xlu1 %v6433_v9 }
0x13fd   :  { %v6432_v47 = vpop.xlane.xlu0 %6431 }
0x13fe   :  { %v6436_v52 = vmul.f32 0.03125, %v6432_v47 }
0x1400   :  { %v6438_v56 = vadd.f32 0.001, %v6436_v52 }
0x1401   :  { %v6435_v4 = vpop.xlane.xlu1 %6434 }
0x1402   :  { %7733 = vrsqrt.f32 %v6438_v56  ;;  %v6437_v3 = vmul.f32 0.03125, %v6435_v4 }
0x1404   :  { %v6439_v18 = vadd.f32 0.001, %v6437_v3 }
0x1406   :  { %7735 = vrsqrt.f32 %v6439_v18 }
0x140f   :  { %v7734_v59 = vpop.eup %7733 }
0x1410   :  { %v6442_v19 = vmul.f32 %v7734_v59, %v6426_v1 }
0x1412   :  { %v6450_v11 = vmul.f32 %v6810_v60, %v6442_v19 }
0x1413   :  { %v7736_v5 = vpop.eup %7735 }
0x1414   :  { %v6443_v20 = vmul.f32 %v7736_v5, %v6427_v63  ;;  %v6458_v21 = vadd.f32 %v6811_v2, %v6450_v11 }
0x1416   :  { %v6812_v62 = vclamps-f32 %v6458_v21, 10.0  ;;  %v6451_v8 = vmul.f32 %v6810_v60, %v6443_v20 }
0x1418   :  { %7632 = vmatmul.mubr.msk.f32.vlgmr.msra.gmra.mxu0 %vm560_vm7, %v6812_v62  ;;  %v6459_v24 = vadd.f32 %v6811_v2, %v6451_v8 }
0x141a   :  { %v6813_v25 = vclamps-f32 %v6459_v24, 10.0 }
0x141c   :  { %7643 = vmatmul.mubr.msk.f32.vlgmr.msra.gmra.mxu1 %vm560_vm7, %v6813_v25 }
0x14d8   :  { %v6544_v28 = vpop.f32.mrf.mxu0 }
0x14d9   :  { %v6545_v29 = vadd.f32 %v6814_v26, %v6544_v28 }
0x14da   :  { %v7633_v30 = vpop.f32.mrf.mxu0 }
0x14db   :  { %6621 = vst [vmem:[%s8972_s25] sm:$0x7] %v6545_v29 }
0x14dc   :  { %v6617_v31 = vpop.f32.mrf.mxu1 }
0x14dd   :  { %v6618_v32 = vadd.f32 %v6814_v26, %v6617_v31 }
0x14de   :  { %v7644_v33 = vpop.f32.mrf.mxu1 }
0x14df   :  { %6622 = vst [vmem:[%s8972_s25 + $0x4] sm:$0x7] %v6618_v32 }

</bundles_post_ra>
